<compile_context>
chip_gen: v7x
topology: tpu7x:2x2x1
jax: 0.10.0
libtpu: 0.0.40
codegen_flags: <defaults>
</compile_context>

<pallas_src>
import functools

import jax
import jax.numpy as jnp
from jax.experimental import pallas as pl
from jax.experimental.pallas import tpu as pltpu

BN_EPS = 1e-5
LEAKY_SLOPE = 0.01  # F.leaky_relu default negative_slope


# ----------------------------- Pallas kernel ------------------------------- #

def _fused_conv_kernel(*refs, act, use_bn, has_skip):
    """Fused conv layer: MXU matmul + (BatchNorm, batch stats) + (skip) + act.

    refs = [w (Cout,Kp) bf16, p (Kp,M) bf16,
            (gamma (Cout,1) f32, beta (Cout,1) f32)?,
            (skip (Cout,M) f32)?,
            out (Cout,M) f32]
    """
    idx = 0
    w_ref = refs[idx]; idx += 1
    p_ref = refs[idx]; idx += 1
    if use_bn:
        gamma_ref = refs[idx]; idx += 1
        beta_ref = refs[idx]; idx += 1
    if has_skip:
        skip_ref = refs[idx]; idx += 1
    o_ref = refs[idx]

    # MXU: bf16 operands, f32 accumulation. Result is (Cout, M): M (large,
    # multiple of 128) on lanes -> unmasked lane-dense stores.
    y = jnp.dot(w_ref[...], p_ref[...], preferred_element_type=jnp.float32)

    if use_bn:
        m = y.shape[1]
        inv_m = 1.0 / m
        mean = jnp.sum(y, axis=1, keepdims=True) * inv_m          # (Cout, 1)
        cent = y - mean
        var = jnp.sum(cent * cent, axis=1, keepdims=True) * inv_m  # biased var
        inv_std = jax.lax.rsqrt(var + BN_EPS)                      # EUP
        y = cent * (gamma_ref[...] * inv_std) + beta_ref[...]

    if has_skip:
        y = y + skip_ref[...]

    if act == "leaky":
        y = jnp.where(y >= 0, y, LEAKY_SLOPE * y)
    elif act == "relu":
        y = jnp.maximum(y, 0.0)
    elif act == "tanh":
        y = jnp.tanh(y)
    # act == "none": identity

    o_ref[...] = y


def _fused_conv_layer(wmat_bf16, patches_bf16, gamma, beta, skip2d, act):
    """wmat: (Cout, Kp) bf16; patches: (Kp, M) bf16 -> (Cout, M) f32."""
    Cout, Kp = wmat_bf16.shape
    _, M = patches_bf16.shape
    use_bn = gamma is not None
    has_skip = skip2d is not None

    args = [wmat_bf16, patches_bf16]
    in_specs = [
        pl.BlockSpec((Cout, Kp), lambda i: (0, 0)),
        pl.BlockSpec((Kp, M), lambda i: (0, 0)),
    ]
    if use_bn:
        args += [gamma.reshape(Cout, 1).astype(jnp.float32),
                 beta.reshape(Cout, 1).astype(jnp.float32)]
        in_specs += [pl.BlockSpec((Cout, 1), lambda i: (0, 0)),
                     pl.BlockSpec((Cout, 1), lambda i: (0, 0))]
    if has_skip:
        args.append(skip2d)
        in_specs.append(pl.BlockSpec((Cout, M), lambda i: (0, 0)))

    return pl.pallas_call(
        functools.partial(_fused_conv_kernel, act=act, use_bn=use_bn,
                          has_skip=has_skip),
        out_shape=jax.ShapeDtypeStruct((Cout, M), jnp.float32),
        grid_spec=pltpu.PrefetchScalarGridSpec(
            num_scalar_prefetch=0,
            grid=(1,),  # whole layer fits comfortably in VMEM at these sizes
            in_specs=in_specs,
            out_specs=pl.BlockSpec((Cout, M), lambda i: (0, 0)),
        ),
        compiler_params=pltpu.CompilerParams(
            dimension_semantics=("arbitrary",)),
    )(*args)


# ------------------------------ JAX glue ----------------------------------- #

def _im2col_cm(x, kh, kw, stride, pad):
    """x: (C, N, H, W) -> patches (C*kh*kw, N*OH*OW); row order (c, i, j)."""
    C, N, H, W = x.shape
    OH = (H + 2 * pad - kh) // stride + 1
    OW = (W + 2 * pad - kw) // stride + 1
    xp = jnp.pad(x, ((0, 0), (0, 0), (pad, pad), (pad, pad)))
    taps = []
    for i in range(kh):
        for j in range(kw):
            taps.append(xp[:, :,
                           i:i + (OH - 1) * stride + 1:stride,
                           j:j + (OW - 1) * stride + 1:stride])
    p = jnp.stack(taps, axis=1)                       # (C, kh*kw, N, OH, OW)
    return p.reshape(C * kh * kw, N * OH * OW), OH, OW


def conv_block(x, w, stride, pad, gamma, beta, act, skip=None):
    """Conv2d(bias=False) [+ BatchNorm2d batch-stats] [+ skip] + activation.

    x: (Cin, N, H, W); w: (Cout, Cin, KH, KW); skip: (Cout, N, OH, OW) or None.
    Returns (Cout, N, OH, OW).
    """
    Cout, Cin, KH, KW = w.shape
    _, N, H, W = x.shape
    patches, OH, OW = _im2col_cm(x, KH, KW, stride, pad)
    K = Cin * KH * KW
    Kp = ((K + 127) // 128) * 128
    wmat = w.reshape(Cout, K)
    if Kp != K:  # zero-pad the contraction dim so the MXU sees aligned tiles
        wmat = jnp.pad(wmat, ((0, 0), (0, Kp - K)))
        patches = jnp.pad(patches, ((0, Kp - K), (0, 0)))

    skip2d = None if skip is None else skip.reshape(Cout, N * OH * OW)
    out2d = _fused_conv_layer(wmat.astype(jnp.bfloat16),
                              patches.astype(jnp.bfloat16),
                              gamma, beta, skip2d, act)
    return out2d.reshape(Cout, N, OH, OW)


def t_conv_block(x, w_t, stride, pad, gamma, beta, act):
    """ConvTranspose2d(bias=False) [+ BN] + act via dilated-input conv."""
    _, _, KH, KW = w_t.shape
    # flip spatially and swap (Cin, Cout) -> equivalent regular conv weight
    w = jnp.flip(w_t, axis=(2, 3)).transpose(1, 0, 2, 3)
    if stride > 1:
        # TODO(synk): replace zero-stuffing with a sub-pixel (stride**2
        # sub-kernel) decomposition to avoid feeding ~75%-zero patch rows
        # through the MXU on the stride-2 transpose layers.
        C, N, H, W = x.shape
        xd = jnp.zeros((C, N, (H - 1) * stride + 1, (W - 1) * stride + 1),
                       x.dtype)
        xd = xd.at[:, :, ::stride, ::stride].set(x)
    else:
        xd = x
    return conv_block(xd, w, 1, KH - 1 - pad, gamma, beta, act)


# ------------------------------ Generator_R -------------------------------- #

def init_params(key, conv_dim):
    D = conv_dim

    def w(k, shape):
        return jax.random.normal(k, shape, jnp.float32) * 0.05

    keys = jax.random.split(key, 14)
    params = {
        # Conv2d weights: (Cout, Cin, KH, KW)
        "conv1":   w(keys[0],  (D,     3,     4, 4)),
        "conv2":   w(keys[1],  (2 * D, D,     4, 4)),
        "conv3":   w(keys[2],  (4 * D, 2 * D, 3, 3)),
        "res1a":   w(keys[3],  (4 * D, 4 * D, 3, 3)),
        "res1b":   w(keys[4],  (4 * D, 4 * D, 3, 3)),
        "res2a":   w(keys[5],  (4 * D, 4 * D, 3, 3)),
        "res2b":   w(keys[6],  (4 * D, 4 * D, 3, 3)),
        "res3a":   w(keys[7],  (4 * D, 4 * D, 3, 3)),
        "res3b":   w(keys[8],  (4 * D, 4 * D, 3, 3)),
        "res4a":   w(keys[9],  (4 * D, 4 * D, 3, 3)),
        "res4b":   w(keys[10], (4 * D, 4 * D, 3, 3)),
        # ConvTranspose2d weights: (Cin, Cout, KH, KW)
        "t_conv1": w(keys[11], (4 * D, 2 * D, 3, 3)),
        "t_conv2": w(keys[12], (2 * D, D,     4, 4)),
        "t_conv3": w(keys[13], (D,     3,     4, 4)),
    }
    bn_channels = {
        "conv2": 2 * D, "conv3": 4 * D,
        "res1a": 4 * D, "res1b": 4 * D, "res2a": 4 * D, "res2b": 4 * D,
        "res3a": 4 * D, "res3b": 4 * D, "res4a": 4 * D, "res4b": 4 * D,
        "t_conv1": 2 * D, "t_conv2": D,
    }
    # PyTorch BatchNorm2d default init: weight=1, bias=0
    bn = {k: (jnp.ones((c,), jnp.float32), jnp.zeros((c,), jnp.float32))
          for k, c in bn_channels.items()}
    return params, bn


def generator_forward(params, bn, x_nchw):
    g = lambda k: bn[k][0]
    b = lambda k: bn[k][1]

    # channel-major layout end-to-end; only edge transposes remain
    x = x_nchw.transpose(1, 0, 2, 3)                   # (3, N, H, W)

    x = conv_block(x, params["conv1"], 2, 1, None, None, "leaky")
    x = conv_block(x, params["conv2"], 2, 1, g("conv2"), b("conv2"), "leaky")
    x = conv_block(x, params["conv3"], 1, 1, g("conv3"), b("conv3"), "leaky")

    for r in ("res1", "res2", "res3", "res4"):
        # out = x + BN(conv_b(relu(BN(conv_a(x)))))
        h = conv_block(x, params[r + "a"], 1, 1, g(r + "a"), b(r + "a"), "relu")
        x = conv_block(h, params[r + "b"], 1, 1, g(r + "b"), b(r + "b"),
                       "none", skip=x)

    x = t_conv_block(x, params["t_conv1"], 1, 1, g("t_conv1"), b("t_conv1"),
                     "leaky")
    x = t_conv_block(x, params["t_conv2"], 2, 1, g("t_conv2"), b("t_conv2"),
                     "leaky")
    x = t_conv_block(x, params["t_conv3"], 2, 1, None, None, "tanh")

    return x.transpose(1, 0, 2, 3)                     # back to NCHW


if __name__ == "__main__":
    key = jax.random.PRNGKey(0)
    kx, kp = jax.random.split(key)
    conv_dim = 8
    # NCHW input; 32x32 so every layer's M = N*OH*OW is a multiple of 128
    x = jax.random.normal(kx, (2, 3, 32, 32), jnp.float32)
    params, bn = init_params(kp, conv_dim)

    fwd = jax.jit(generator_forward)
    out = fwd(params, bn, x)
    jax.block_until_ready(out)
    assert out.shape == (2, 3, 32, 32), out.shape
    assert bool(jnp.all(jnp.isfinite(out)))
    print("KERNEL_OK")
</pallas_src>

<mosaic_0001>
module attributes {stable_mosaic.version = 11 : i64} {
  func.func @_fused_conv_kernel(%arg0: i32, %arg1: memref<8x128xbf16, #tpu.memory_space<vmem>>, %arg2: memref<128x512xbf16, #tpu.memory_space<vmem>>, %arg3: memref<8x512xf32, #tpu.memory_space<vmem>>) attributes {dimension_semantics = [#tpu.dimension_semantics<arbitrary>], iteration_bounds = array<i64: 1>, scalar_prefetch = 0 : i64, scratch_operands = 0 : i64, tpu.core_type = #tpu.core_type<tc>, window_params = [{pipeline_mode = #tpu.pipeline_mode<synchronous>, transform_indices = @transform_0, window_bounds = array<i64: 8, 128>}, {pipeline_mode = #tpu.pipeline_mode<synchronous>, transform_indices = @transform_1, window_bounds = array<i64: 128, 512>}, {pipeline_mode = #tpu.pipeline_mode<synchronous>, transform_indices = @transform_2, window_bounds = array<i64: 8, 512>}]} {
    %c0 = arith.constant 0 : index
    %c0_0 = arith.constant 0 : index
    %0 = vector.load %arg1[%c0, %c0_0] : memref<8x128xbf16, #tpu.memory_space<vmem>>, vector<8x128xbf16>
    %c0_1 = arith.constant 0 : index
    %c0_2 = arith.constant 0 : index
    %1 = vector.load %arg2[%c0_1, %c0_2] : memref<128x512xbf16, #tpu.memory_space<vmem>>, vector<128x512xbf16>
    %cst = arith.constant dense<0.000000e+00> : vector<8x512xf32>
    %2 = tpu.matmul %0, %1, %cst {dimension_numbers = #tpu.dot_dimension_numbers<[1], [0], [0], [1], [0, 0, 1, 1], [], []>} : vector<8x128xbf16>, vector<128x512xbf16>, vector<8x512xf32> -> vector<8x512xf32>
    %cst_3 = arith.constant 0.000000e+00 : f32
    %3 = vector.broadcast %cst_3 : f32 to vector<8x512xf32>
    %4 = arith.cmpf oge, %2, %3 : vector<8x512xf32>
    %cst_4 = arith.constant 0.00999999977 : f32
    %5 = vector.broadcast %cst_4 : f32 to vector<8x512xf32>
    %6 = arith.mulf %5, %2 : vector<8x512xf32>
    %7 = arith.select %4, %2, %6 : vector<8x512xi1>, vector<8x512xf32>
    %c0_5 = arith.constant 0 : index
    %c0_6 = arith.constant 0 : index
    %8 = vector.load %arg3[%c0_5, %c0_6] : memref<8x512xf32, #tpu.memory_space<vmem>>, vector<8x512xf32>
    tpu.vector_store %arg3[%c0_5, %c0_6], %7 {strides = array<i32>} : memref<8x512xf32, #tpu.memory_space<vmem>>, vector<8x512xf32>,
    return
  }
  func.func @transform_0(%arg0: i32) -> (i32, i32) {
    %c0_i32 = arith.constant 0 : i32
    %c0_i32_0 = arith.constant 0 : i32
    %c0_i32_1 = arith.constant 0 : i32
    return %c0_i32, %c0_i32_0 : i32, i32
  }
  func.func @transform_1(%arg0: i32) -> (i32, i32) {
    %c0_i32 = arith.constant 0 : i32
    %c0_i32_0 = arith.constant 0 : i32
    %c0_i32_1 = arith.constant 0 : i32
    return %c0_i32, %c0_i32_0 : i32, i32
  }
  func.func @transform_2(%arg0: i32) -> (i32, i32) {
    %c0_i32 = arith.constant 0 : i32
    %c0_i32_0 = arith.constant 0 : i32
    %c0_i32_1 = arith.constant 0 : i32
    return %c0_i32, %c0_i32_0 : i32, i32
  }
}

module attributes {stable_mosaic.version = 11 : i64} {
  func.func @_fused_conv_kernel(%arg0: i32, %arg1: memref<16x128xbf16, #tpu.memory_space<vmem>>, %arg2: memref<128x128xbf16, #tpu.memory_space<vmem>>, %arg3: memref<16x1xf32, #tpu.memory_space<vmem>>, %arg4: memref<16x1xf32, #tpu.memory_space<vmem>>, %arg5: memref<16x128xf32, #tpu.memory_space<vmem>>) attributes {dimension_semantics = [#tpu.dimension_semantics<arbitrary>], iteration_bounds = array<i64: 1>, scalar_prefetch = 0 : i64, scratch_operands = 0 : i64, tpu.core_type = #tpu.core_type<tc>, window_params = [{pipeline_mode = #tpu.pipeline_mode<synchronous>, transform_indices = @transform_0, window_bounds = array<i64: 16, 128>}, {pipeline_mode = #tpu.pipeline_mode<synchronous>, transform_indices = @transform_1, window_bounds = array<i64: 128, 128>}, {pipeline_mode = #tpu.pipeline_mode<synchronous>, transform_indices = @transform_2, window_bounds = array<i64: 16, 1>}, {pipeline_mode = #tpu.pipeline_mode<synchronous>, transform_indices = @transform_3, window_bounds = array<i64: 16, 1>}, {pipeline_mode = #tpu.pipeline_mode<synchronous>, transform_indices = @transform_4, window_bounds = array<i64: 16, 128>}]} {
    %c0 = arith.constant 0 : index
    %c0_0 = arith.constant 0 : index
    %0 = vector.load %arg1[%c0, %c0_0] : memref<16x128xbf16, #tpu.memory_space<vmem>>, vector<16x128xbf16>
    %c0_1 = arith.constant 0 : index
    %c0_2 = arith.constant 0 : index
    %1 = vector.load %arg2[%c0_1, %c0_2] : memref<128x128xbf16, #tpu.memory_space<vmem>>, vector<128x128xbf16>
    %cst = arith.constant dense<0.000000e+00> : vector<16x128xf32>
    %2 = tpu.matmul %0, %1, %cst {dimension_numbers = #tpu.dot_dimension_numbers<[1], [0], [0], [1], [0, 0, 1, 1], [], []>} : vector<16x128xbf16>, vector<128x128xbf16>, vector<16x128xf32> -> vector<16x128xf32>
    %cst_3 = arith.constant dense<0.000000e+00> : vector<16xf32>
    %3 = vector.multi_reduction <add>, %2, %cst_3 [1] : vector<16x128xf32> to vector<16xf32>
    %4 = vector.shape_cast %3 : vector<16xf32> to vector<16x1xf32>
    %cst_4 = arith.constant 7.812500e-03 : f32
    %5 = vector.broadcast %cst_4 : f32 to vector<16x1xf32>
    %6 = arith.mulf %4, %5 : vector<16x1xf32>
    %7 = vector.broadcast %6 : vector<16x1xf32> to vector<16x128xf32>
    %8 = arith.subf %2, %7 : vector<16x128xf32>
    %9 = arith.mulf %8, %8 : vector<16x128xf32>
    %cst_5 = arith.constant dense<0.000000e+00> : vector<16xf32>
    %10 = vector.multi_reduction <add>, %9, %cst_5 [1] : vector<16x128xf32> to vector<16xf32>
    %11 = vector.shape_cast %10 : vector<16xf32> to vector<16x1xf32>
    %cst_6 = arith.constant 7.812500e-03 : f32
    %12 = vector.broadcast %cst_6 : f32 to vector<16x1xf32>
    %13 = arith.mulf %11, %12 : vector<16x1xf32>
    %cst_7 = arith.constant 9.99999974E-6 : f32
    %14 = vector.broadcast %cst_7 : f32 to vector<16x1xf32>
    %15 = arith.addf %13, %14 : vector<16x1xf32>
    %16 = math.rsqrt %15 : vector<16x1xf32>
    %c0_8 = arith.constant 0 : index
    %c0_9 = arith.constant 0 : index
    %17 = vector.load %arg3[%c0_8, %c0_9] : memref<16x1xf32, #tpu.memory_space<vmem>>, vector<16x1xf32>
    %18 = arith.mulf %17, %16 : vector<16x1xf32>
    %19 = vector.broadcast %18 : vector<16x1xf32> to vector<16x128xf32>
    %20 = arith.mulf %8, %19 : vector<16x128xf32>
    %c0_10 = arith.constant 0 : index
    %c0_11 = arith.constant 0 : index
    %21 = vector.load %arg4[%c0_10, %c0_11] : memref<16x1xf32, #tpu.memory_space<vmem>>, vector<16x1xf32>
    %22 = vector.broadcast %21 : vector<16x1xf32> to vector<16x128xf32>
    %23 = arith.addf %20, %22 : vector<16x128xf32>
    %cst_12 = arith.constant 0.000000e+00 : f32
    %24 = vector.broadcast %cst_12 : f32 to vector<16x128xf32>
    %25 = arith.cmpf oge, %23, %24 : vector<16x128xf32>
    %cst_13 = arith.constant 0.00999999977 : f32
    %26 = vector.broadcast %cst_13 : f32 to vector<16x128xf32>
    %27 = arith.mulf %26, %23 : vector<16x128xf32>
    %28 = arith.select %25, %23, %27 : vector<16x128xi1>, vector<16x128xf32>
    %c0_14 = arith.constant 0 : index
    %c0_15 = arith.constant 0 : index
    %29 = vector.load %arg5[%c0_14, %c0_15] : memref<16x128xf32, #tpu.memory_space<vmem>>, vector<16x128xf32>
    tpu.vector_store %arg5[%c0_14, %c0_15], %28 {strides = array<i32>} : memref<16x128xf32, #tpu.memory_space<vmem>>, vector<16x128xf32>,
    return
  }
  func.func @transform_0(%arg0: i32) -> (i32, i32) {
    %c0_i32 = arith.constant 0 : i32
    %c0_i32_0 = arith.constant 0 : i32
    %c0_i32_1 = arith.constant 0 : i32
    return %c0_i32, %c0_i32_0 : i32, i32
  }
  func.func @transform_1(%arg0: i32) -> (i32, i32) {
    %c0_i32 = arith.constant 0 : i32
    %c0_i32_0 = arith.constant 0 : i32
    %c0_i32_1 = arith.constant 0 : i32
    return %c0_i32, %c0_i32_0 : i32, i32
  }
  func.func @transform_2(%arg0: i32) -> (i32, i32) {
    %c0_i32 = arith.constant 0 : i32
    %c0_i32_0 = arith.constant 0 : i32
    %c0_i32_1 = arith.constant 0 : i32
    return %c0_i32, %c0_i32_0 : i32, i32
  }
  func.func @transform_3(%arg0: i32) -> (i32, i32) {
    %c0_i32 = arith.constant 0 : i32
    %c0_i32_0 = arith.constant 0 : i32
    %c0_i32_1 = arith.constant 0 : i32
    return %c0_i32, %c0_i32_0 : i32, i32
  }
  func.func @transform_4(%arg0: i32) -> (i32, i32) {
    %c0_i32 = arith.constant 0 : i32
    %c0_i32_0 = arith.constant 0 : i32
    %c0_i32_1 = arith.constant 0 : i32
    return %c0_i32, %c0_i32_0 : i32, i32
  }
}

module attributes {stable_mosaic.version = 11 : i64} {
  func.func @_fused_conv_kernel(%arg0: i32, %arg1: memref<32x256xbf16, #tpu.memory_space<vmem>>, %arg2: memref<256x128xbf16, #tpu.memory_space<vmem>>, %arg3: memref<32x1xf32, #tpu.memory_space<vmem>>, %arg4: memref<32x1xf32, #tpu.memory_space<vmem>>, %arg5: memref<32x128xf32, #tpu.memory_space<vmem>>) attributes {dimension_semantics = [#tpu.dimension_semantics<arbitrary>], iteration_bounds = array<i64: 1>, scalar_prefetch = 0 : i64, scratch_operands = 0 : i64, tpu.core_type = #tpu.core_type<tc>, window_params = [{pipeline_mode = #tpu.pipeline_mode<synchronous>, transform_indices = @transform_0, window_bounds = array<i64: 32, 256>}, {pipeline_mode = #tpu.pipeline_mode<synchronous>, transform_indices = @transform_1, window_bounds = array<i64: 256, 128>}, {pipeline_mode = #tpu.pipeline_mode<synchronous>, transform_indices = @transform_2, window_bounds = array<i64: 32, 1>}, {pipeline_mode = #tpu.pipeline_mode<synchronous>, transform_indices = @transform_3, window_bounds = array<i64: 32, 1>}, {pipeline_mode = #tpu.pipeline_mode<synchronous>, transform_indices = @transform_4, window_bounds = array<i64: 32, 128>}]} {
    %c0 = arith.constant 0 : index
    %c0_0 = arith.constant 0 : index
    %0 = vector.load %arg1[%c0, %c0_0] : memref<32x256xbf16, #tpu.memory_space<vmem>>, vector<32x256xbf16>
    %c0_1 = arith.constant 0 : index
    %c0_2 = arith.constant 0 : index
    %1 = vector.load %arg2[%c0_1, %c0_2] : memref<256x128xbf16, #tpu.memory_space<vmem>>, vector<256x128xbf16>
    %cst = arith.constant dense<0.000000e+00> : vector<32x128xf32>
    %2 = tpu.matmul %0, %1, %cst {dimension_numbers = #tpu.dot_dimension_numbers<[1], [0], [0], [1], [0, 0, 1, 1], [], []>} : vector<32x256xbf16>, vector<256x128xbf16>, vector<32x128xf32> -> vector<32x128xf32>
    %cst_3 = arith.constant dense<0.000000e+00> : vector<32xf32>
    %3 = vector.multi_reduction <add>, %2, %cst_3 [1] : vector<32x128xf32> to vector<32xf32>
    %4 = vector.shape_cast %3 : vector<32xf32> to vector<32x1xf32>
    %cst_4 = arith.constant 7.812500e-03 : f32
    %5 = vector.broadcast %cst_4 : f32 to vector<32x1xf32>
    %6 = arith.mulf %4, %5 : vector<32x1xf32>
    %7 = vector.broadcast %6 : vector<32x1xf32> to vector<32x128xf32>
    %8 = arith.subf %2, %7 : vector<32x128xf32>
    %9 = arith.mulf %8, %8 : vector<32x128xf32>
    %cst_5 = arith.constant dense<0.000000e+00> : vector<32xf32>
    %10 = vector.multi_reduction <add>, %9, %cst_5 [1] : vector<32x128xf32> to vector<32xf32>
    %11 = vector.shape_cast %10 : vector<32xf32> to vector<32x1xf32>
    %cst_6 = arith.constant 7.812500e-03 : f32
    %12 = vector.broadcast %cst_6 : f32 to vector<32x1xf32>
    %13 = arith.mulf %11, %12 : vector<32x1xf32>
    %cst_7 = arith.constant 9.99999974E-6 : f32
    %14 = vector.broadcast %cst_7 : f32 to vector<32x1xf32>
    %15 = arith.addf %13, %14 : vector<32x1xf32>
    %16 = math.rsqrt %15 : vector<32x1xf32>
    %c0_8 = arith.constant 0 : index
    %c0_9 = arith.constant 0 : index
    %17 = vector.load %arg3[%c0_8, %c0_9] : memref<32x1xf32, #tpu.memory_space<vmem>>, vector<32x1xf32>
    %18 = arith.mulf %17, %16 : vector<32x1xf32>
    %19 = vector.broadcast %18 : vector<32x1xf32> to vector<32x128xf32>
    %20 = arith.mulf %8, %19 : vector<32x128xf32>
    %c0_10 = arith.constant 0 : index
    %c0_11 = arith.constant 0 : index
    %21 = vector.load %arg4[%c0_10, %c0_11] : memref<32x1xf32, #tpu.memory_space<vmem>>, vector<32x1xf32>
    %22 = vector.broadcast %21 : vector<32x1xf32> to vector<32x128xf32>
    %23 = arith.addf %20, %22 : vector<32x128xf32>
    %cst_12 = arith.constant 0.000000e+00 : f32
    %24 = vector.broadcast %cst_12 : f32 to vector<32x128xf32>
    %25 = arith.cmpf oge, %23, %24 : vector<32x128xf32>
    %cst_13 = arith.constant 0.00999999977 : f32
    %26 = vector.broadcast %cst_13 : f32 to vector<32x128xf32>
    %27 = arith.mulf %26, %23 : vector<32x128xf32>
    %28 = arith.select %25, %23, %27 : vector<32x128xi1>, vector<32x128xf32>
    %c0_14 = arith.constant 0 : index
    %c0_15 = arith.constant 0 : index
    %29 = vector.load %arg5[%c0_14, %c0_15] : memref<32x128xf32, #tpu.memory_space<vmem>>, vector<32x128xf32>
    tpu.vector_store %arg5[%c0_14, %c0_15], %28 {strides = array<i32>} : memref<32x128xf32, #tpu.memory_space<vmem>>, vector<32x128xf32>,
    return
  }
  func.func @transform_0(%arg0: i32) -> (i32, i32) {
    %c0_i32 = arith.constant 0 : i32
    %c0_i32_0 = arith.constant 0 : i32
    %c0_i32_1 = arith.constant 0 : i32
    return %c0_i32, %c0_i32_0 : i32, i32
  }
  func.func @transform_1(%arg0: i32) -> (i32, i32) {
    %c0_i32 = arith.constant 0 : i32
    %c0_i32_0 = arith.constant 0 : i32
    %c0_i32_1 = arith.constant 0 : i32
    return %c0_i32, %c0_i32_0 : i32, i32
  }
  func.func @transform_2(%arg0: i32) -> (i32, i32) {
    %c0_i32 = arith.constant 0 : i32
    %c0_i32_0 = arith.constant 0 : i32
    %c0_i32_1 = arith.constant 0 : i32
    return %c0_i32, %c0_i32_0 : i32, i32
  }
  func.func @transform_3(%arg0: i32) -> (i32, i32) {
    %c0_i32 = arith.constant 0 : i32
    %c0_i32_0 = arith.constant 0 : i32
    %c0_i32_1 = arith.constant 0 : i32
    return %c0_i32, %c0_i32_0 : i32, i32
  }
  func.func @transform_4(%arg0: i32) -> (i32, i32) {
    %c0_i32 = arith.constant 0 : i32
    %c0_i32_0 = arith.constant 0 : i32
    %c0_i32_1 = arith.constant 0 : i32
    return %c0_i32, %c0_i32_0 : i32, i32
  }
}

module attributes {stable_mosaic.version = 11 : i64} {
  func.func @_fused_conv_kernel(%arg0: i32, %arg1: memref<32x384xbf16, #tpu.memory_space<vmem>>, %arg2: memref<384x128xbf16, #tpu.memory_space<vmem>>, %arg3: memref<32x1xf32, #tpu.memory_space<vmem>>, %arg4: memref<32x1xf32, #tpu.memory_space<vmem>>, %arg5: memref<32x128xf32, #tpu.memory_space<vmem>>) attributes {dimension_semantics = [#tpu.dimension_semantics<arbitrary>], iteration_bounds = array<i64: 1>, scalar_prefetch = 0 : i64, scratch_operands = 0 : i64, tpu.core_type = #tpu.core_type<tc>, window_params = [{pipeline_mode = #tpu.pipeline_mode<synchronous>, transform_indices = @transform_0, window_bounds = array<i64: 32, 384>}, {pipeline_mode = #tpu.pipeline_mode<synchronous>, transform_indices = @transform_1, window_bounds = array<i64: 384, 128>}, {pipeline_mode = #tpu.pipeline_mode<synchronous>, transform_indices = @transform_2, window_bounds = array<i64: 32, 1>}, {pipeline_mode = #tpu.pipeline_mode<synchronous>, transform_indices = @transform_3, window_bounds = array<i64: 32, 1>}, {pipeline_mode = #tpu.pipeline_mode<synchronous>, transform_indices = @transform_4, window_bounds = array<i64: 32, 128>}]} {
    %c0 = arith.constant 0 : index
    %c0_0 = arith.constant 0 : index
    %0 = vector.load %arg1[%c0, %c0_0] : memref<32x384xbf16, #tpu.memory_space<vmem>>, vector<32x384xbf16>
    %c0_1 = arith.constant 0 : index
    %c0_2 = arith.constant 0 : index
    %1 = vector.load %arg2[%c0_1, %c0_2] : memref<384x128xbf16, #tpu.memory_space<vmem>>, vector<384x128xbf16>
    %cst = arith.constant dense<0.000000e+00> : vector<32x128xf32>
    %2 = tpu.matmul %0, %1, %cst {dimension_numbers = #tpu.dot_dimension_numbers<[1], [0], [0], [1], [0, 0, 1, 1], [], []>} : vector<32x384xbf16>, vector<384x128xbf16>, vector<32x128xf32> -> vector<32x128xf32>
    %cst_3 = arith.constant dense<0.000000e+00> : vector<32xf32>
    %3 = vector.multi_reduction <add>, %2, %cst_3 [1] : vector<32x128xf32> to vector<32xf32>
    %4 = vector.shape_cast %3 : vector<32xf32> to vector<32x1xf32>
    %cst_4 = arith.constant 7.812500e-03 : f32
    %5 = vector.broadcast %cst_4 : f32 to vector<32x1xf32>
    %6 = arith.mulf %4, %5 : vector<32x1xf32>
    %7 = vector.broadcast %6 : vector<32x1xf32> to vector<32x128xf32>
    %8 = arith.subf %2, %7 : vector<32x128xf32>
    %9 = arith.mulf %8, %8 : vector<32x128xf32>
    %cst_5 = arith.constant dense<0.000000e+00> : vector<32xf32>
    %10 = vector.multi_reduction <add>, %9, %cst_5 [1] : vector<32x128xf32> to vector<32xf32>
    %11 = vector.shape_cast %10 : vector<32xf32> to vector<32x1xf32>
    %cst_6 = arith.constant 7.812500e-03 : f32
    %12 = vector.broadcast %cst_6 : f32 to vector<32x1xf32>
    %13 = arith.mulf %11, %12 : vector<32x1xf32>
    %cst_7 = arith.constant 9.99999974E-6 : f32
    %14 = vector.broadcast %cst_7 : f32 to vector<32x1xf32>
    %15 = arith.addf %13, %14 : vector<32x1xf32>
    %16 = math.rsqrt %15 : vector<32x1xf32>
    %c0_8 = arith.constant 0 : index
    %c0_9 = arith.constant 0 : index
    %17 = vector.load %arg3[%c0_8, %c0_9] : memref<32x1xf32, #tpu.memory_space<vmem>>, vector<32x1xf32>
    %18 = arith.mulf %17, %16 : vector<32x1xf32>
    %19 = vector.broadcast %18 : vector<32x1xf32> to vector<32x128xf32>
    %20 = arith.mulf %8, %19 : vector<32x128xf32>
    %c0_10 = arith.constant 0 : index
    %c0_11 = arith.constant 0 : index
    %21 = vector.load %arg4[%c0_10, %c0_11] : memref<32x1xf32, #tpu.memory_space<vmem>>, vector<32x1xf32>
    %22 = vector.broadcast %21 : vector<32x1xf32> to vector<32x128xf32>
    %23 = arith.addf %20, %22 : vector<32x128xf32>
    %cst_12 = arith.constant 0.000000e+00 : f32
    %24 = vector.broadcast %cst_12 : f32 to vector<32x128xf32>
    %25 = arith.maximumf %23, %24 : vector<32x128xf32>
    %c0_13 = arith.constant 0 : index
    %c0_14 = arith.constant 0 : index
    %26 = vector.load %arg5[%c0_13, %c0_14] : memref<32x128xf32, #tpu.memory_space<vmem>>, vector<32x128xf32>
    tpu.vector_store %arg5[%c0_13, %c0_14], %25 {strides = array<i32>} : memref<32x128xf32, #tpu.memory_space<vmem>>, vector<32x128xf32>,
    return
  }
  func.func @transform_0(%arg0: i32) -> (i32, i32) {
    %c0_i32 = arith.constant 0 : i32
    %c0_i32_0 = arith.constant 0 : i32
    %c0_i32_1 = arith.constant 0 : i32
    return %c0_i32, %c0_i32_0 : i32, i32
  }
  func.func @transform_1(%arg0: i32) -> (i32, i32) {
    %c0_i32 = arith.constant 0 : i32
    %c0_i32_0 = arith.constant 0 : i32
    %c0_i32_1 = arith.constant 0 : i32
    return %c0_i32, %c0_i32_0 : i32, i32
  }
  func.func @transform_2(%arg0: i32) -> (i32, i32) {
    %c0_i32 = arith.constant 0 : i32
    %c0_i32_0 = arith.constant 0 : i32
    %c0_i32_1 = arith.constant 0 : i32
    return %c0_i32, %c0_i32_0 : i32, i32
  }
  func.func @transform_3(%arg0: i32) -> (i32, i32) {
    %c0_i32 = arith.constant 0 : i32
    %c0_i32_0 = arith.constant 0 : i32
    %c0_i32_1 = arith.constant 0 : i32
    return %c0_i32, %c0_i32_0 : i32, i32
  }
  func.func @transform_4(%arg0: i32) -> (i32, i32) {
    %c0_i32 = arith.constant 0 : i32
    %c0_i32_0 = arith.constant 0 : i32
    %c0_i32_1 = arith.constant 0 : i32
    return %c0_i32, %c0_i32_0 : i32, i32
  }
}

module attributes {stable_mosaic.version = 11 : i64} {
  func.func @_fused_conv_kernel(%arg0: i32, %arg1: memref<32x384xbf16, #tpu.memory_space<vmem>>, %arg2: memref<384x128xbf16, #tpu.memory_space<vmem>>, %arg3: memref<32x1xf32, #tpu.memory_space<vmem>>, %arg4: memref<32x1xf32, #tpu.memory_space<vmem>>, %arg5: memref<32x128xf32, #tpu.memory_space<vmem>>, %arg6: memref<32x128xf32, #tpu.memory_space<vmem>>) attributes {dimension_semantics = [#tpu.dimension_semantics<arbitrary>], iteration_bounds = array<i64: 1>, scalar_prefetch = 0 : i64, scratch_operands = 0 : i64, tpu.core_type = #tpu.core_type<tc>, window_params = [{pipeline_mode = #tpu.pipeline_mode<synchronous>, transform_indices = @transform_0, window_bounds = array<i64: 32, 384>}, {pipeline_mode = #tpu.pipeline_mode<synchronous>, transform_indices = @transform_1, window_bounds = array<i64: 384, 128>}, {pipeline_mode = #tpu.pipeline_mode<synchronous>, transform_indices = @transform_2, window_bounds = array<i64: 32, 1>}, {pipeline_mode = #tpu.pipeline_mode<synchronous>, transform_indices = @transform_3, window_bounds = array<i64: 32, 1>}, {pipeline_mode = #tpu.pipeline_mode<synchronous>, transform_indices = @transform_4, window_bounds = array<i64: 32, 128>}, {pipeline_mode = #tpu.pipeline_mode<synchronous>, transform_indices = @transform_5, window_bounds = array<i64: 32, 128>}]} {
    %c0 = arith.constant 0 : index
    %c0_0 = arith.constant 0 : index
    %0 = vector.load %arg1[%c0, %c0_0] : memref<32x384xbf16, #tpu.memory_space<vmem>>, vector<32x384xbf16>
    %c0_1 = arith.constant 0 : index
    %c0_2 = arith.constant 0 : index
    %1 = vector.load %arg2[%c0_1, %c0_2] : memref<384x128xbf16, #tpu.memory_space<vmem>>, vector<384x128xbf16>
    %cst = arith.constant dense<0.000000e+00> : vector<32x128xf32>
    %2 = tpu.matmul %0, %1, %cst {dimension_numbers = #tpu.dot_dimension_numbers<[1], [0], [0], [1], [0, 0, 1, 1], [], []>} : vector<32x384xbf16>, vector<384x128xbf16>, vector<32x128xf32> -> vector<32x128xf32>
    %cst_3 = arith.constant dense<0.000000e+00> : vector<32xf32>
    %3 = vector.multi_reduction <add>, %2, %cst_3 [1] : vector<32x128xf32> to vector<32xf32>
    %4 = vector.shape_cast %3 : vector<32xf32> to vector<32x1xf32>
    %cst_4 = arith.constant 7.812500e-03 : f32
    %5 = vector.broadcast %cst_4 : f32 to vector<32x1xf32>
    %6 = arith.mulf %4, %5 : vector<32x1xf32>
    %7 = vector.broadcast %6 : vector<32x1xf32> to vector<32x128xf32>
    %8 = arith.subf %2, %7 : vector<32x128xf32>
    %9 = arith.mulf %8, %8 : vector<32x128xf32>
    %cst_5 = arith.constant dense<0.000000e+00> : vector<32xf32>
    %10 = vector.multi_reduction <add>, %9, %cst_5 [1] : vector<32x128xf32> to vector<32xf32>
    %11 = vector.shape_cast %10 : vector<32xf32> to vector<32x1xf32>
    %cst_6 = arith.constant 7.812500e-03 : f32
    %12 = vector.broadcast %cst_6 : f32 to vector<32x1xf32>
    %13 = arith.mulf %11, %12 : vector<32x1xf32>
    %cst_7 = arith.constant 9.99999974E-6 : f32
    %14 = vector.broadcast %cst_7 : f32 to vector<32x1xf32>
    %15 = arith.addf %13, %14 : vector<32x1xf32>
    %16 = math.rsqrt %15 : vector<32x1xf32>
    %c0_8 = arith.constant 0 : index
    %c0_9 = arith.constant 0 : index
    %17 = vector.load %arg3[%c0_8, %c0_9] : memref<32x1xf32, #tpu.memory_space<vmem>>, vector<32x1xf32>
    %18 = arith.mulf %17, %16 : vector<32x1xf32>
    %19 = vector.broadcast %18 : vector<32x1xf32> to vector<32x128xf32>
    %20 = arith.mulf %8, %19 : vector<32x128xf32>
    %c0_10 = arith.constant 0 : index
    %c0_11 = arith.constant 0 : index
    %21 = vector.load %arg4[%c0_10, %c0_11] : memref<32x1xf32, #tpu.memory_space<vmem>>, vector<32x1xf32>
    %22 = vector.broadcast %21 : vector<32x1xf32> to vector<32x128xf32>
    %23 = arith.addf %20, %22 : vector<32x128xf32>
    %c0_12 = arith.constant 0 : index
    %c0_13 = arith.constant 0 : index
    %24 = vector.load %arg5[%c0_12, %c0_13] : memref<32x128xf32, #tpu.memory_space<vmem>>, vector<32x128xf32>
    %25 = arith.addf %23, %24 : vector<32x128xf32>
    %c0_14 = arith.constant 0 : index
    %c0_15 = arith.constant 0 : index
    %26 = vector.load %arg6[%c0_14, %c0_15] : memref<32x128xf32, #tpu.memory_space<vmem>>, vector<32x128xf32>
    tpu.vector_store %arg6[%c0_14, %c0_15], %25 {strides = array<i32>} : memref<32x128xf32, #tpu.memory_space<vmem>>, vector<32x128xf32>,
    return
  }
  func.func @transform_0(%arg0: i32) -> (i32, i32) {
    %c0_i32 = arith.constant 0 : i32
    %c0_i32_0 = arith.constant 0 : i32
    %c0_i32_1 = arith.constant 0 : i32
    return %c0_i32, %c0_i32_0 : i32, i32
  }
  func.func @transform_1(%arg0: i32) -> (i32, i32) {
    %c0_i32 = arith.constant 0 : i32
    %c0_i32_0 = arith.constant 0 : i32
    %c0_i32_1 = arith.constant 0 : i32
    return %c0_i32, %c0_i32_0 : i32, i32
  }
  func.func @transform_2(%arg0: i32) -> (i32, i32) {
    %c0_i32 = arith.constant 0 : i32
    %c0_i32_0 = arith.constant 0 : i32
    %c0_i32_1 = arith.constant 0 : i32
    return %c0_i32, %c0_i32_0 : i32, i32
  }
  func.func @transform_3(%arg0: i32) -> (i32, i32) {
    %c0_i32 = arith.constant 0 : i32
    %c0_i32_0 = arith.constant 0 : i32
    %c0_i32_1 = arith.constant 0 : i32
    return %c0_i32, %c0_i32_0 : i32, i32
  }
  func.func @transform_4(%arg0: i32) -> (i32, i32) {
    %c0_i32 = arith.constant 0 : i32
    %c0_i32_0 = arith.constant 0 : i32
    %c0_i32_1 = arith.constant 0 : i32
    return %c0_i32, %c0_i32_0 : i32, i32
  }
  func.func @transform_5(%arg0: i32) -> (i32, i32) {
    %c0_i32 = arith.constant 0 : i32
    %c0_i32_0 = arith.constant 0 : i32
    %c0_i32_1 = arith.constant 0 : i32
    return %c0_i32, %c0_i32_0 : i32, i32
  }
}

module attributes {stable_mosaic.version = 11 : i64} {
  func.func @_fused_conv_kernel(%arg0: i32, %arg1: memref<16x384xbf16, #tpu.memory_space<vmem>>, %arg2: memref<384x128xbf16, #tpu.memory_space<vmem>>, %arg3: memref<16x1xf32, #tpu.memory_space<vmem>>, %arg4: memref<16x1xf32, #tpu.memory_space<vmem>>, %arg5: memref<16x128xf32, #tpu.memory_space<vmem>>) attributes {dimension_semantics = [#tpu.dimension_semantics<arbitrary>], iteration_bounds = array<i64: 1>, scalar_prefetch = 0 : i64, scratch_operands = 0 : i64, tpu.core_type = #tpu.core_type<tc>, window_params = [{pipeline_mode = #tpu.pipeline_mode<synchronous>, transform_indices = @transform_0, window_bounds = array<i64: 16, 384>}, {pipeline_mode = #tpu.pipeline_mode<synchronous>, transform_indices = @transform_1, window_bounds = array<i64: 384, 128>}, {pipeline_mode = #tpu.pipeline_mode<synchronous>, transform_indices = @transform_2, window_bounds = array<i64: 16, 1>}, {pipeline_mode = #tpu.pipeline_mode<synchronous>, transform_indices = @transform_3, window_bounds = array<i64: 16, 1>}, {pipeline_mode = #tpu.pipeline_mode<synchronous>, transform_indices = @transform_4, window_bounds = array<i64: 16, 128>}]} {
    %c0 = arith.constant 0 : index
    %c0_0 = arith.constant 0 : index
    %0 = vector.load %arg1[%c0, %c0_0] : memref<16x384xbf16, #tpu.memory_space<vmem>>, vector<16x384xbf16>
    %c0_1 = arith.constant 0 : index
    %c0_2 = arith.constant 0 : index
    %1 = vector.load %arg2[%c0_1, %c0_2] : memref<384x128xbf16, #tpu.memory_space<vmem>>, vector<384x128xbf16>
    %cst = arith.constant dense<0.000000e+00> : vector<16x128xf32>
    %2 = tpu.matmul %0, %1, %cst {dimension_numbers = #tpu.dot_dimension_numbers<[1], [0], [0], [1], [0, 0, 1, 1], [], []>} : vector<16x384xbf16>, vector<384x128xbf16>, vector<16x128xf32> -> vector<16x128xf32>
    %cst_3 = arith.constant dense<0.000000e+00> : vector<16xf32>
    %3 = vector.multi_reduction <add>, %2, %cst_3 [1] : vector<16x128xf32> to vector<16xf32>
    %4 = vector.shape_cast %3 : vector<16xf32> to vector<16x1xf32>
    %cst_4 = arith.constant 7.812500e-03 : f32
    %5 = vector.broadcast %cst_4 : f32 to vector<16x1xf32>
    %6 = arith.mulf %4, %5 : vector<16x1xf32>
    %7 = vector.broadcast %6 : vector<16x1xf32> to vector<16x128xf32>
    %8 = arith.subf %2, %7 : vector<16x128xf32>
    %9 = arith.mulf %8, %8 : vector<16x128xf32>
    %cst_5 = arith.constant dense<0.000000e+00> : vector<16xf32>
    %10 = vector.multi_reduction <add>, %9, %cst_5 [1] : vector<16x128xf32> to vector<16xf32>
    %11 = vector.shape_cast %10 : vector<16xf32> to vector<16x1xf32>
    %cst_6 = arith.constant 7.812500e-03 : f32
    %12 = vector.broadcast %cst_6 : f32 to vector<16x1xf32>
    %13 = arith.mulf %11, %12 : vector<16x1xf32>
    %cst_7 = arith.constant 9.99999974E-6 : f32
    %14 = vector.broadcast %cst_7 : f32 to vector<16x1xf32>
    %15 = arith.addf %13, %14 : vector<16x1xf32>
    %16 = math.rsqrt %15 : vector<16x1xf32>
    %c0_8 = arith.constant 0 : index
    %c0_9 = arith.constant 0 : index
    %17 = vector.load %arg3[%c0_8, %c0_9] : memref<16x1xf32, #tpu.memory_space<vmem>>, vector<16x1xf32>
    %18 = arith.mulf %17, %16 : vector<16x1xf32>
    %19 = vector.broadcast %18 : vector<16x1xf32> to vector<16x128xf32>
    %20 = arith.mulf %8, %19 : vector<16x128xf32>
    %c0_10 = arith.constant 0 : index
    %c0_11 = arith.constant 0 : index
    %21 = vector.load %arg4[%c0_10, %c0_11] : memref<16x1xf32, #tpu.memory_space<vmem>>, vector<16x1xf32>
    %22 = vector.broadcast %21 : vector<16x1xf32> to vector<16x128xf32>
    %23 = arith.addf %20, %22 : vector<16x128xf32>
    %cst_12 = arith.constant 0.000000e+00 : f32
    %24 = vector.broadcast %cst_12 : f32 to vector<16x128xf32>
    %25 = arith.cmpf oge, %23, %24 : vector<16x128xf32>
    %cst_13 = arith.constant 0.00999999977 : f32
    %26 = vector.broadcast %cst_13 : f32 to vector<16x128xf32>
    %27 = arith.mulf %26, %23 : vector<16x128xf32>
    %28 = arith.select %25, %23, %27 : vector<16x128xi1>, vector<16x128xf32>
    %c0_14 = arith.constant 0 : index
    %c0_15 = arith.constant 0 : index
    %29 = vector.load %arg5[%c0_14, %c0_15] : memref<16x128xf32, #tpu.memory_space<vmem>>, vector<16x128xf32>
    tpu.vector_store %arg5[%c0_14, %c0_15], %28 {strides = array<i32>} : memref<16x128xf32, #tpu.memory_space<vmem>>, vector<16x128xf32>,
    return
  }
  func.func @transform_0(%arg0: i32) -> (i32, i32) {
    %c0_i32 = arith.constant 0 : i32
    %c0_i32_0 = arith.constant 0 : i32
    %c0_i32_1 = arith.constant 0 : i32
    return %c0_i32, %c0_i32_0 : i32, i32
  }
  func.func @transform_1(%arg0: i32) -> (i32, i32) {
    %c0_i32 = arith.constant 0 : i32
    %c0_i32_0 = arith.constant 0 : i32
    %c0_i32_1 = arith.constant 0 : i32
    return %c0_i32, %c0_i32_0 : i32, i32
  }
  func.func @transform_2(%arg0: i32) -> (i32, i32) {
    %c0_i32 = arith.constant 0 : i32
    %c0_i32_0 = arith.constant 0 : i32
    %c0_i32_1 = arith.constant 0 : i32
    return %c0_i32, %c0_i32_0 : i32, i32
  }
  func.func @transform_3(%arg0: i32) -> (i32, i32) {
    %c0_i32 = arith.constant 0 : i32
    %c0_i32_0 = arith.constant 0 : i32
    %c0_i32_1 = arith.constant 0 : i32
    return %c0_i32, %c0_i32_0 : i32, i32
  }
  func.func @transform_4(%arg0: i32) -> (i32, i32) {
    %c0_i32 = arith.constant 0 : i32
    %c0_i32_0 = arith.constant 0 : i32
    %c0_i32_1 = arith.constant 0 : i32
    return %c0_i32, %c0_i32_0 : i32, i32
  }
}

module attributes {stable_mosaic.version = 11 : i64} {
  func.func @_fused_conv_kernel(%arg0: i32, %arg1: memref<8x256xbf16, #tpu.memory_space<vmem>>, %arg2: memref<256x512xbf16, #tpu.memory_space<vmem>>, %arg3: memref<8x1xf32, #tpu.memory_space<vmem>>, %arg4: memref<8x1xf32, #tpu.memory_space<vmem>>, %arg5: memref<8x512xf32, #tpu.memory_space<vmem>>) attributes {dimension_semantics = [#tpu.dimension_semantics<arbitrary>], iteration_bounds = array<i64: 1>, scalar_prefetch = 0 : i64, scratch_operands = 0 : i64, tpu.core_type = #tpu.core_type<tc>, window_params = [{pipeline_mode = #tpu.pipeline_mode<synchronous>, transform_indices = @transform_0, window_bounds = array<i64: 8, 256>}, {pipeline_mode = #tpu.pipeline_mode<synchronous>, transform_indices = @transform_1, window_bounds = array<i64: 256, 512>}, {pipeline_mode = #tpu.pipeline_mode<synchronous>, transform_indices = @transform_2, window_bounds = array<i64: 8, 1>}, {pipeline_mode = #tpu.pipeline_mode<synchronous>, transform_indices = @transform_3, window_bounds = array<i64: 8, 1>}, {pipeline_mode = #tpu.pipeline_mode<synchronous>, transform_indices = @transform_4, window_bounds = array<i64: 8, 512>}]} {
    %c0 = arith.constant 0 : index
    %c0_0 = arith.constant 0 : index
    %0 = vector.load %arg1[%c0, %c0_0] : memref<8x256xbf16, #tpu.memory_space<vmem>>, vector<8x256xbf16>
    %c0_1 = arith.constant 0 : index
    %c0_2 = arith.constant 0 : index
    %1 = vector.load %arg2[%c0_1, %c0_2] : memref<256x512xbf16, #tpu.memory_space<vmem>>, vector<256x512xbf16>
    %cst = arith.constant dense<0.000000e+00> : vector<8x512xf32>
    %2 = tpu.matmul %0, %1, %cst {dimension_numbers = #tpu.dot_dimension_numbers<[1], [0], [0], [1], [0, 0, 1, 1], [], []>} : vector<8x256xbf16>, vector<256x512xbf16>, vector<8x512xf32> -> vector<8x512xf32>
    %cst_3 = arith.constant dense<0.000000e+00> : vector<8xf32>
    %3 = vector.multi_reduction <add>, %2, %cst_3 [1] : vector<8x512xf32> to vector<8xf32>
    %4 = vector.shape_cast %3 : vector<8xf32> to vector<8x1xf32>
    %cst_4 = arith.constant 0.001953125 : f32
    %5 = vector.broadcast %cst_4 : f32 to vector<8x1xf32>
    %6 = arith.mulf %4, %5 : vector<8x1xf32>
    %7 = vector.broadcast %6 : vector<8x1xf32> to vector<8x512xf32>
    %8 = arith.subf %2, %7 : vector<8x512xf32>
    %9 = arith.mulf %8, %8 : vector<8x512xf32>
    %cst_5 = arith.constant dense<0.000000e+00> : vector<8xf32>
    %10 = vector.multi_reduction <add>, %9, %cst_5 [1] : vector<8x512xf32> to vector<8xf32>
    %11 = vector.shape_cast %10 : vector<8xf32> to vector<8x1xf32>
    %cst_6 = arith.constant 0.001953125 : f32
    %12 = vector.broadcast %cst_6 : f32 to vector<8x1xf32>
    %13 = arith.mulf %11, %12 : vector<8x1xf32>
    %cst_7 = arith.constant 9.99999974E-6 : f32
    %14 = vector.broadcast %cst_7 : f32 to vector<8x1xf32>
    %15 = arith.addf %13, %14 : vector<8x1xf32>
    %16 = math.rsqrt %15 : vector<8x1xf32>
    %c0_8 = arith.constant 0 : index
    %c0_9 = arith.constant 0 : index
    %17 = vector.load %arg3[%c0_8, %c0_9] : memref<8x1xf32, #tpu.memory_space<vmem>>, vector<8x1xf32>
    %18 = arith.mulf %17, %16 : vector<8x1xf32>
    %19 = vector.broadcast %18 : vector<8x1xf32> to vector<8x512xf32>
    %20 = arith.mulf %8, %19 : vector<8x512xf32>
    %c0_10 = arith.constant 0 : index
    %c0_11 = arith.constant 0 : index
    %21 = vector.load %arg4[%c0_10, %c0_11] : memref<8x1xf32, #tpu.memory_space<vmem>>, vector<8x1xf32>
    %22 = vector.broadcast %21 : vector<8x1xf32> to vector<8x512xf32>
    %23 = arith.addf %20, %22 : vector<8x512xf32>
    %cst_12 = arith.constant 0.000000e+00 : f32
    %24 = vector.broadcast %cst_12 : f32 to vector<8x512xf32>
    %25 = arith.cmpf oge, %23, %24 : vector<8x512xf32>
    %cst_13 = arith.constant 0.00999999977 : f32
    %26 = vector.broadcast %cst_13 : f32 to vector<8x512xf32>
    %27 = arith.mulf %26, %23 : vector<8x512xf32>
    %28 = arith.select %25, %23, %27 : vector<8x512xi1>, vector<8x512xf32>
    %c0_14 = arith.constant 0 : index
    %c0_15 = arith.constant 0 : index
    %29 = vector.load %arg5[%c0_14, %c0_15] : memref<8x512xf32, #tpu.memory_space<vmem>>, vector<8x512xf32>
    tpu.vector_store %arg5[%c0_14, %c0_15], %28 {strides = array<i32>} : memref<8x512xf32, #tpu.memory_space<vmem>>, vector<8x512xf32>,
    return
  }
  func.func @transform_0(%arg0: i32) -> (i32, i32) {
    %c0_i32 = arith.constant 0 : i32
    %c0_i32_0 = arith.constant 0 : i32
    %c0_i32_1 = arith.constant 0 : i32
    return %c0_i32, %c0_i32_0 : i32, i32
  }
  func.func @transform_1(%arg0: i32) -> (i32, i32) {
    %c0_i32 = arith.constant 0 : i32
    %c0_i32_0 = arith.constant 0 : i32
    %c0_i32_1 = arith.constant 0 : i32
    return %c0_i32, %c0_i32_0 : i32, i32
  }
  func.func @transform_2(%arg0: i32) -> (i32, i32) {
    %c0_i32 = arith.constant 0 : i32
    %c0_i32_0 = arith.constant 0 : i32
    %c0_i32_1 = arith.constant 0 : i32
    return %c0_i32, %c0_i32_0 : i32, i32
  }
  func.func @transform_3(%arg0: i32) -> (i32, i32) {
    %c0_i32 = arith.constant 0 : i32
    %c0_i32_0 = arith.constant 0 : i32
    %c0_i32_1 = arith.constant 0 : i32
    return %c0_i32, %c0_i32_0 : i32, i32
  }
  func.func @transform_4(%arg0: i32) -> (i32, i32) {
    %c0_i32 = arith.constant 0 : i32
    %c0_i32_0 = arith.constant 0 : i32
    %c0_i32_1 = arith.constant 0 : i32
    return %c0_i32, %c0_i32_0 : i32, i32
  }
}

module attributes {stable_mosaic.version = 11 : i64} {
  func.func @_fused_conv_kernel(%arg0: i32, %arg1: memref<3x128xbf16, #tpu.memory_space<vmem>>, %arg2: memref<128x2048xbf16, #tpu.memory_space<vmem>>, %arg3: memref<3x2048xf32, #tpu.memory_space<vmem>>) attributes {dimension_semantics = [#tpu.dimension_semantics<arbitrary>], iteration_bounds = array<i64: 1>, scalar_prefetch = 0 : i64, scratch_operands = 0 : i64, tpu.core_type = #tpu.core_type<tc>, window_params = [{pipeline_mode = #tpu.pipeline_mode<synchronous>, transform_indices = @transform_0, window_bounds = array<i64: 3, 128>}, {pipeline_mode = #tpu.pipeline_mode<synchronous>, transform_indices = @transform_1, window_bounds = array<i64: 128, 2048>}, {pipeline_mode = #tpu.pipeline_mode<synchronous>, transform_indices = @transform_2, window_bounds = array<i64: 3, 2048>}]} {
    %c0 = arith.constant 0 : index
    %c0_0 = arith.constant 0 : index
    %0 = vector.load %arg1[%c0, %c0_0] : memref<3x128xbf16, #tpu.memory_space<vmem>>, vector<3x128xbf16>
    %c0_1 = arith.constant 0 : index
    %c0_2 = arith.constant 0 : index
    %1 = vector.load %arg2[%c0_1, %c0_2] : memref<128x2048xbf16, #tpu.memory_space<vmem>>, vector<128x2048xbf16>
    %cst = arith.constant dense<0.000000e+00> : vector<3x2048xf32>
    %2 = tpu.matmul %0, %1, %cst {dimension_numbers = #tpu.dot_dimension_numbers<[1], [0], [0], [1], [0, 0, 1, 1], [], []>} : vector<3x128xbf16>, vector<128x2048xbf16>, vector<3x2048xf32> -> vector<3x2048xf32>
    %3 = math.tanh %2 : vector<3x2048xf32>
    %c0_3 = arith.constant 0 : index
    %c0_4 = arith.constant 0 : index
    %4 = vector.load %arg3[%c0_3, %c0_4] : memref<3x2048xf32, #tpu.memory_space<vmem>>, vector<3x2048xf32>
    tpu.vector_store %arg3[%c0_3, %c0_4], %3 {strides = array<i32>} : memref<3x2048xf32, #tpu.memory_space<vmem>>, vector<3x2048xf32>,
    return
  }
  func.func @transform_0(%arg0: i32) -> (i32, i32) {
    %c0_i32 = arith.constant 0 : i32
    %c0_i32_0 = arith.constant 0 : i32
    %c0_i32_1 = arith.constant 0 : i32
    return %c0_i32, %c0_i32_0 : i32, i32
  }
  func.func @transform_1(%arg0: i32) -> (i32, i32) {
    %c0_i32 = arith.constant 0 : i32
    %c0_i32_0 = arith.constant 0 : i32
    %c0_i32_1 = arith.constant 0 : i32
    return %c0_i32, %c0_i32_0 : i32, i32
  }
  func.func @transform_2(%arg0: i32) -> (i32, i32) {
    %c0_i32 = arith.constant 0 : i32
    %c0_i32_0 = arith.constant 0 : i32
    %c0_i32_1 = arith.constant 0 : i32
    return %c0_i32, %c0_i32_0 : i32, i32
  }
}

</mosaic_0001>

<bundles_post_ra>
// kernel: generator_forward.14
= control target key start
LH: loop header
LB: loop body
LE: loop exit
PB: predicated region body
PF: predicated region fallthrough
CT: control target
= control target key end

     0   :  { %v388_v1 = vmov 0   ;;  %s515_s1 = inlined_call_operand.vmem [shape: bf16[128,512], index: 1, kind: input, shape index: {}]   ;;  %s516_s0 = inlined_call_operand.vmem [shape: bf16[8,128], index: 0, kind: input, shape index: {}]   ;;  %s517_s2 = inlined_call_operand.vmem [shape: f32[8,512], index: 2, kind: output, shape index: {}]  }
   0x1   :  { %v340_v0 = vld [vmem:[%s515_s1 + $0x4] ss:$16 sps:$4 sm:$0xff]   ;;  %237 = vmatprep.mubr.bf16.mxu0 %v388_v1  ;;  %278 = vmatprep.mubr.bf16.mxu1 %v388_v1  ;;  %v342_v2 = vld [vmem:[%s515_s1 + $0xc] ss:$16 sps:$4 sm:$0xff]   ;;  %v344_v3 = vld [vmem:[%s515_s1] ss:$16 sps:$4 sm:$0xff]  }
   0x2   :  { %205 = vmatprep.subr.bf16.mxu0 %v340_v0  ;;  %v345_v4 = vld [vmem:[%s515_s1 + $0x8] ss:$16 sps:$4 sm:$0xff]   ;;  %246 = vmatprep.subr.bf16.mxu1 %v342_v2  ;;  %v346_v5 = vld [vmem:[%s515_s1 + $0x24] ss:$16 sps:$4 sm:$0xff]   ;;  %v348_v6 = vld [vmem:[%s515_s1 + $0x2c] ss:$16 sps:$4 sm:$0xff]  }
   0x3   :  { %206 = vmatpush1.bf16.msra.mxu0 %v344_v3  ;;  %247 = vmatpush1.bf16.msra.mxu1 %v345_v4  ;;  %v350_v7 = vld [vmem:[%s515_s1 + $0x20] ss:$16 sps:$4 sm:$0xff]   ;;  %v351_v8 = vld [vmem:[%s515_s1 + $0x28] ss:$16 sps:$4 sm:$0xff]   ;;  %v352_v9 = vld [vmem:[%s515_s1 + $0x44] ss:$16 sps:$4 sm:$0xff]  }
   0x4   :  { %207 = vmatprep.subr.bf16.mxu0 %v346_v5  ;;  %248 = vmatprep.subr.bf16.mxu1 %v348_v6  ;;  %v354_v10 = vld [vmem:[%s515_s1 + $0x4c] ss:$16 sps:$4 sm:$0xff]   ;;  %v356_v11 = vld [vmem:[%s515_s1 + $0x40] ss:$16 sps:$4 sm:$0xff]   ;;  %v357_v12 = vld [vmem:[%s515_s1 + $0x48] ss:$16 sps:$4 sm:$0xff]  }
   0x5   :  { %v358_v13 = vld [vmem:[%s515_s1 + $0x64] ss:$16 sps:$4 sm:$0xff]   ;;  %v360_v14 = vld [vmem:[%s515_s1 + $0x6c] ss:$16 sps:$4 sm:$0xff]   ;;  %v362_v15 = vld [vmem:[%s515_s1 + $0x60] ss:$16 sps:$4 sm:$0xff]  }
   0x6   :  { %v363_v16 = vld [vmem:[%s515_s1 + $0x68] ss:$16 sps:$4 sm:$0xff]   ;;  %v364_v17 = vld [vmem:[%s515_s1 + $0x84] ss:$16 sps:$4 sm:$0xff]   ;;  %v366_v18 = vld [vmem:[%s515_s1 + $0x8c] ss:$16 sps:$4 sm:$0xff]  }
   0x7   :  { %208 = vmatpush1.bf16.msra.mxu0 %v350_v7  ;;  %249 = vmatpush1.bf16.msra.mxu1 %v351_v8  ;;  %v368_v19 = vld [vmem:[%s515_s1 + $0x80] ss:$16 sps:$4 sm:$0xff]   ;;  %v369_v20 = vld [vmem:[%s515_s1 + $0x88] ss:$16 sps:$4 sm:$0xff]   ;;  %v370_v21 = vld [vmem:[%s515_s1 + $0xa4] ss:$16 sps:$4 sm:$0xff]  }
   0x8   :  { %209 = vmatprep.subr.bf16.mxu0 %v352_v9  ;;  %250 = vmatprep.subr.bf16.mxu1 %v354_v10  ;;  %v372_v22 = vld [vmem:[%s515_s1 + $0xac] ss:$16 sps:$4 sm:$0xff]   ;;  %v374_v23 = vld [vmem:[%s515_s1 + $0xa0] ss:$16 sps:$4 sm:$0xff]   ;;  %v375_v24 = vld [vmem:[%s515_s1 + $0xa8] ss:$16 sps:$4 sm:$0xff]  }
   0x9   :  { %v376_v25 = vld [vmem:[%s515_s1 + $0xc4] ss:$16 sps:$4 sm:$0xff]   ;;  %v378_v26 = vld [vmem:[%s515_s1 + $0xcc] ss:$16 sps:$4 sm:$0xff]   ;;  %v380_v27 = vld [vmem:[%s515_s1 + $0xc0] ss:$16 sps:$4 sm:$0xff]  }
   0xa   :  { %v381_v28 = vld [vmem:[%s515_s1 + $0xc8] ss:$16 sps:$4 sm:$0xff]   ;;  %v382_v29 = vld [vmem:[%s515_s1 + $0xe4] ss:$16 sps:$4 sm:$0xff]   ;;  %v384_v30 = vld [vmem:[%s515_s1 + $0xec] ss:$16 sps:$4 sm:$0xff]  }
   0xb   :  { %210 = vmatpush1.bf16.msra.mxu0 %v356_v11  ;;  %251 = vmatpush1.bf16.msra.mxu1 %v357_v12  ;;  %v386_v31 = vld [vmem:[%s515_s1 + $0xe0] ss:$16 sps:$4 sm:$0xff]   ;;  %v387_v32 = vld [vmem:[%s515_s1 + $0xe8] ss:$16 sps:$4 sm:$0xff]  }
   0xc   :  { %211 = vmatprep.subr.bf16.mxu0 %v358_v13  ;;  %252 = vmatprep.subr.bf16.mxu1 %v360_v14  ;;  %v12_v33 = vld [vmem:[%s516_s0] sm:$0xf] }
   0xf   :  { %212 = vmatpush1.bf16.msra.mxu0 %v362_v15  ;;  %253 = vmatpush1.bf16.msra.mxu1 %v363_v16 }
  0x10   :  { %213 = vmatprep.subr.bf16.mxu0 %v364_v17  ;;  %254 = vmatprep.subr.bf16.mxu1 %v366_v18 }
  0x13   :  { %214 = vmatpush1.bf16.msra.mxu0 %v368_v19  ;;  %255 = vmatpush1.bf16.msra.mxu1 %v369_v20 }
  0x14   :  { %215 = vmatprep.subr.bf16.mxu0 %v370_v21  ;;  %256 = vmatprep.subr.bf16.mxu1 %v372_v22 }
  0x17   :  { %216 = vmatpush1.bf16.msra.mxu0 %v374_v23  ;;  %257 = vmatpush1.bf16.msra.mxu1 %v375_v24 }
  0x18   :  { %217 = vmatprep.subr.bf16.mxu0 %v376_v25  ;;  %258 = vmatprep.subr.bf16.mxu1 %v378_v26 }
  0x1b   :  { %218 = vmatpush1.bf16.msra.mxu0 %v380_v27  ;;  %259 = vmatpush1.bf16.msra.mxu1 %v381_v28 }
  0x1c   :  { %219 = vmatprep.subr.bf16.mxu0 %v382_v29  ;;  %260 = vmatprep.subr.bf16.mxu1 %v384_v30 }
  0x1f   :  { %220 = vmatpush1.bf16.msra.mxu0 %v386_v31  ;;  %261 = vmatpush1.bf16.msra.mxu1 %v387_v32 }
  0x22   :  { %238 = vmatmul.mubr.bf16.vlgmr.msra.gmra.mrb[0].mxu0 %v12_v33  ;;  %279 = vmatmul.mubr.bf16.vlgmr.msra.gmra.mrb[0].mxu1 %v12_v33 }
  0xf5   :  { %v239_v34 = vpop.f32.mrb[0].mxu0  ;;  %v280_v35 = vpop.f32.mrb[0].mxu1 }
  0xf6   :  { %vm287_vm0 = vcmp.ge.f32.partialorder %v239_v34, 0.0  ;;  %v291_v36 = vmul.f32 0.01, %v239_v34  ;;  %vm289_vm1 = vcmp.ge.f32.partialorder %v280_v35, 0.0  ;;  %v293_v37 = vmul.f32 0.01, %v280_v35 }
  0xf7   :  { %v241_v38 = vpop.f32.mrb[1].mxu0  ;;  %v282_v39 = vpop.f32.mrb[1].mxu1 }
  0xf8   :  { %v295_v40 = vsel %vm287_vm0, %v239_v34, %v291_v36  ;;  %v297_v41 = vsel %vm289_vm1, %v280_v35, %v293_v37  ;;  %vm288_vm2 = vcmp.ge.f32.partialorder %v241_v38, 0.0  ;;  %v292_v42 = vmul.f32 0.01, %v241_v38  ;;  %v243_v43 = vpop.f32.mrb[2].mxu0  ;;  %v284_v44 = vpop.f32.mrb[2].mxu1 }
  0xf9   :  { %299 = vst [vmem:[%s517_s2] sm:$0xff] %v295_v40  ;;  %301 = vst [vmem:[%s517_s2 + $0x10] sm:$0xff] %v297_v41  ;;  %vm290_vm3 = vcmp.ge.f32.partialorder %v282_v39, 0.0  ;;  %v294_v45 = vmul.f32 0.01, %v282_v39  ;;  %v244_v46 = vpop.f32.mrb[3].mxu0  ;;  %v285_v47 = vpop.f32.mrb[3].mxu1 }
  0xfa   :  { %v296_v48 = vsel %vm288_vm2, %v241_v38, %v292_v42 }
  0xfb   :  { %300 = vst [vmem:[%s517_s2 + $0x8] sm:$0xff] %v296_v48  ;;  %v298_v49 = vsel %vm290_vm3, %v282_v39, %v294_v45 }
  0xfc   :  { %302 = vst [vmem:[%s517_s2 + $0x18] sm:$0xff] %v298_v49 }

// kernel: generator_forward.15
= control target key start
LH: loop header
LB: loop body
LE: loop exit
PB: predicated region body
PF: predicated region fallthrough
CT: control target
= control target key end

     0   :  { %v249_v0 = vmov 0.0   ;;  %vm250_vm0 = vmmov 0   ;;  %v251_v22 = vmov 0   ;;  %s322_s1 = inlined_call_operand.vmem [shape: bf16[128,128], index: 1, kind: input, shape index: {}]   ;;  %s323_s0 = inlined_call_operand.vmem [shape: bf16[16,128], index: 0, kind: input, shape index: {}]   ;;  %s324_s3 = inlined_call_operand.vmem [shape: f32[16,1], index: 3, kind: input, shape index: {}]   ;;  %s325_s2 = inlined_call_operand.vmem [shape: f32[16,1], index: 2, kind: input, shape index: {}]   ;;  %s326_s4 = inlined_call_operand.vmem [shape: f32[16,128], index: 4, kind: output, shape index: {}]  }
   0x1   :  { %211 = vmatprep.subr.bf16.mxu0 %v249_v0  ;;  %v236_v1 = vld [vmem:[%s322_s1] sm:$0xff]   ;;  %227 = vmatprep.mubr.msk.bf16.mxu0 %vm250_vm0, %v249_v0  ;;  %v237_v2 = vld [vmem:[%s322_s1 + $0x8] sm:$0xff]   ;;  %v238_v3 = vld [vmem:[%s322_s1 + $0x10] sm:$0xff]  }
   0x2   :  { %212 = vmatpush3.bf16.msra.mxu0 %v236_v1  ;;  %v239_v4 = vld [vmem:[%s322_s1 + $0x18] sm:$0xff]   ;;  %v240_v5 = vld [vmem:[%s322_s1 + $0x20] sm:$0xff]   ;;  %v241_v6 = vld [vmem:[%s322_s1 + $0x28] sm:$0xff]   ;;  %235 = vset.pattern.permute.xlu1 %v251_v22 }
   0x3   :  { %213 = vmatprep.subr.bf16.mxu0 %v249_v0  ;;  %v242_v7 = vld [vmem:[%s322_s1 + $0x30] sm:$0xff]   ;;  %v243_v8 = vld [vmem:[%s322_s1 + $0x38] sm:$0xff]   ;;  %v244_v9 = vld [vmem:[%s323_s0] sm:$0xff]   ;;  %234 = vset.pattern.permute.xlu0 %v251_v22 }
   0x4   :  { %v167_v23 = vld [vmem:[%s324_s3] sm:$0xff]  ;;  %v152_v33 = vld [vmem:[%s325_s2 + $0x8] sm:$0xff] }
   0x5   :  { %v151_v30 = vld [vmem:[%s325_s2] sm:$0xff]  ;;  %v168_v36 = vld [vmem:[%s324_s3 + $0x8] sm:$0xff] }
   0x6   :  { %214 = vmatpush3.bf16.msra.mxu0 %v237_v2 }
   0x7   :  { %215 = vmatprep.subr.bf16.mxu0 %v249_v0 }
   0xa   :  { %216 = vmatpush3.bf16.msra.mxu0 %v238_v3 }
   0xb   :  { %217 = vmatprep.subr.bf16.mxu0 %v249_v0 }
   0xe   :  { %218 = vmatpush3.bf16.msra.mxu0 %v239_v4 }
   0xf   :  { %219 = vmatprep.subr.bf16.mxu0 %v249_v0 }
  0x12   :  { %220 = vmatpush3.bf16.msra.mxu0 %v240_v5 }
  0x13   :  { %221 = vmatprep.subr.bf16.mxu0 %v249_v0 }
  0x16   :  { %222 = vmatpush3.bf16.msra.mxu0 %v241_v6 }
  0x17   :  { %223 = vmatprep.subr.bf16.mxu0 %v249_v0 }
  0x1a   :  { %224 = vmatpush3.bf16.msra.mxu0 %v242_v7 }
  0x1b   :  { %225 = vmatprep.subr.bf16.mxu0 %v249_v0 }
  0x1e   :  { %226 = vmatpush3.bf16.msra.mxu0 %v243_v8 }
  0x21   :  { %228 = vmatmul.mubr.bf16.vlgmr.msra.gmra.mrb[0].mxu0 %v244_v9 }
  0xf4   :  { %v124_v10 = vpop.f32.mrb[0].mxu0 }
  0xf5   :  { %131 = vadd.xlane.f32.xlu0 %v124_v10  ;;  %v229_v11 = vpop.f32.mrb[1].mxu0 }
  0xf6   :  { %v127_v12 = vpop.f32.mrb[2].mxu0 }
  0xf7   :  { %v230_v13 = vpop.f32.mrb[3].mxu0 }
  0xf9   :  { %133 = vadd.xlane.f32.xlu0 %v127_v12 }
 0x182   :  { %v132_v14 = vpop.xlane.xlu0 %131 }
 0x183   :  { %v135_v15 = vmul.f32 0.0078125, %v132_v14 }
 0x185   :  { %v137_v16 = vsub.f32 %v124_v10, %v135_v15 }
 0x186   :  { %v134_v17 = vpop.xlane.xlu0 %133 }
 0x187   :  { %v136_v18 = vmul.f32 0.0078125, %v134_v17  ;;  %v139_v19 = vmul.f32 %v137_v16, %v137_v16 }
 0x189   :  { %v138_v20 = vsub.f32 %v127_v12, %v136_v18  ;;  %141 = vadd.xlane.f32.xlu1 %v139_v19 }
 0x18b   :  { %v140_v21 = vmul.f32 %v138_v20, %v138_v20 }
 0x18d   :  { %143 = vadd.xlane.f32.xlu1 %v140_v21 }
 0x19e   :  { %171 = vperm.xlu1 %235, %v167_v23  }
 0x216   :  { %v142_v24 = vpop.xlane.xlu1 %141 }
 0x217   :  { %v145_v25 = vmul.f32 0.0078125, %v142_v24 }
 0x219   :  { %v147_v26 = vadd.f32 1e-05, %v145_v25 }
 0x21a   :  { %v144_v27 = vpop.xlane.xlu1 %143 }
 0x21b   :  { %245 = vrsqrt.f32 %v147_v26  ;;  %v146_v28 = vmul.f32 0.0078125, %v144_v27 }
 0x21d   :  { %v148_v29 = vadd.f32 1e-05, %v146_v28 }
 0x21e   :  { %v172_v37 = vpop.permute.xlu1 %171 }
 0x21f   :  { %247 = vrsqrt.f32 %v148_v29 }
 0x225   :  { %v246_v31 = vpop.eup %245 }
 0x226   :  { %v153_v32 = vmul.f32 %v246_v31, %v151_v30 }
 0x228   :  { %157 = vperm.xlu0 %234, %v153_v32  }
 0x229   :  { %v248_v34 = vpop.eup %247 }
 0x22a   :  { %v154_v35 = vmul.f32 %v248_v34, %v152_v33 }
 0x22c   :  { %162 = vperm.xlu1 %235, %v154_v35  }
 0x230   :  { %176 = vperm.xlu1 %235, %v168_v36  }
 0x2a7   :  { %v158_v38 = vpop.permute.xlu0 %157 }
 0x2a8   :  { %v165_v39 = vmul.f32 %v158_v38, %v137_v16 }
 0x2aa   :  { %v179_v40 = vadd.f32 %v172_v37, %v165_v39 }
 0x2ab   :  { %v163_v41 = vpop.permute.xlu1 %162 }
 0x2ac   :  { %vm181_vm1 = vcmp.ge.f32.partialorder %v179_v40, 0.0  ;;  %v183_v42 = vmul.f32 0.01, %v179_v40  ;;  %v166_v44 = vmul.f32 %v163_v41, %v138_v20 }
 0x2ae   :  { %v185_v43 = vsel %vm181_vm1, %v179_v40, %v183_v42 }
 0x2af   :  { %v177_v45 = vpop.permute.xlu1 %176  ;;  %187 = vst [vmem:[%s326_s4] sm:$0xff] %v185_v43 }
 0x2b0   :  { %v180_v46 = vadd.f32 %v177_v45, %v166_v44 }
 0x2b2   :  { %vm182_vm2 = vcmp.ge.f32.partialorder %v180_v46, 0.0  ;;  %v184_v47 = vmul.f32 0.01, %v180_v46 }
 0x2b4   :  { %v186_v48 = vsel %vm182_vm2, %v180_v46, %v184_v47 }
 0x2b5   :  { %188 = vst [vmem:[%s326_s4 + $0x8] sm:$0xff] %v186_v48 }

// kernel: generator_forward.16
= control target key start
LH: loop header
LB: loop body
LE: loop exit
PB: predicated region body
PF: predicated region fallthrough
CT: control target
= control target key end

     0   :  { %v436_v48 = vmov 0   ;;  %s578_s1 = inlined_call_operand.vmem [shape: bf16[256,128], index: 1, kind: input, shape index: {}]   ;;  %s579_s0 = inlined_call_operand.vmem [shape: bf16[32,256], index: 0, kind: input, shape index: {}]   ;;  %s580_s3 = inlined_call_operand.vmem [shape: f32[32,1], index: 3, kind: input, shape index: {}]   ;;  %s581_s2 = inlined_call_operand.vmem [shape: f32[32,1], index: 2, kind: input, shape index: {}]   ;;  %s582_s4 = inlined_call_operand.vmem [shape: f32[32,128], index: 4, kind: output, shape index: {}]  }
   0x1   :  { %v406_v0 = vld [vmem:[%s578_s1 + $0x40] sm:$0xff]   ;;  %v408_v2 = vld [vmem:[%s578_s1 + $0x48] sm:$0xff]   ;;  %v410_v4 = vld [vmem:[%s578_s1 + $0x50] sm:$0xff]   ;;  %405 = vset.pattern.permute.xlu1 %v436_v48  ;;  %404 = vset.pattern.permute.xlu0 %v436_v48 }
   0x2   :  { %v407_v1 = vld [vmem:[%s578_s1] sm:$0xff]   ;;  %359 = vmatprep.subr.bf16.mxu0 %v406_v0  ;;  %387 = vmatprep.subr.bf16.mxu1 %v406_v0  ;;  %v409_v3 = vld [vmem:[%s578_s1 + $0x8] sm:$0xff]   ;;  %v411_v5 = vld [vmem:[%s578_s1 + $0x10] sm:$0xff]  }
   0x3   :  { %360 = vmatpush3.bf16.msra.mxu0 %v407_v1  ;;  %395 = vmatpush3.bf16.msra.mxu1 %v407_v1  ;;  %v412_v6 = vld [vmem:[%s578_s1 + $0x58] sm:$0xff]   ;;  %v414_v8 = vld [vmem:[%s578_s1 + $0x60] sm:$0xff]   ;;  %v416_v10 = vld [vmem:[%s578_s1 + $0x68] sm:$0xff]  }
   0x4   :  { %361 = vmatprep.subr.bf16.mxu0 %v408_v2  ;;  %388 = vmatprep.subr.bf16.mxu1 %v408_v2  ;;  %v413_v7 = vld [vmem:[%s578_s1 + $0x18] sm:$0xff]   ;;  %v415_v9 = vld [vmem:[%s578_s1 + $0x20] sm:$0xff]   ;;  %v417_v13 = vld [vmem:[%s578_s1 + $0x28] sm:$0xff]  }
   0x5   :  { %v424_v11 = vld [vmem:[%s579_s0 + $0x4] ss:$8 sps:$4 sm:$0xff]   ;;  %v427_v12 = vld [vmem:[%s579_s0 + $0x14] ss:$8 sps:$4 sm:$0xff]   ;;  %v422_v18 = vld [vmem:[%s579_s0] ss:$8 sps:$4 sm:$0xff]  }
   0x6   :  { %v418_v14 = vld [vmem:[%s578_s1 + $0x70] sm:$0xff]   ;;  %202 = vmatprep.mubr.bf16.mxu0 %v424_v11  ;;  %210 = vmatprep.mubr.bf16.mxu1 %v427_v12  ;;  %v420_v16 = vld [vmem:[%s578_s1 + $0x78] sm:$0xff]   ;;  %v291_v49 = vld [vmem:[%s580_s3] sm:$0xff] }
   0x7   :  { %362 = vmatpush3.bf16.msra.mxu0 %v409_v3  ;;  %396 = vmatpush3.bf16.msra.mxu1 %v409_v3  ;;  %v419_v15 = vld [vmem:[%s578_s1 + $0x30] sm:$0xff]   ;;  %v421_v17 = vld [vmem:[%s578_s1 + $0x38] sm:$0xff]   ;;  %v292_v50 = vld [vmem:[%s580_s3 + $0x8] sm:$0xff] }
   0x8   :  { %363 = vmatprep.subr.bf16.mxu0 %v410_v4  ;;  %389 = vmatprep.subr.bf16.mxu1 %v410_v4  ;;  %v425_v19 = vld [vmem:[%s579_s0 + $0x10] ss:$8 sps:$4 sm:$0xff]   ;;  %v259_v0 = vld [vmem:[%s581_s2] sm:$0xff] }
   0x9   :  { %v293_v51 = vld [vmem:[%s580_s3 + $0x10] sm:$0xff]  ;;  %v294_v12 = vld [vmem:[%s580_s3 + $0x18] sm:$0xff] }
   0xa   :  { %v261_v3 = vld [vmem:[%s581_s2 + $0x10] sm:$0xff] }
   0xb   :  { %364 = vmatpush3.bf16.msra.mxu0 %v411_v5  ;;  %397 = vmatpush3.bf16.msra.mxu1 %v411_v5 }
   0xc   :  { %365 = vmatprep.subr.bf16.mxu0 %v412_v6  ;;  %390 = vmatprep.subr.bf16.mxu1 %v412_v6 }
   0xf   :  { %366 = vmatpush3.bf16.msra.mxu0 %v413_v7  ;;  %398 = vmatpush3.bf16.msra.mxu1 %v413_v7  ;;  %v260_v7 = vld [vmem:[%s581_s2 + $0x8] sm:$0xff] }
  0x10   :  { %367 = vmatprep.subr.bf16.mxu0 %v414_v8  ;;  %391 = vmatprep.subr.bf16.mxu1 %v414_v8 }
  0x13   :  { %368 = vmatpush3.bf16.msra.mxu0 %v415_v9  ;;  %399 = vmatpush3.bf16.msra.mxu1 %v415_v9 }
  0x14   :  { %369 = vmatprep.subr.bf16.mxu0 %v416_v10  ;;  %392 = vmatprep.subr.bf16.mxu1 %v416_v10  ;;  %v262_v10 = vld [vmem:[%s581_s2 + $0x18] sm:$0xff] }
  0x17   :  { %370 = vmatpush3.bf16.msra.mxu0 %v417_v13  ;;  %400 = vmatpush3.bf16.msra.mxu1 %v417_v13 }
  0x18   :  { %371 = vmatprep.subr.bf16.mxu0 %v418_v14  ;;  %393 = vmatprep.subr.bf16.mxu1 %v418_v14 }
  0x1b   :  { %372 = vmatpush3.bf16.msra.mxu0 %v419_v15  ;;  %401 = vmatpush3.bf16.msra.mxu1 %v419_v15 }
  0x1c   :  { %373 = vmatprep.subr.bf16.mxu0 %v420_v16  ;;  %394 = vmatprep.subr.bf16.mxu1 %v420_v16 }
  0x1f   :  { %374 = vmatpush3.bf16.msra.mxu0 %v421_v17  ;;  %402 = vmatpush3.bf16.msra.mxu1 %v421_v17 }
  0x22   :  { %203 = vmatmul.mubr.bf16.vlgmr.msra.gmra.mrb[0].mxu0 %v422_v18  ;;  %211 = vmatmul.mubr.bf16.vlgmr.msra.gmra.mrb[0].mxu1 %v425_v19 }
  0xf5   :  { %v375_v20 = vpop.f32.mrb[0].mxu0  ;;  %v381_v21 = vpop.f32.mrb[0].mxu1 }
  0xf6   :  { %v376_v22 = vpop.f32.mrb[1].mxu0  ;;  %v382_v23 = vpop.f32.mrb[1].mxu1 }
  0xf7   :  { %v377_v24 = vadd.f32 %v376_v22, %v375_v20  ;;  %v383_v25 = vadd.f32 %v382_v23, %v381_v21  ;;  %v378_v26 = vpop.f32.mrb[2].mxu0  ;;  %v384_v27 = vpop.f32.mrb[2].mxu1 }
  0xf8   :  { %v379_v28 = vpop.f32.mrb[3].mxu0  ;;  %v385_v29 = vpop.f32.mrb[3].mxu1 }
  0xf9   :  { %v380_v30 = vadd.f32 %v379_v28, %v378_v26  ;;  %v386_v31 = vadd.f32 %v385_v29, %v384_v27  ;;  %223 = vadd.xlane.f32.xlu1 %v383_v25  ;;  %219 = vadd.xlane.f32.xlu0 %v377_v24 }
  0xfd   :  { %225 = vadd.xlane.f32.xlu1 %v386_v31  ;;  %221 = vadd.xlane.f32.xlu0 %v380_v30 }
 0x186   :  { %v224_v32 = vpop.xlane.xlu1 %223  ;;  %v220_v33 = vpop.xlane.xlu0 %219 }
 0x187   :  { %v229_v34 = vmul.f32 0.0078125, %v224_v32  ;;  %v227_v35 = vmul.f32 0.0078125, %v220_v33 }
 0x189   :  { %v522_v36 = vsub.f32 %v377_v24, %v227_v35  ;;  %v524_v39 = vsub.f32 %v383_v25, %v229_v34 }
 0x18a   :  { %v226_v37 = vpop.xlane.xlu1 %225  ;;  %v222_v38 = vpop.xlane.xlu0 %221 }
 0x18b   :  { %v230_v40 = vmul.f32 0.0078125, %v226_v37  ;;  %v228_v41 = vmul.f32 0.0078125, %v222_v38  ;;  %v235_v42 = vmul.f32 %v522_v36, %v522_v36  ;;  %v237_v45 = vmul.f32 %v524_v39, %v524_v39 }
 0x18d   :  { %v528_v43 = vsub.f32 %v380_v30, %v228_v41  ;;  %239 = vadd.xlane.f32.xlu0 %v235_v42  ;;  %v530_v44 = vsub.f32 %v386_v31, %v230_v40 }
 0x18f   :  { %v236_v46 = vmul.f32 %v528_v43, %v528_v43  ;;  %v238_v47 = vmul.f32 %v530_v44, %v530_v44 }
 0x191   :  { %243 = vadd.xlane.f32.xlu0 %v237_v45  ;;  %241 = vadd.xlane.f32.xlu1 %v236_v46 }
 0x195   :  { %245 = vadd.xlane.f32.xlu1 %v238_v47 }
 0x1a6   :  { %297 = vperm.xlu1 %405, %v291_v49  }
 0x1aa   :  { %302 = vperm.xlu1 %405, %v292_v50  }
 0x1ae   :  { %307 = vperm.xlu1 %405, %v293_v51  }
 0x21a   :  { %v240_v52 = vpop.xlane.xlu0 %239 }
 0x21b   :  { %v247_v53 = vmul.f32 0.0078125, %v240_v52 }
 0x21d   :  { %v251_v54 = vadd.f32 1e-05, %v247_v53 }
 0x21e   :  { %v242_v55 = vpop.xlane.xlu1 %241  ;;  %v244_v56 = vpop.xlane.xlu0 %243 }
 0x21f   :  { %428 = vrsqrt.f32 %v251_v54  ;;  %v248_v57 = vmul.f32 0.0078125, %v242_v55  ;;  %v249_v58 = vmul.f32 0.0078125, %v244_v56 }
 0x221   :  { %v253_v59 = vadd.f32 1e-05, %v249_v58  ;;  %v252_v60 = vadd.f32 1e-05, %v248_v57 }
 0x222   :  { %v246_v61 = vpop.xlane.xlu1 %245 }
 0x223   :  { %v250_v62 = vmul.f32 0.0078125, %v246_v61  ;;  %430 = vrsqrt.f32 %v253_v59 }
 0x224   :  { %432 = vrsqrt.f32 %v252_v60 }
 0x225   :  { %v254_v63 = vadd.f32 1e-05, %v250_v62 }
 0x226   :  { %v298_v13 = vpop.permute.xlu1 %297 }
 0x227   :  { %434 = vrsqrt.f32 %v254_v63 }
 0x229   :  { %v429_v1 = vpop.eup %428 }
 0x22a   :  { %v263_v2 = vmul.f32 %v429_v1, %v259_v0  ;;  %v303_v14 = vpop.permute.xlu1 %302 }
 0x22c   :  { %269 = vperm.xlu0 %404, %v263_v2  }
 0x22d   :  { %v431_v4 = vpop.eup %430 }
 0x22e   :  { %v265_v5 = vmul.f32 %v431_v4, %v261_v3  ;;  %v433_v6 = vpop.eup %432  ;;  %v308_v16 = vpop.permute.xlu1 %307 }
 0x22f   :  { %v264_v8 = vmul.f32 %v433_v6, %v260_v7 }
 0x230   :  { %279 = vperm.xlu1 %405, %v265_v5  }
 0x231   :  { %v435_v9 = vpop.eup %434 }
 0x232   :  { %v266_v11 = vmul.f32 %v435_v9, %v262_v10 }
 0x234   :  { %274 = vperm.xlu1 %405, %v264_v8  }
 0x238   :  { %284 = vperm.xlu1 %405, %v266_v11  }
 0x23c   :  { %312 = vperm.xlu1 %405, %v294_v12  }
 0x2ab   :  { %v270_v15 = vpop.permute.xlu0 %269 }
 0x2ac   :  { %v287_v17 = vmul.f32 %v270_v15, %v522_v36 }
 0x2ae   :  { %v315_v18 = vadd.f32 %v298_v13, %v287_v17 }
 0x2af   :  { %v280_v20 = vpop.permute.xlu1 %279 }
 0x2b0   :  { %vm319_vm0 = vcmp.ge.f32.partialorder %v315_v18, 0.0  ;;  %v323_v19 = vmul.f32 0.01, %v315_v18  ;;  %v289_v21 = vmul.f32 %v280_v20, %v524_v39 }
 0x2b2   :  { %v327_v22 = vsel %vm319_vm0, %v315_v18, %v323_v19  ;;  %v317_v23 = vadd.f32 %v308_v16, %v289_v21 }
 0x2b3   :  { %331 = vst [vmem:[%s582_s4] sm:$0xff] %v327_v22  ;;  %v275_v24 = vpop.permute.xlu1 %274 }
 0x2b4   :  { %vm321_vm1 = vcmp.ge.f32.partialorder %v317_v23, 0.0  ;;  %v325_v25 = vmul.f32 0.01, %v317_v23  ;;  %v288_v26 = vmul.f32 %v275_v24, %v528_v43 }
 0x2b6   :  { %v329_v27 = vsel %vm321_vm1, %v317_v23, %v325_v25  ;;  %v316_v28 = vadd.f32 %v303_v14, %v288_v26 }
 0x2b7   :  { %333 = vst [vmem:[%s582_s4 + $0x10] sm:$0xff] %v329_v27  ;;  %v285_v29 = vpop.permute.xlu1 %284 }
 0x2b8   :  { %vm320_vm2 = vcmp.ge.f32.partialorder %v316_v28, 0.0  ;;  %v324_v30 = vmul.f32 0.01, %v316_v28  ;;  %v290_v32 = vmul.f32 %v285_v29, %v530_v44 }
 0x2ba   :  { %v328_v31 = vsel %vm320_vm2, %v316_v28, %v324_v30 }
 0x2bb   :  { %332 = vst [vmem:[%s582_s4 + $0x8] sm:$0xff] %v328_v31  ;;  %v313_v33 = vpop.permute.xlu1 %312 }
 0x2bc   :  { %v318_v34 = vadd.f32 %v313_v33, %v290_v32 }
 0x2be   :  { %vm322_vm3 = vcmp.ge.f32.partialorder %v318_v34, 0.0  ;;  %v326_v35 = vmul.f32 0.01, %v318_v34 }
 0x2c0   :  { %v330_v36 = vsel %vm322_vm3, %v318_v34, %v326_v35 }
 0x2c1   :  { %334 = vst [vmem:[%s582_s4 + $0x18] sm:$0xff] %v330_v36 }

// kernel: generator_forward.17
= control target key start
LH: loop header
LB: loop body
LE: loop exit
PB: predicated region body
PF: predicated region fallthrough
CT: control target
= control target key end

     0   :  { %s763_s1 = inlined_call_operand.vmem [shape: bf16[384,128], index: 1, kind: input, shape index: {}]   ;;  %s764_s0 = inlined_call_operand.vmem [shape: bf16[32,384], index: 0, kind: input, shape index: {}]   ;;  %s765_s3 = inlined_call_operand.vmem [shape: f32[32,1], index: 3, kind: input, shape index: {}]   ;;  %s766_s2 = inlined_call_operand.vmem [shape: f32[32,1], index: 2, kind: input, shape index: {}]   ;;  %s767_s4 = inlined_call_operand.vmem [shape: f32[32,128], index: 4, kind: output, shape index: {}]  }
   0x1   :  { %v551_v0 = vld [vmem:[%s763_s1 + $0x40] sm:$0xff]   ;;  %v554_v3 = vld [vmem:[%s763_s1 + $0x48] sm:$0xff]   ;;  %v557_v6 = vld [vmem:[%s763_s1 + $0x50] sm:$0xff]  }
   0x2   :  { %v552_v1 = vld [vmem:[%s763_s1 + $0x80] sm:$0xff]   ;;  %490 = vmatprep.subr.bf16.mxu0 %v551_v0  ;;  %v555_v4 = vld [vmem:[%s763_s1 + $0x88] sm:$0xff]   ;;  %v558_v7 = vld [vmem:[%s763_s1 + $0x90] sm:$0xff]  }
   0x3   :  { %v553_v2 = vld [vmem:[%s763_s1] sm:$0xff]   ;;  %528 = vmatprep.subr.bf16.mxu1 %v552_v1  ;;  %v556_v5 = vld [vmem:[%s763_s1 + $0x8] sm:$0xff]   ;;  %v559_v8 = vld [vmem:[%s763_s1 + $0x10] sm:$0xff]  }
   0x4   :  { %491 = vmatpush3.bf16.msra.mxu0 %v553_v2  ;;  %529 = vmatpush3.bf16.msra.mxu1 %v552_v1  ;;  %v560_v9 = vld [vmem:[%s763_s1 + $0x58] sm:$0xff]   ;;  %v563_v12 = vld [vmem:[%s763_s1 + $0x60] sm:$0xff]   ;;  %v566_v15 = vld [vmem:[%s763_s1 + $0x68] sm:$0xff]   ;;  %v591_v2 = vmov 0  }
   0x5   :  { %492 = vmatprep.subr.bf16.mxu0 %v554_v3  ;;  %530 = vmatprep.subr.bf16.mxu1 %v555_v4  ;;  %v561_v10 = vld [vmem:[%s763_s1 + $0x98] sm:$0xff]   ;;  %v564_v13 = vld [vmem:[%s763_s1 + $0xa0] sm:$0xff]   ;;  %v567_v16 = vld [vmem:[%s763_s1 + $0xa8] sm:$0xff]  }
   0x6   :  { %v562_v11 = vld [vmem:[%s763_s1 + $0x18] sm:$0xff]   ;;  %v565_v14 = vld [vmem:[%s763_s1 + $0x20] sm:$0xff]   ;;  %v568_v17 = vld [vmem:[%s763_s1 + $0x28] sm:$0xff]   ;;  %550 = vset.pattern.permute.xlu1 %v591_v2  ;;  %549 = vset.pattern.permute.xlu0 %v591_v2 }
   0x7   :  { %v569_v18 = vld [vmem:[%s763_s1 + $0x70] sm:$0xff]   ;;  %v572_v21 = vld [vmem:[%s763_s1 + $0x78] sm:$0xff]   ;;  %v575_v26 = vld [vmem:[%s764_s0] ss:$12 sps:$4 sm:$0xff]  }
   0x8   :  { %493 = vmatpush3.bf16.msra.mxu0 %v556_v5  ;;  %531 = vmatpush3.bf16.msra.mxu1 %v555_v4  ;;  %v570_v19 = vld [vmem:[%s763_s1 + $0xb0] sm:$0xff]   ;;  %v573_v22 = vld [vmem:[%s763_s1 + $0xb8] sm:$0xff]   ;;  %v579_v27 = vld [vmem:[%s764_s0 + $0x20] ss:$12 sps:$4 sm:$0xff]  }
   0x9   :  { %494 = vmatprep.subr.bf16.mxu0 %v557_v6  ;;  %532 = vmatprep.subr.bf16.mxu1 %v558_v7  ;;  %v571_v20 = vld [vmem:[%s763_s1 + $0x30] sm:$0xff]   ;;  %v574_v25 = vld [vmem:[%s763_s1 + $0x38] sm:$0xff]   ;;  %v420_v3 = vld [vmem:[%s765_s3] sm:$0xff] }
   0xa   :  { %v577_v23 = vld [vmem:[%s764_s0 + $0x4] ss:$12 sps:$4 sm:$0xff]   ;;  %v578_v24 = vld [vmem:[%s764_s0 + $0x8] ss:$12 sps:$4 sm:$0xff]  }
   0xb   :  { %282 = vmatprep.mubr.bf16.mxu0 %v577_v23  ;;  %544 = vmatprep.mubr.bf16.mxu1 %v578_v24  ;;  %v580_v28 = vld [vmem:[%s764_s0 + $0x1c] ss:$12 sps:$4 sm:$0xff]   ;;  %v582_v29 = vld [vmem:[%s764_s0 + $0x18] ss:$12 sps:$4 sm:$0xff]   ;;  %v422_v5 = vld [vmem:[%s765_s3 + $0x10] sm:$0xff] }
   0xc   :  { %495 = vmatpush3.bf16.msra.mxu0 %v559_v8  ;;  %533 = vmatpush3.bf16.msra.mxu1 %v558_v7  ;;  %v421_v4 = vld [vmem:[%s765_s3 + $0x8] sm:$0xff]  ;;  %v390_v24 = vld [vmem:[%s766_s2 + $0x10] sm:$0xff] }
   0xd   :  { %496 = vmatprep.subr.bf16.mxu0 %v560_v9  ;;  %534 = vmatprep.subr.bf16.mxu1 %v561_v10 }
  0x10   :  { %497 = vmatpush3.bf16.msra.mxu0 %v562_v11  ;;  %535 = vmatpush3.bf16.msra.mxu1 %v561_v10 }
  0x11   :  { %498 = vmatprep.subr.bf16.mxu0 %v563_v12  ;;  %536 = vmatprep.subr.bf16.mxu1 %v564_v13 }
  0x14   :  { %499 = vmatpush3.bf16.msra.mxu0 %v565_v14  ;;  %537 = vmatpush3.bf16.msra.mxu1 %v564_v13 }
  0x15   :  { %500 = vmatprep.subr.bf16.mxu0 %v566_v15  ;;  %538 = vmatprep.subr.bf16.mxu1 %v567_v16 }
  0x18   :  { %501 = vmatpush3.bf16.msra.mxu0 %v568_v17  ;;  %539 = vmatpush3.bf16.msra.mxu1 %v567_v16  ;;  %v388_v17 = vld [vmem:[%s766_s2] sm:$0xff] }
  0x19   :  { %502 = vmatprep.subr.bf16.mxu0 %v569_v18  ;;  %540 = vmatprep.subr.bf16.mxu1 %v570_v19 }
  0x1c   :  { %503 = vmatpush3.bf16.msra.mxu0 %v571_v20  ;;  %541 = vmatpush3.bf16.msra.mxu1 %v570_v19 }
  0x1d   :  { %504 = vmatprep.subr.bf16.mxu0 %v572_v21  ;;  %542 = vmatprep.subr.bf16.mxu1 %v573_v22  ;;  %v389_v21 = vld [vmem:[%s766_s2 + $0x8] sm:$0xff] }
  0x20   :  { %505 = vmatpush3.bf16.msra.mxu0 %v574_v25  ;;  %543 = vmatpush3.bf16.msra.mxu1 %v573_v22 }
  0x23   :  { %283 = vmatmul.mubr.bf16.vlgmr.msra.gmra.mrb[0].mxu0 %v575_v26  ;;  %545 = vmatmul.mubr.bf16.vlgmr.msra.gmra.mrb[0].mxu1 %v579_v27  ;;  %v391_v27 = vld [vmem:[%s766_s2 + $0x18] sm:$0xff] }
  0x24   :  { %290 = vmatprep.mubr.bf16.mxu0 %v580_v28 }
  0x2b   :  { %291 = vmatmul.mubr.bf16.gmra.mrb[4].mxu0 %v582_v29 }
  0xf6   :  { %v506_v30 = vpop.f32.mrb[0].mxu0  ;;  %v546_v31 = vpop.f32.mrb[0].mxu1 }
  0xf7   :  { %v507_v32 = vpop.f32.mrb[1].mxu0  ;;  %v333_v33 = vpop.f32.mrb[1].mxu1 }
  0xf8   :  { %v508_v34 = vadd.f32 %v507_v32, %v506_v30  ;;  %v509_v35 = vpop.f32.mrb[2].mxu0  ;;  %v547_v36 = vpop.f32.mrb[2].mxu1  ;;  %v423_v30 = vld [vmem:[%s765_s3 + $0x18] sm:$0xff] }
  0xf9   :  { %v510_v37 = vpop.f32.mrb[3].mxu0  ;;  %v336_v38 = vpop.f32.mrb[3].mxu1 }
  0xfa   :  { %v334_v39 = vadd.f32 %v508_v34, %v333_v33  ;;  %v511_v40 = vadd.f32 %v510_v37, %v509_v35 }
  0xfc   :  { %v337_v41 = vadd.f32 %v511_v40, %v336_v38  ;;  %348 = vadd.xlane.f32.xlu0 %v334_v39 }
  0xfe   :  { %v512_v42 = vpop.f32.mrb[4].mxu0 }
  0xff   :  { %v513_v43 = vpop.f32.mrb[5].mxu0 }
 0x100   :  { %v514_v44 = vadd.f32 %v513_v43, %v512_v42  ;;  %v515_v45 = vpop.f32.mrb[6].mxu0  ;;  %350 = vadd.xlane.f32.xlu0 %v337_v41 }
 0x101   :  { %v516_v46 = vpop.f32.mrb[7].mxu0 }
 0x102   :  { %v517_v47 = vadd.f32 %v516_v46, %v515_v45  ;;  %v342_v48 = vadd.f32 %v546_v31, %v514_v44 }
 0x104   :  { %352 = vadd.xlane.f32.xlu1 %v342_v48  ;;  %v345_v49 = vadd.f32 %v547_v36, %v517_v47 }
 0x108   :  { %354 = vadd.xlane.f32.xlu1 %v345_v49 }
 0x189   :  { %v349_v50 = vpop.xlane.xlu0 %348 }
 0x18a   :  { %v356_v51 = vmul.f32 0.0078125, %v349_v50 }
 0x18c   :  { %v707_v52 = vsub.f32 %v334_v39, %v356_v51 }
 0x18d   :  { %v351_v53 = vpop.xlane.xlu0 %350 }
 0x18e   :  { %v357_v54 = vmul.f32 0.0078125, %v351_v53  ;;  %v364_v55 = vmul.f32 %v707_v52, %v707_v52 }
 0x190   :  { %v711_v56 = vsub.f32 %v337_v41, %v357_v54  ;;  %368 = vadd.xlane.f32.xlu0 %v364_v55 }
 0x191   :  { %v353_v57 = vpop.xlane.xlu1 %352 }
 0x192   :  { %v358_v58 = vmul.f32 0.0078125, %v353_v57  ;;  %v365_v59 = vmul.f32 %v711_v56, %v711_v56 }
 0x194   :  { %v715_v60 = vsub.f32 %v342_v48, %v358_v58  ;;  %370 = vadd.xlane.f32.xlu1 %v365_v59 }
 0x195   :  { %v355_v61 = vpop.xlane.xlu1 %354 }
 0x196   :  { %v359_v62 = vmul.f32 0.0078125, %v355_v61  ;;  %v366_v63 = vmul.f32 %v715_v60, %v715_v60 }
 0x198   :  { %v719_v0 = vsub.f32 %v345_v49, %v359_v62  ;;  %372 = vadd.xlane.f32.xlu0 %v366_v63 }
 0x19a   :  { %v367_v1 = vmul.f32 %v719_v0, %v719_v0 }
 0x19c   :  { %374 = vadd.xlane.f32.xlu1 %v367_v1 }
 0x1ad   :  { %426 = vperm.xlu1 %550, %v420_v3  }
 0x1b1   :  { %431 = vperm.xlu1 %550, %v421_v4  }
 0x1b5   :  { %436 = vperm.xlu1 %550, %v422_v5  }
 0x21d   :  { %v369_v6 = vpop.xlane.xlu0 %368 }
 0x21e   :  { %v376_v7 = vmul.f32 0.0078125, %v369_v6 }
 0x220   :  { %v380_v8 = vadd.f32 1e-05, %v376_v7 }
 0x221   :  { %v371_v9 = vpop.xlane.xlu1 %370 }
 0x222   :  { %583 = vrsqrt.f32 %v380_v8  ;;  %v377_v10 = vmul.f32 0.0078125, %v371_v9 }
 0x224   :  { %v381_v11 = vadd.f32 1e-05, %v377_v10 }
 0x225   :  { %v373_v12 = vpop.xlane.xlu0 %372 }
 0x226   :  { %585 = vrsqrt.f32 %v381_v11  ;;  %v378_v13 = vmul.f32 0.0078125, %v373_v12 }
 0x228   :  { %v382_v14 = vadd.f32 1e-05, %v378_v13 }
 0x229   :  { %v375_v15 = vpop.xlane.xlu1 %374 }
 0x22a   :  { %587 = vrsqrt.f32 %v382_v14  ;;  %v379_v16 = vmul.f32 0.0078125, %v375_v15 }
 0x22c   :  { %v584_v18 = vpop.eup %583  ;;  %v383_v19 = vadd.f32 1e-05, %v379_v16 }
 0x22d   :  { %v392_v20 = vmul.f32 %v584_v18, %v388_v17  ;;  %v427_v31 = vpop.permute.xlu1 %426 }
 0x22e   :  { %589 = vrsqrt.f32 %v383_v19 }
 0x22f   :  { %398 = vperm.xlu0 %549, %v392_v20  }
 0x230   :  { %v586_v22 = vpop.eup %585 }
 0x231   :  { %v393_v23 = vmul.f32 %v586_v22, %v389_v21  ;;  %v432_v32 = vpop.permute.xlu1 %431 }
 0x233   :  { %403 = vperm.xlu1 %550, %v393_v23  }
 0x234   :  { %v588_v25 = vpop.eup %587 }
 0x235   :  { %v394_v26 = vmul.f32 %v588_v25, %v390_v24  ;;  %v437_v33 = vpop.permute.xlu1 %436 }
 0x237   :  { %408 = vperm.xlu1 %550, %v394_v26  }
 0x238   :  { %v590_v28 = vpop.eup %589 }
 0x239   :  { %v395_v29 = vmul.f32 %v590_v28, %v391_v27 }
 0x23b   :  { %413 = vperm.xlu1 %550, %v395_v29  }
 0x23f   :  { %441 = vperm.xlu1 %550, %v423_v30  }
 0x2ae   :  { %v399_v34 = vpop.permute.xlu0 %398 }
 0x2af   :  { %v416_v35 = vmul.f32 %v399_v34, %v707_v52 }
 0x2b1   :  { %v444_v36 = vadd.f32 %v427_v31, %v416_v35 }
 0x2b2   :  { %v404_v37 = vpop.permute.xlu1 %403 }
 0x2b3   :  { %v448_v38 = vmax.f32 %v444_v36, 0.0  ;;  %v417_v39 = vmul.f32 %v404_v37, %v711_v56 }
 0x2b5   :  { %452 = vst [vmem:[%s767_s4] sm:$0xff] %v448_v38  ;;  %v445_v40 = vadd.f32 %v432_v32, %v417_v39 }
 0x2b6   :  { %v409_v41 = vpop.permute.xlu1 %408 }
 0x2b7   :  { %v449_v42 = vmax.f32 %v445_v40, 0.0  ;;  %v418_v43 = vmul.f32 %v409_v41, %v715_v60 }
 0x2b9   :  { %453 = vst [vmem:[%s767_s4 + $0x8] sm:$0xff] %v449_v42  ;;  %v446_v44 = vadd.f32 %v437_v33, %v418_v43 }
 0x2ba   :  { %v414_v45 = vpop.permute.xlu1 %413 }
 0x2bb   :  { %v450_v46 = vmax.f32 %v446_v44, 0.0  ;;  %v419_v47 = vmul.f32 %v414_v45, %v719_v0 }
 0x2bd   :  { %454 = vst [vmem:[%s767_s4 + $0x10] sm:$0xff] %v450_v46 }
 0x2be   :  { %v442_v48 = vpop.permute.xlu1 %441 }
 0x2bf   :  { %v447_v49 = vadd.f32 %v442_v48, %v419_v47 }
 0x2c1   :  { %v451_v50 = vmax.f32 %v447_v49, 0.0 }
 0x2c3   :  { %455 = vst [vmem:[%s767_s4 + $0x18] sm:$0xff] %v451_v50 }

// kernel: generator_forward.18
= control target key start
LH: loop header
LB: loop body
LE: loop exit
PB: predicated region body
PF: predicated region fallthrough
CT: control target
= control target key end

     0   :  { %s787_s1 = inlined_call_operand.vmem [shape: bf16[384,128], index: 1, kind: input, shape index: {}]   ;;  %s788_s0 = inlined_call_operand.vmem [shape: bf16[32,384], index: 0, kind: input, shape index: {}]   ;;  %s789_s3 = inlined_call_operand.vmem [shape: f32[32,1], index: 3, kind: input, shape index: {}]   ;;  %s790_s2 = inlined_call_operand.vmem [shape: f32[32,1], index: 2, kind: input, shape index: {}]   ;;  %s791_s4 = inlined_call_operand.vmem [shape: f32[32,128], index: 4, kind: input, shape index: {}]   ;;  %s792_s5 = inlined_call_operand.vmem [shape: f32[32,128], index: 5, kind: output, shape index: {}]  }
   0x1   :  { %v558_v0 = vld [vmem:[%s787_s1 + $0x40] sm:$0xff]   ;;  %v561_v3 = vld [vmem:[%s787_s1 + $0x48] sm:$0xff]   ;;  %v564_v6 = vld [vmem:[%s787_s1 + $0x50] sm:$0xff]  }
   0x2   :  { %v559_v1 = vld [vmem:[%s787_s1 + $0x80] sm:$0xff]   ;;  %497 = vmatprep.subr.bf16.mxu0 %v558_v0  ;;  %v562_v4 = vld [vmem:[%s787_s1 + $0x88] sm:$0xff]   ;;  %v565_v7 = vld [vmem:[%s787_s1 + $0x90] sm:$0xff]  }
   0x3   :  { %v560_v2 = vld [vmem:[%s787_s1] sm:$0xff]   ;;  %535 = vmatprep.subr.bf16.mxu1 %v559_v1  ;;  %v563_v5 = vld [vmem:[%s787_s1 + $0x8] sm:$0xff]   ;;  %v566_v8 = vld [vmem:[%s787_s1 + $0x10] sm:$0xff]  }
   0x4   :  { %498 = vmatpush3.bf16.msra.mxu0 %v560_v2  ;;  %536 = vmatpush3.bf16.msra.mxu1 %v559_v1  ;;  %v567_v9 = vld [vmem:[%s787_s1 + $0x58] sm:$0xff]   ;;  %v570_v12 = vld [vmem:[%s787_s1 + $0x60] sm:$0xff]   ;;  %v573_v15 = vld [vmem:[%s787_s1 + $0x68] sm:$0xff]   ;;  %v598_v2 = vmov 0  }
   0x5   :  { %499 = vmatprep.subr.bf16.mxu0 %v561_v3  ;;  %537 = vmatprep.subr.bf16.mxu1 %v562_v4  ;;  %v568_v10 = vld [vmem:[%s787_s1 + $0x98] sm:$0xff]   ;;  %v571_v13 = vld [vmem:[%s787_s1 + $0xa0] sm:$0xff]   ;;  %v574_v16 = vld [vmem:[%s787_s1 + $0xa8] sm:$0xff]  }
   0x6   :  { %v569_v11 = vld [vmem:[%s787_s1 + $0x18] sm:$0xff]   ;;  %v572_v14 = vld [vmem:[%s787_s1 + $0x20] sm:$0xff]   ;;  %v575_v17 = vld [vmem:[%s787_s1 + $0x28] sm:$0xff]   ;;  %557 = vset.pattern.permute.xlu1 %v598_v2  ;;  %556 = vset.pattern.permute.xlu0 %v598_v2 }
   0x7   :  { %v576_v18 = vld [vmem:[%s787_s1 + $0x70] sm:$0xff]   ;;  %v579_v21 = vld [vmem:[%s787_s1 + $0x78] sm:$0xff]   ;;  %v582_v26 = vld [vmem:[%s788_s0] ss:$12 sps:$4 sm:$0xff]  }
   0x8   :  { %500 = vmatpush3.bf16.msra.mxu0 %v563_v5  ;;  %538 = vmatpush3.bf16.msra.mxu1 %v562_v4  ;;  %v577_v19 = vld [vmem:[%s787_s1 + $0xb0] sm:$0xff]   ;;  %v580_v22 = vld [vmem:[%s787_s1 + $0xb8] sm:$0xff]   ;;  %v586_v27 = vld [vmem:[%s788_s0 + $0x20] ss:$12 sps:$4 sm:$0xff]  }
   0x9   :  { %501 = vmatprep.subr.bf16.mxu0 %v564_v6  ;;  %539 = vmatprep.subr.bf16.mxu1 %v565_v7  ;;  %v578_v20 = vld [vmem:[%s787_s1 + $0x30] sm:$0xff]   ;;  %v581_v25 = vld [vmem:[%s787_s1 + $0x38] sm:$0xff]   ;;  %v423_v3 = vld [vmem:[%s789_s3] sm:$0xff] }
   0xa   :  { %v584_v23 = vld [vmem:[%s788_s0 + $0x4] ss:$12 sps:$4 sm:$0xff]   ;;  %v585_v24 = vld [vmem:[%s788_s0 + $0x8] ss:$12 sps:$4 sm:$0xff]  }
   0xb   :  { %285 = vmatprep.mubr.bf16.mxu0 %v584_v23  ;;  %551 = vmatprep.mubr.bf16.mxu1 %v585_v24  ;;  %v587_v28 = vld [vmem:[%s788_s0 + $0x1c] ss:$12 sps:$4 sm:$0xff]   ;;  %v589_v29 = vld [vmem:[%s788_s0 + $0x18] ss:$12 sps:$4 sm:$0xff]   ;;  %v425_v5 = vld [vmem:[%s789_s3 + $0x10] sm:$0xff] }
   0xc   :  { %502 = vmatpush3.bf16.msra.mxu0 %v566_v8  ;;  %540 = vmatpush3.bf16.msra.mxu1 %v565_v7  ;;  %v424_v4 = vld [vmem:[%s789_s3 + $0x8] sm:$0xff]  ;;  %v393_v24 = vld [vmem:[%s790_s2 + $0x10] sm:$0xff] }
   0xd   :  { %503 = vmatprep.subr.bf16.mxu0 %v567_v9  ;;  %541 = vmatprep.subr.bf16.mxu1 %v568_v10 }
  0x10   :  { %504 = vmatpush3.bf16.msra.mxu0 %v569_v11  ;;  %542 = vmatpush3.bf16.msra.mxu1 %v568_v10 }
  0x11   :  { %505 = vmatprep.subr.bf16.mxu0 %v570_v12  ;;  %543 = vmatprep.subr.bf16.mxu1 %v571_v13 }
  0x14   :  { %506 = vmatpush3.bf16.msra.mxu0 %v572_v14  ;;  %544 = vmatpush3.bf16.msra.mxu1 %v571_v13 }
  0x15   :  { %507 = vmatprep.subr.bf16.mxu0 %v573_v15  ;;  %545 = vmatprep.subr.bf16.mxu1 %v574_v16 }
  0x18   :  { %508 = vmatpush3.bf16.msra.mxu0 %v575_v17  ;;  %546 = vmatpush3.bf16.msra.mxu1 %v574_v16  ;;  %v391_v17 = vld [vmem:[%s790_s2] sm:$0xff] }
  0x19   :  { %509 = vmatprep.subr.bf16.mxu0 %v576_v18  ;;  %547 = vmatprep.subr.bf16.mxu1 %v577_v19 }
  0x1c   :  { %510 = vmatpush3.bf16.msra.mxu0 %v578_v20  ;;  %548 = vmatpush3.bf16.msra.mxu1 %v577_v19 }
  0x1d   :  { %511 = vmatprep.subr.bf16.mxu0 %v579_v21  ;;  %549 = vmatprep.subr.bf16.mxu1 %v580_v22  ;;  %v392_v21 = vld [vmem:[%s790_s2 + $0x8] sm:$0xff] }
  0x20   :  { %512 = vmatpush3.bf16.msra.mxu0 %v581_v25  ;;  %550 = vmatpush3.bf16.msra.mxu1 %v580_v22 }
  0x23   :  { %286 = vmatmul.mubr.bf16.vlgmr.msra.gmra.mrb[0].mxu0 %v582_v26  ;;  %552 = vmatmul.mubr.bf16.vlgmr.msra.gmra.mrb[0].mxu1 %v586_v27  ;;  %v394_v27 = vld [vmem:[%s790_s2 + $0x18] sm:$0xff] }
  0x24   :  { %293 = vmatprep.mubr.bf16.mxu0 %v587_v28 }
  0x2b   :  { %294 = vmatmul.mubr.bf16.gmra.mrb[4].mxu0 %v589_v29 }
  0xf6   :  { %v513_v30 = vpop.f32.mrb[0].mxu0  ;;  %v553_v31 = vpop.f32.mrb[0].mxu1 }
  0xf7   :  { %v514_v32 = vpop.f32.mrb[1].mxu0  ;;  %v336_v33 = vpop.f32.mrb[1].mxu1 }
  0xf8   :  { %v515_v34 = vadd.f32 %v514_v32, %v513_v30  ;;  %v516_v35 = vpop.f32.mrb[2].mxu0  ;;  %v554_v36 = vpop.f32.mrb[2].mxu1  ;;  %v426_v30 = vld [vmem:[%s789_s3 + $0x18] sm:$0xff] }
  0xf9   :  { %v517_v37 = vpop.f32.mrb[3].mxu0  ;;  %v339_v38 = vpop.f32.mrb[3].mxu1 }
  0xfa   :  { %v337_v39 = vadd.f32 %v515_v34, %v336_v33  ;;  %v518_v40 = vadd.f32 %v517_v37, %v516_v35 }
  0xfc   :  { %v340_v41 = vadd.f32 %v518_v40, %v339_v38  ;;  %351 = vadd.xlane.f32.xlu0 %v337_v39 }
  0xfe   :  { %v519_v42 = vpop.f32.mrb[4].mxu0 }
  0xff   :  { %v520_v43 = vpop.f32.mrb[5].mxu0 }
 0x100   :  { %v521_v44 = vadd.f32 %v520_v43, %v519_v42  ;;  %v522_v45 = vpop.f32.mrb[6].mxu0  ;;  %353 = vadd.xlane.f32.xlu0 %v340_v41 }
 0x101   :  { %v523_v46 = vpop.f32.mrb[7].mxu0 }
 0x102   :  { %v524_v47 = vadd.f32 %v523_v46, %v522_v45  ;;  %v345_v48 = vadd.f32 %v553_v31, %v521_v44  ;;  %v453_v46 = vld [vmem:[%s791_s4 + $0x10] sm:$0xff] }
 0x104   :  { %355 = vadd.xlane.f32.xlu1 %v345_v48  ;;  %v348_v49 = vadd.f32 %v554_v36, %v524_v47  ;;  %v451_v36 = vld [vmem:[%s791_s4] sm:$0xff] }
 0x108   :  { %357 = vadd.xlane.f32.xlu1 %v348_v49 }
 0x189   :  { %v352_v50 = vpop.xlane.xlu0 %351 }
 0x18a   :  { %v359_v51 = vmul.f32 0.0078125, %v352_v50 }
 0x18c   :  { %v719_v52 = vsub.f32 %v337_v39, %v359_v51  ;;  %v454_v51 = vld [vmem:[%s791_s4 + $0x18] sm:$0xff] }
 0x18d   :  { %v354_v53 = vpop.xlane.xlu0 %353 }
 0x18e   :  { %v360_v54 = vmul.f32 0.0078125, %v354_v53  ;;  %v367_v55 = vmul.f32 %v719_v52, %v719_v52 }
 0x190   :  { %v723_v56 = vsub.f32 %v340_v41, %v360_v54  ;;  %371 = vadd.xlane.f32.xlu0 %v367_v55  ;;  %v452_v41 = vld [vmem:[%s791_s4 + $0x8] sm:$0xff] }
 0x191   :  { %v356_v57 = vpop.xlane.xlu1 %355 }
 0x192   :  { %v361_v58 = vmul.f32 0.0078125, %v356_v57  ;;  %v368_v59 = vmul.f32 %v723_v56, %v723_v56 }
 0x194   :  { %v727_v60 = vsub.f32 %v345_v48, %v361_v58  ;;  %373 = vadd.xlane.f32.xlu1 %v368_v59 }
 0x195   :  { %v358_v61 = vpop.xlane.xlu1 %357 }
 0x196   :  { %v362_v62 = vmul.f32 0.0078125, %v358_v61  ;;  %v369_v63 = vmul.f32 %v727_v60, %v727_v60 }
 0x198   :  { %v731_v0 = vsub.f32 %v348_v49, %v362_v62  ;;  %375 = vadd.xlane.f32.xlu0 %v369_v63 }
 0x19a   :  { %v370_v1 = vmul.f32 %v731_v0, %v731_v0 }
 0x19c   :  { %377 = vadd.xlane.f32.xlu1 %v370_v1 }
 0x1ad   :  { %429 = vperm.xlu1 %557, %v423_v3  }
 0x1b1   :  { %434 = vperm.xlu1 %557, %v424_v4  }
 0x1b5   :  { %439 = vperm.xlu1 %557, %v425_v5  }
 0x21d   :  { %v372_v6 = vpop.xlane.xlu0 %371 }
 0x21e   :  { %v379_v7 = vmul.f32 0.0078125, %v372_v6 }
 0x220   :  { %v383_v8 = vadd.f32 1e-05, %v379_v7 }
 0x221   :  { %v374_v9 = vpop.xlane.xlu1 %373 }
 0x222   :  { %590 = vrsqrt.f32 %v383_v8  ;;  %v380_v10 = vmul.f32 0.0078125, %v374_v9 }
 0x224   :  { %v384_v11 = vadd.f32 1e-05, %v380_v10 }
 0x225   :  { %v376_v12 = vpop.xlane.xlu0 %375 }
 0x226   :  { %592 = vrsqrt.f32 %v384_v11  ;;  %v381_v13 = vmul.f32 0.0078125, %v376_v12 }
 0x228   :  { %v385_v14 = vadd.f32 1e-05, %v381_v13 }
 0x229   :  { %v378_v15 = vpop.xlane.xlu1 %377 }
 0x22a   :  { %594 = vrsqrt.f32 %v385_v14  ;;  %v382_v16 = vmul.f32 0.0078125, %v378_v15 }
 0x22c   :  { %v591_v18 = vpop.eup %590  ;;  %v386_v19 = vadd.f32 1e-05, %v382_v16 }
 0x22d   :  { %v395_v20 = vmul.f32 %v591_v18, %v391_v17  ;;  %v430_v31 = vpop.permute.xlu1 %429 }
 0x22e   :  { %596 = vrsqrt.f32 %v386_v19 }
 0x22f   :  { %401 = vperm.xlu0 %556, %v395_v20  }
 0x230   :  { %v593_v22 = vpop.eup %592 }
 0x231   :  { %v396_v23 = vmul.f32 %v593_v22, %v392_v21  ;;  %v435_v32 = vpop.permute.xlu1 %434 }
 0x233   :  { %406 = vperm.xlu1 %557, %v396_v23  }
 0x234   :  { %v595_v25 = vpop.eup %594 }
 0x235   :  { %v397_v26 = vmul.f32 %v595_v25, %v393_v24  ;;  %v440_v33 = vpop.permute.xlu1 %439 }
 0x237   :  { %411 = vperm.xlu1 %557, %v397_v26  }
 0x238   :  { %v597_v28 = vpop.eup %596 }
 0x239   :  { %v398_v29 = vmul.f32 %v597_v28, %v394_v27 }
 0x23b   :  { %416 = vperm.xlu1 %557, %v398_v29  }
 0x23f   :  { %444 = vperm.xlu1 %557, %v426_v30  }
 0x2ae   :  { %v402_v34 = vpop.permute.xlu0 %401 }
 0x2af   :  { %v419_v35 = vmul.f32 %v402_v34, %v719_v52 }
 0x2b1   :  { %v447_v37 = vadd.f32 %v430_v31, %v419_v35 }
 0x2b2   :  { %v407_v38 = vpop.permute.xlu1 %406 }
 0x2b3   :  { %v455_v39 = vadd.f32 %v451_v36, %v447_v37  ;;  %v420_v40 = vmul.f32 %v407_v38, %v723_v56 }
 0x2b5   :  { %459 = vst [vmem:[%s792_s5] sm:$0xff] %v455_v39  ;;  %v448_v42 = vadd.f32 %v435_v32, %v420_v40 }
 0x2b6   :  { %v412_v43 = vpop.permute.xlu1 %411 }
 0x2b7   :  { %v456_v44 = vadd.f32 %v452_v41, %v448_v42  ;;  %v421_v45 = vmul.f32 %v412_v43, %v727_v60 }
 0x2b9   :  { %460 = vst [vmem:[%s792_s5 + $0x8] sm:$0xff] %v456_v44  ;;  %v449_v47 = vadd.f32 %v440_v33, %v421_v45 }
 0x2ba   :  { %v417_v48 = vpop.permute.xlu1 %416 }
 0x2bb   :  { %v457_v49 = vadd.f32 %v453_v46, %v449_v47  ;;  %v422_v50 = vmul.f32 %v417_v48, %v731_v0 }
 0x2bd   :  { %461 = vst [vmem:[%s792_s5 + $0x10] sm:$0xff] %v457_v49 }
 0x2be   :  { %v445_v52 = vpop.permute.xlu1 %444 }
 0x2bf   :  { %v450_v53 = vadd.f32 %v445_v52, %v422_v50 }
 0x2c1   :  { %v458_v54 = vadd.f32 %v454_v51, %v450_v53 }
 0x2c3   :  { %462 = vst [vmem:[%s792_s5 + $0x18] sm:$0xff] %v458_v54 }

// kernel: generator_forward.25
= control target key start
LH: loop header
LB: loop body
LE: loop exit
PB: predicated region body
PF: predicated region fallthrough
CT: control target
= control target key end

     0   :  { %v489_v1 = vmov 0.0   ;;  %vm490_vm0 = vmmov 0   ;;  %v491_v48 = vmov 0   ;;  %s616_s1 = inlined_call_operand.vmem [shape: bf16[384,128], index: 1, kind: input, shape index: {}]   ;;  %s617_s0 = inlined_call_operand.vmem [shape: bf16[16,384], index: 0, kind: input, shape index: {}]   ;;  %s618_s3 = inlined_call_operand.vmem [shape: f32[16,1], index: 3, kind: input, shape index: {}]   ;;  %s619_s2 = inlined_call_operand.vmem [shape: f32[16,1], index: 2, kind: input, shape index: {}]   ;;  %s620_s4 = inlined_call_operand.vmem [shape: f32[16,128], index: 4, kind: output, shape index: {}]  }
   0x1   :  { %v457_v0 = vld [vmem:[%s616_s1 + $0x40] sm:$0xff]   ;;  %432 = vmatprep.subr.bf16.mxu1 %v489_v1  ;;  %448 = vmatprep.mubr.msk.bf16.mxu1 %vm490_vm0, %v489_v1  ;;  %v460_v4 = vld [vmem:[%s616_s1 + $0x48] sm:$0xff]   ;;  %v463_v7 = vld [vmem:[%s616_s1 + $0x50] sm:$0xff]  }
   0x2   :  { %v458_v2 = vld [vmem:[%s616_s1] sm:$0xff]   ;;  %401 = vmatprep.subr.bf16.mxu0 %v457_v0  ;;  %v461_v5 = vld [vmem:[%s616_s1 + $0x8] sm:$0xff]   ;;  %v464_v8 = vld [vmem:[%s616_s1 + $0x10] sm:$0xff]   ;;  %456 = vset.pattern.permute.xlu1 %v491_v48 }
   0x3   :  { %v459_v3 = vld [vmem:[%s616_s1 + $0x80] sm:$0xff]   ;;  %402 = vmatpush3.bf16.msra.mxu0 %v458_v2  ;;  %v462_v6 = vld [vmem:[%s616_s1 + $0x88] sm:$0xff]   ;;  %v465_v9 = vld [vmem:[%s616_s1 + $0x90] sm:$0xff]   ;;  %455 = vset.pattern.permute.xlu0 %v491_v48 }
   0x4   :  { %433 = vmatpush3.bf16.msra.mxu1 %v459_v3  ;;  %403 = vmatprep.subr.bf16.mxu0 %v460_v4  ;;  %v466_v10 = vld [vmem:[%s616_s1 + $0x58] sm:$0xff]   ;;  %v469_v13 = vld [vmem:[%s616_s1 + $0x60] sm:$0xff]   ;;  %v472_v16 = vld [vmem:[%s616_s1 + $0x68] sm:$0xff]  }
   0x5   :  { %434 = vmatprep.subr.bf16.mxu1 %v489_v1  ;;  %v467_v11 = vld [vmem:[%s616_s1 + $0x18] sm:$0xff]   ;;  %v470_v14 = vld [vmem:[%s616_s1 + $0x20] sm:$0xff]   ;;  %v473_v17 = vld [vmem:[%s616_s1 + $0x28] sm:$0xff]  }
   0x6   :  { %v468_v12 = vld [vmem:[%s616_s1 + $0x98] sm:$0xff]   ;;  %v471_v15 = vld [vmem:[%s616_s1 + $0xa0] sm:$0xff]   ;;  %v474_v18 = vld [vmem:[%s616_s1 + $0xa8] sm:$0xff]  }
   0x7   :  { %404 = vmatpush3.bf16.msra.mxu0 %v461_v5  ;;  %v475_v19 = vld [vmem:[%s616_s1 + $0x70] sm:$0xff]   ;;  %v478_v22 = vld [vmem:[%s616_s1 + $0x78] sm:$0xff]   ;;  %v481_v26 = vld [vmem:[%s617_s0] ss:$12 sps:$4 sm:$0xff]  }
   0x8   :  { %435 = vmatpush3.bf16.msra.mxu1 %v462_v6  ;;  %405 = vmatprep.subr.bf16.mxu0 %v463_v7  ;;  %v476_v20 = vld [vmem:[%s616_s1 + $0x30] sm:$0xff]   ;;  %v479_v24 = vld [vmem:[%s616_s1 + $0x38] sm:$0xff]   ;;  %v348_v49 = vld [vmem:[%s618_s3] sm:$0xff] }
   0x9   :  { %436 = vmatprep.subr.bf16.mxu1 %v489_v1  ;;  %v477_v21 = vld [vmem:[%s616_s1 + $0xb0] sm:$0xff]   ;;  %v480_v25 = vld [vmem:[%s616_s1 + $0xb8] sm:$0xff]   ;;  %v332_v56 = vld [vmem:[%s619_s2] sm:$0xff] }
   0xa   :  { %v483_v23 = vld [vmem:[%s617_s0 + $0x4] ss:$12 sps:$4 sm:$0xff]   ;;  %v484_v27 = vld [vmem:[%s617_s0 + $0x8] ss:$12 sps:$4 sm:$0xff]  }
   0xb   :  { %406 = vmatpush3.bf16.msra.mxu0 %v464_v8  ;;  %262 = vmatprep.mubr.bf16.mxu0 %v483_v23  ;;  %v333_v59 = vld [vmem:[%s619_s2 + $0x8] sm:$0xff] }
   0xc   :  { %437 = vmatpush3.bf16.msra.mxu1 %v465_v9  ;;  %407 = vmatprep.subr.bf16.mxu0 %v466_v10  ;;  %v349_v62 = vld [vmem:[%s618_s3 + $0x8] sm:$0xff] }
   0xd   :  { %438 = vmatprep.subr.bf16.mxu1 %v489_v1 }
   0xf   :  { %408 = vmatpush3.bf16.msra.mxu0 %v467_v11 }
  0x10   :  { %439 = vmatpush3.bf16.msra.mxu1 %v468_v12  ;;  %409 = vmatprep.subr.bf16.mxu0 %v469_v13 }
  0x11   :  { %440 = vmatprep.subr.bf16.mxu1 %v489_v1 }
  0x13   :  { %410 = vmatpush3.bf16.msra.mxu0 %v470_v14 }
  0x14   :  { %441 = vmatpush3.bf16.msra.mxu1 %v471_v15  ;;  %411 = vmatprep.subr.bf16.mxu0 %v472_v16 }
  0x15   :  { %442 = vmatprep.subr.bf16.mxu1 %v489_v1 }
  0x17   :  { %412 = vmatpush3.bf16.msra.mxu0 %v473_v17 }
  0x18   :  { %443 = vmatpush3.bf16.msra.mxu1 %v474_v18  ;;  %413 = vmatprep.subr.bf16.mxu0 %v475_v19 }
  0x19   :  { %444 = vmatprep.subr.bf16.mxu1 %v489_v1 }
  0x1b   :  { %414 = vmatpush3.bf16.msra.mxu0 %v476_v20 }
  0x1c   :  { %445 = vmatpush3.bf16.msra.mxu1 %v477_v21  ;;  %415 = vmatprep.subr.bf16.mxu0 %v478_v22 }
  0x1d   :  { %446 = vmatprep.subr.bf16.mxu1 %v489_v1 }
  0x1f   :  { %416 = vmatpush3.bf16.msra.mxu0 %v479_v24 }
  0x20   :  { %447 = vmatpush3.bf16.msra.mxu1 %v480_v25 }
  0x22   :  { %263 = vmatmul.mubr.bf16.vlgmr.msra.gmra.mrb[0].mxu0 %v481_v26 }
  0x23   :  { %449 = vmatmul.mubr.bf16.vlgmr.msra.gmra.mrb[0].mxu1 %v484_v27 }
  0xf5   :  { %v417_v28 = vpop.f32.mrb[0].mxu0 }
  0xf6   :  { %v305_v29 = vpop.f32.mrb[0].mxu1  ;;  %v418_v30 = vpop.f32.mrb[1].mxu0 }
  0xf7   :  { %v419_v31 = vadd.f32 %v418_v30, %v417_v28  ;;  %v450_v32 = vpop.f32.mrb[1].mxu1  ;;  %v420_v33 = vpop.f32.mrb[2].mxu0 }
  0xf8   :  { %v308_v34 = vpop.f32.mrb[2].mxu1  ;;  %v421_v35 = vpop.f32.mrb[3].mxu0 }
  0xf9   :  { %v422_v36 = vadd.f32 %v421_v35, %v420_v33  ;;  %v451_v37 = vpop.f32.mrb[3].mxu1  ;;  %v306_v38 = vadd.f32 %v419_v31, %v305_v29 }
  0xfb   :  { %312 = vadd.xlane.f32.xlu0 %v306_v38  ;;  %v309_v39 = vadd.f32 %v422_v36, %v308_v34 }
  0xff   :  { %314 = vadd.xlane.f32.xlu0 %v309_v39 }
 0x188   :  { %v313_v40 = vpop.xlane.xlu0 %312 }
 0x189   :  { %v316_v41 = vmul.f32 0.0078125, %v313_v40 }
 0x18b   :  { %v318_v42 = vsub.f32 %v306_v38, %v316_v41 }
 0x18c   :  { %v315_v43 = vpop.xlane.xlu0 %314 }
 0x18d   :  { %v317_v44 = vmul.f32 0.0078125, %v315_v43  ;;  %v320_v45 = vmul.f32 %v318_v42, %v318_v42 }
 0x18f   :  { %v319_v46 = vsub.f32 %v309_v39, %v317_v44  ;;  %322 = vadd.xlane.f32.xlu1 %v320_v45 }
 0x191   :  { %v321_v47 = vmul.f32 %v319_v46, %v319_v46 }
 0x193   :  { %324 = vadd.xlane.f32.xlu1 %v321_v47 }
 0x1a4   :  { %352 = vperm.xlu1 %456, %v348_v49  }
 0x21c   :  { %v323_v50 = vpop.xlane.xlu1 %322 }
 0x21d   :  { %v326_v51 = vmul.f32 0.0078125, %v323_v50 }
 0x21f   :  { %v328_v52 = vadd.f32 1e-05, %v326_v51 }
 0x220   :  { %v325_v53 = vpop.xlane.xlu1 %324 }
 0x221   :  { %485 = vrsqrt.f32 %v328_v52  ;;  %v327_v54 = vmul.f32 0.0078125, %v325_v53 }
 0x223   :  { %v329_v55 = vadd.f32 1e-05, %v327_v54 }
 0x224   :  { %v353_v63 = vpop.permute.xlu1 %352 }
 0x225   :  { %487 = vrsqrt.f32 %v329_v55 }
 0x22b   :  { %v486_v57 = vpop.eup %485 }
 0x22c   :  { %v334_v58 = vmul.f32 %v486_v57, %v332_v56 }
 0x22e   :  { %338 = vperm.xlu0 %455, %v334_v58  }
 0x22f   :  { %v488_v60 = vpop.eup %487 }
 0x230   :  { %v335_v61 = vmul.f32 %v488_v60, %v333_v59 }
 0x232   :  { %343 = vperm.xlu1 %456, %v335_v61  }
 0x236   :  { %357 = vperm.xlu1 %456, %v349_v62  }
 0x2ad   :  { %v339_v0 = vpop.permute.xlu0 %338 }
 0x2ae   :  { %v346_v1 = vmul.f32 %v339_v0, %v318_v42 }
 0x2b0   :  { %v360_v2 = vadd.f32 %v353_v63, %v346_v1 }
 0x2b1   :  { %v344_v3 = vpop.permute.xlu1 %343 }
 0x2b2   :  { %vm362_vm1 = vcmp.ge.f32.partialorder %v360_v2, 0.0  ;;  %v364_v4 = vmul.f32 0.01, %v360_v2  ;;  %v347_v6 = vmul.f32 %v344_v3, %v319_v46 }
 0x2b4   :  { %v366_v5 = vsel %vm362_vm1, %v360_v2, %v364_v4 }
 0x2b5   :  { %v358_v7 = vpop.permute.xlu1 %357  ;;  %368 = vst [vmem:[%s620_s4] sm:$0xff] %v366_v5 }
 0x2b6   :  { %v361_v8 = vadd.f32 %v358_v7, %v347_v6 }
 0x2b8   :  { %vm363_vm2 = vcmp.ge.f32.partialorder %v361_v8, 0.0  ;;  %v365_v9 = vmul.f32 0.01, %v361_v8 }
 0x2ba   :  { %v367_v10 = vsel %vm363_vm2, %v361_v8, %v365_v9 }
 0x2bb   :  { %369 = vst [vmem:[%s620_s4 + $0x8] sm:$0xff] %v367_v10 }

// kernel: generator_forward.26
= control target key start
LH: loop header
LB: loop body
LE: loop exit
PB: predicated region body
PF: predicated region fallthrough
CT: control target
= control target key end

     0   :  { %s962_s1 = inlined_call_operand.vmem [shape: bf16[256,512], index: 1, kind: input, shape index: {}]   ;;  %s963_s0 = inlined_call_operand.vmem [shape: bf16[8,256], index: 0, kind: input, shape index: {}]   ;;  %s964_s2 = inlined_call_operand.vmem [shape: f32[8,1], index: 2, kind: input, shape index: {}]   ;;  %s965_s3 = inlined_call_operand.vmem [shape: f32[8,1], index: 3, kind: input, shape index: {}]   ;;  %s966_s4 = inlined_call_operand.vmem [shape: f32[8,512], index: 4, kind: output, shape index: {}]  }
   0x1   :  { %v623_v0 = vld [vmem:[%s962_s1 + $0x4] ss:$16 sps:$4 sm:$0xff]   ;;  %v625_v1 = vld [vmem:[%s962_s1 + $0xc] ss:$16 sps:$4 sm:$0xff]   ;;  %v627_v2 = vld [vmem:[%s962_s1] ss:$16 sps:$4 sm:$0xff]  }
   0x2   :  { %409 = vmatprep.subr.bf16.mxu0 %v623_v0  ;;  %v628_v3 = vld [vmem:[%s962_s1 + $0x8] ss:$16 sps:$4 sm:$0xff]   ;;  %450 = vmatprep.subr.bf16.mxu1 %v625_v1  ;;  %v629_v4 = vld [vmem:[%s962_s1 + $0x24] ss:$16 sps:$4 sm:$0xff]   ;;  %v631_v5 = vld [vmem:[%s962_s1 + $0x2c] ss:$16 sps:$4 sm:$0xff]  }
   0x3   :  { %410 = vmatpush1.bf16.msra.mxu0 %v627_v2  ;;  %451 = vmatpush1.bf16.msra.mxu1 %v628_v3  ;;  %v633_v6 = vld [vmem:[%s962_s1 + $0x20] ss:$16 sps:$4 sm:$0xff]   ;;  %v634_v7 = vld [vmem:[%s962_s1 + $0x28] ss:$16 sps:$4 sm:$0xff]   ;;  %v635_v8 = vld [vmem:[%s962_s1 + $0x44] ss:$16 sps:$4 sm:$0xff]  }
   0x4   :  { %411 = vmatprep.subr.bf16.mxu0 %v629_v4  ;;  %452 = vmatprep.subr.bf16.mxu1 %v631_v5  ;;  %v637_v9 = vld [vmem:[%s962_s1 + $0x4c] ss:$16 sps:$4 sm:$0xff]   ;;  %v639_v10 = vld [vmem:[%s962_s1 + $0x40] ss:$16 sps:$4 sm:$0xff]   ;;  %v640_v11 = vld [vmem:[%s962_s1 + $0x48] ss:$16 sps:$4 sm:$0xff]  }
   0x5   :  { %v641_v12 = vld [vmem:[%s962_s1 + $0x64] ss:$16 sps:$4 sm:$0xff]   ;;  %v643_v13 = vld [vmem:[%s962_s1 + $0x6c] ss:$16 sps:$4 sm:$0xff]   ;;  %v645_v14 = vld [vmem:[%s962_s1 + $0x60] ss:$16 sps:$4 sm:$0xff]  }
   0x6   :  { %v646_v15 = vld [vmem:[%s962_s1 + $0x68] ss:$16 sps:$4 sm:$0xff]   ;;  %v647_v16 = vld [vmem:[%s962_s1 + $0x84] ss:$16 sps:$4 sm:$0xff]   ;;  %v649_v17 = vld [vmem:[%s962_s1 + $0x8c] ss:$16 sps:$4 sm:$0xff]  }
   0x7   :  { %412 = vmatpush1.bf16.msra.mxu0 %v633_v6  ;;  %453 = vmatpush1.bf16.msra.mxu1 %v634_v7  ;;  %v651_v18 = vld [vmem:[%s962_s1 + $0x80] ss:$16 sps:$4 sm:$0xff]   ;;  %v652_v19 = vld [vmem:[%s962_s1 + $0x88] ss:$16 sps:$4 sm:$0xff]   ;;  %v653_v20 = vld [vmem:[%s962_s1 + $0xa4] ss:$16 sps:$4 sm:$0xff]  }
   0x8   :  { %413 = vmatprep.subr.bf16.mxu0 %v635_v8  ;;  %454 = vmatprep.subr.bf16.mxu1 %v637_v9  ;;  %v655_v21 = vld [vmem:[%s962_s1 + $0xac] ss:$16 sps:$4 sm:$0xff]   ;;  %v657_v22 = vld [vmem:[%s962_s1 + $0xa0] ss:$16 sps:$4 sm:$0xff]   ;;  %v658_v23 = vld [vmem:[%s962_s1 + $0xa8] ss:$16 sps:$4 sm:$0xff]  }
   0x9   :  { %v659_v24 = vld [vmem:[%s962_s1 + $0xc4] ss:$16 sps:$4 sm:$0xff]   ;;  %v661_v25 = vld [vmem:[%s962_s1 + $0xcc] ss:$16 sps:$4 sm:$0xff]   ;;  %v663_v26 = vld [vmem:[%s962_s1 + $0xc0] ss:$16 sps:$4 sm:$0xff]  }
   0xa   :  { %v664_v27 = vld [vmem:[%s962_s1 + $0xc8] ss:$16 sps:$4 sm:$0xff]   ;;  %v665_v28 = vld [vmem:[%s962_s1 + $0xe4] ss:$16 sps:$4 sm:$0xff]   ;;  %v667_v29 = vld [vmem:[%s962_s1 + $0xec] ss:$16 sps:$4 sm:$0xff]  }
   0xb   :  { %414 = vmatpush1.bf16.msra.mxu0 %v639_v10  ;;  %455 = vmatpush1.bf16.msra.mxu1 %v640_v11  ;;  %v669_v30 = vld [vmem:[%s962_s1 + $0xe0] ss:$16 sps:$4 sm:$0xff]   ;;  %v670_v31 = vld [vmem:[%s962_s1 + $0xe8] ss:$16 sps:$4 sm:$0xff]   ;;  %v671_v32 = vld [vmem:[%s962_s1 + $0x104] ss:$16 sps:$4 sm:$0xff]  }
   0xc   :  { %415 = vmatprep.subr.bf16.mxu0 %v641_v12  ;;  %456 = vmatprep.subr.bf16.mxu1 %v643_v13  ;;  %v673_v33 = vld [vmem:[%s962_s1 + $0x10c] ss:$16 sps:$4 sm:$0xff]   ;;  %v675_v34 = vld [vmem:[%s962_s1 + $0x100] ss:$16 sps:$4 sm:$0xff]   ;;  %v676_v35 = vld [vmem:[%s962_s1 + $0x108] ss:$16 sps:$4 sm:$0xff]  }
   0xd   :  { %v677_v36 = vld [vmem:[%s962_s1 + $0x124] ss:$16 sps:$4 sm:$0xff]   ;;  %v679_v37 = vld [vmem:[%s962_s1 + $0x12c] ss:$16 sps:$4 sm:$0xff]   ;;  %v681_v38 = vld [vmem:[%s962_s1 + $0x120] ss:$16 sps:$4 sm:$0xff]  }
   0xe   :  { %v682_v39 = vld [vmem:[%s962_s1 + $0x128] ss:$16 sps:$4 sm:$0xff]   ;;  %v683_v40 = vld [vmem:[%s962_s1 + $0x144] ss:$16 sps:$4 sm:$0xff]   ;;  %v685_v41 = vld [vmem:[%s962_s1 + $0x14c] ss:$16 sps:$4 sm:$0xff]  }
   0xf   :  { %416 = vmatpush1.bf16.msra.mxu0 %v645_v14  ;;  %457 = vmatpush1.bf16.msra.mxu1 %v646_v15  ;;  %v687_v42 = vld [vmem:[%s962_s1 + $0x140] ss:$16 sps:$4 sm:$0xff]   ;;  %v688_v43 = vld [vmem:[%s962_s1 + $0x148] ss:$16 sps:$4 sm:$0xff]   ;;  %v689_v44 = vld [vmem:[%s962_s1 + $0x164] ss:$16 sps:$4 sm:$0xff]  }
  0x10   :  { %417 = vmatprep.subr.bf16.mxu0 %v647_v16  ;;  %458 = vmatprep.subr.bf16.mxu1 %v649_v17  ;;  %v691_v45 = vld [vmem:[%s962_s1 + $0x16c] ss:$16 sps:$4 sm:$0xff]   ;;  %v17_v46 = vld [vmem:[%s963_s0] sm:$0xff]  ;;  %v694_v49 = vld [vmem:[%s962_s1 + $0x168] ss:$16 sps:$4 sm:$0xff]  }
  0x11   :  { %v555_v47 = vcombine.high %v17_v46, %v17_v46  ;;  %v693_v48 = vld [vmem:[%s962_s1 + $0x160] ss:$16 sps:$4 sm:$0xff]   ;;  %v695_v50 = vld [vmem:[%s962_s1 + $0x184] ss:$16 sps:$4 sm:$0xff]   ;;  %v697_v51 = vld [vmem:[%s962_s1 + $0x18c] ss:$16 sps:$4 sm:$0xff]   ;;  %v554_v2 = vcombine.low %v17_v46, %v17_v46 }
  0x12   :  { %v699_v52 = vld [vmem:[%s962_s1 + $0x180] ss:$16 sps:$4 sm:$0xff]   ;;  %v700_v53 = vld [vmem:[%s962_s1 + $0x188] ss:$16 sps:$4 sm:$0xff]   ;;  %v701_v54 = vld [vmem:[%s962_s1 + $0x1a4] ss:$16 sps:$4 sm:$0xff]  }
  0x13   :  { %418 = vmatpush1.bf16.msra.mxu0 %v651_v18  ;;  %459 = vmatpush1.bf16.msra.mxu1 %v652_v19  ;;  %v703_v55 = vld [vmem:[%s962_s1 + $0x1ac] ss:$16 sps:$4 sm:$0xff]   ;;  %v705_v56 = vld [vmem:[%s962_s1 + $0x1a0] ss:$16 sps:$4 sm:$0xff]   ;;  %v706_v57 = vld [vmem:[%s962_s1 + $0x1a8] ss:$16 sps:$4 sm:$0xff]  }
  0x14   :  { %419 = vmatprep.subr.bf16.mxu0 %v653_v20  ;;  %460 = vmatprep.subr.bf16.mxu1 %v655_v21  ;;  %v707_v58 = vld [vmem:[%s962_s1 + $0x1c4] ss:$16 sps:$4 sm:$0xff]   ;;  %v709_v59 = vld [vmem:[%s962_s1 + $0x1cc] ss:$16 sps:$4 sm:$0xff]   ;;  %v711_v60 = vld [vmem:[%s962_s1 + $0x1c0] ss:$16 sps:$4 sm:$0xff]  }
  0x15   :  { %441 = vmatprep.mubr.bf16.mxu0 %v555_v47  ;;  %482 = vmatprep.mubr.bf16.mxu1 %v555_v47  ;;  %v712_v61 = vld [vmem:[%s962_s1 + $0x1c8] ss:$16 sps:$4 sm:$0xff]   ;;  %v713_v62 = vld [vmem:[%s962_s1 + $0x1e4] ss:$16 sps:$4 sm:$0xff]   ;;  %v715_v63 = vld [vmem:[%s962_s1 + $0x1ec] ss:$16 sps:$4 sm:$0xff]  }
  0x16   :  { %v717_v0 = vld [vmem:[%s962_s1 + $0x1e0] ss:$16 sps:$4 sm:$0xff]   ;;  %v718_v1 = vld [vmem:[%s962_s1 + $0x1e8] ss:$16 sps:$4 sm:$0xff]  }
  0x17   :  { %420 = vmatpush1.bf16.msra.mxu0 %v657_v22  ;;  %461 = vmatpush1.bf16.msra.mxu1 %v658_v23 }
  0x18   :  { %421 = vmatprep.subr.bf16.mxu0 %v659_v24  ;;  %462 = vmatprep.subr.bf16.mxu1 %v661_v25 }
  0x1b   :  { %422 = vmatpush1.bf16.msra.mxu0 %v663_v26  ;;  %463 = vmatpush1.bf16.msra.mxu1 %v664_v27  ;;  %v723_v27 = vmov 0  }
  0x1c   :  { %423 = vmatprep.subr.bf16.mxu0 %v665_v28  ;;  %464 = vmatprep.subr.bf16.mxu1 %v667_v29 }
  0x1d   :  { %621 = vset.pattern.permute.xlu1 %v723_v27  ;;  %622 = vset.pattern.permute.xlu0 %v723_v27 }
  0x1f   :  { %424 = vmatpush1.bf16.msra.mxu0 %v669_v30  ;;  %465 = vmatpush1.bf16.msra.mxu1 %v670_v31  ;;  %v513_v31 = vld [vmem:[%s964_s2] sm:$0xff] }
  0x20   :  { %425 = vmatprep.subr.bf16.mxu0 %v671_v32  ;;  %466 = vmatprep.subr.bf16.mxu1 %v673_v33 }
  0x23   :  { %426 = vmatpush1.bf16.msra.mxu0 %v675_v34  ;;  %467 = vmatpush1.bf16.msra.mxu1 %v676_v35  ;;  %v524_v34 = vld [vmem:[%s965_s3] sm:$0xff] }
  0x24   :  { %427 = vmatprep.subr.bf16.mxu0 %v677_v36  ;;  %468 = vmatprep.subr.bf16.mxu1 %v679_v37 }
  0x27   :  { %428 = vmatpush1.bf16.msra.mxu0 %v681_v38  ;;  %469 = vmatpush1.bf16.msra.mxu1 %v682_v39 }
  0x28   :  { %429 = vmatprep.subr.bf16.mxu0 %v683_v40  ;;  %470 = vmatprep.subr.bf16.mxu1 %v685_v41 }
  0x2b   :  { %430 = vmatpush1.bf16.msra.mxu0 %v687_v42  ;;  %471 = vmatpush1.bf16.msra.mxu1 %v688_v43 }
  0x2c   :  { %431 = vmatprep.subr.bf16.mxu0 %v689_v44  ;;  %472 = vmatprep.subr.bf16.mxu1 %v691_v45 }
  0x2f   :  { %432 = vmatpush1.bf16.msra.mxu0 %v693_v48  ;;  %473 = vmatpush1.bf16.msra.mxu1 %v694_v49 }
  0x30   :  { %433 = vmatprep.subr.bf16.mxu0 %v695_v50  ;;  %474 = vmatprep.subr.bf16.mxu1 %v697_v51 }
  0x33   :  { %434 = vmatpush1.bf16.msra.mxu0 %v699_v52  ;;  %475 = vmatpush1.bf16.msra.mxu1 %v700_v53 }
  0x34   :  { %435 = vmatprep.subr.bf16.mxu0 %v701_v54  ;;  %476 = vmatprep.subr.bf16.mxu1 %v703_v55 }
  0x37   :  { %436 = vmatpush1.bf16.msra.mxu0 %v705_v56  ;;  %477 = vmatpush1.bf16.msra.mxu1 %v706_v57 }
  0x38   :  { %437 = vmatprep.subr.bf16.mxu0 %v707_v58  ;;  %478 = vmatprep.subr.bf16.mxu1 %v709_v59 }
  0x3b   :  { %438 = vmatpush1.bf16.msra.mxu0 %v711_v60  ;;  %479 = vmatpush1.bf16.msra.mxu1 %v712_v61 }
  0x3c   :  { %439 = vmatprep.subr.bf16.mxu0 %v713_v62  ;;  %480 = vmatprep.subr.bf16.mxu1 %v715_v63 }
  0x3f   :  { %440 = vmatpush1.bf16.msra.mxu0 %v717_v0  ;;  %481 = vmatpush1.bf16.msra.mxu1 %v718_v1 }
  0x42   :  { %442 = vmatmul.mubr.bf16.vlgmr.msra.gmra.mrb[0].mxu0 %v554_v2  ;;  %483 = vmatmul.mubr.bf16.vlgmr.msra.gmra.mrb[0].mxu1 %v554_v2 }
 0x115   :  { %v443_v3 = vpop.f32.mrb[0].mxu0  ;;  %v484_v4 = vpop.f32.mrb[0].mxu1 }
 0x116   :  { %v445_v5 = vpop.f32.mrb[1].mxu0  ;;  %v486_v6 = vpop.f32.mrb[1].mxu1 }
 0x117   :  { %v491_v7 = vadd.f32 %v445_v5, %v443_v3  ;;  %v447_v8 = vpop.f32.mrb[2].mxu0  ;;  %v488_v9 = vpop.f32.mrb[2].mxu1 }
 0x118   :  { %v448_v10 = vpop.f32.mrb[3].mxu0  ;;  %v489_v11 = vpop.f32.mrb[3].mxu1 }
 0x119   :  { %v492_v12 = vadd.f32 %v491_v7, %v484_v4 }
 0x11b   :  { %v493_v13 = vadd.f32 %v492_v12, %v486_v6 }
 0x11d   :  { %494 = vadd.xlane.f32.xlu0 %v493_v13 }
 0x1aa   :  { %v495_v14 = vpop.xlane.xlu0 %494 }
 0x1ab   :  { %v496_v15 = vmul.f32 0.001953125, %v495_v14 }
 0x1ad   :  { %v497_v16 = vsub.f32 %v443_v3, %v496_v15  ;;  %v498_v17 = vsub.f32 %v445_v5, %v496_v15  ;;  %v499_v18 = vsub.f32 %v484_v4, %v496_v15  ;;  %v500_v19 = vsub.f32 %v486_v6, %v496_v15 }
 0x1af   :  { %v501_v20 = vmul.f32 %v497_v16, %v497_v16  ;;  %v502_v21 = vmul.f32 %v498_v17, %v498_v17  ;;  %v503_v22 = vmul.f32 %v499_v18, %v499_v18  ;;  %v504_v24 = vmul.f32 %v500_v19, %v500_v19 }
 0x1b1   :  { %v505_v23 = vadd.f32 %v502_v21, %v501_v20 }
 0x1b3   :  { %v506_v25 = vadd.f32 %v505_v23, %v503_v22 }
 0x1b5   :  { %v507_v26 = vadd.f32 %v506_v25, %v504_v24 }
 0x1b7   :  { %508 = vadd.xlane.f32.xlu0 %v507_v26 }
 0x244   :  { %v509_v28 = vpop.xlane.xlu0 %508 }
 0x245   :  { %v510_v29 = vmul.f32 0.001953125, %v509_v28 }
 0x247   :  { %v511_v30 = vadd.f32 1e-05, %v510_v29 }
 0x249   :  { %721 = vrsqrt.f32 %v511_v30 }
 0x253   :  { %v722_v32 = vpop.eup %721 }
 0x254   :  { %v514_v33 = vmul.f32 %v722_v32, %v513_v31 }
 0x256   :  { %517 = vperm.xlu1 %621, %v514_v33  }
 0x25a   :  { %527 = vperm.xlu1 %621, %v524_v34  }
 0x2d5   :  { %v518_v35 = vpop.permute.xlu1 %517 }
 0x2d6   :  { %v520_v36 = vmul.f32 %v518_v35, %v497_v16  ;;  %v521_v37 = vmul.f32 %v518_v35, %v498_v17  ;;  %v522_v38 = vmul.f32 %v518_v35, %v499_v18  ;;  %v523_v39 = vmul.f32 %v518_v35, %v500_v19 }
 0x2d9   :  { %v528_v40 = vpop.permute.xlu1 %527 }
 0x2da   :  { %v530_v41 = vadd.f32 %v528_v40, %v520_v36  ;;  %v531_v42 = vadd.f32 %v528_v40, %v521_v37  ;;  %v532_v43 = vadd.f32 %v528_v40, %v522_v38  ;;  %v533_v44 = vadd.f32 %v528_v40, %v523_v39 }
 0x2dc   :  { %vm534_vm0 = vcmp.ge.f32.partialorder %v530_v41, 0.0  ;;  %vm535_vm1 = vcmp.ge.f32.partialorder %v531_v42, 0.0  ;;  %vm536_vm2 = vcmp.ge.f32.partialorder %v532_v43, 0.0  ;;  %vm537_vm3 = vcmp.ge.f32.partialorder %v533_v44, 0.0 }
 0x2dd   :  { %v538_v45 = vmul.f32 0.01, %v530_v41  ;;  %v539_v46 = vmul.f32 0.01, %v531_v42  ;;  %v540_v47 = vmul.f32 0.01, %v532_v43 }
 0x2de   :  { %v541_v48 = vmul.f32 0.01, %v533_v44 }
 0x2df   :  { %v542_v49 = vsel %vm534_vm0, %v530_v41, %v538_v45  ;;  %v543_v50 = vsel %vm535_vm1, %v531_v42, %v539_v46  ;;  %v544_v51 = vsel %vm536_vm2, %v532_v43, %v540_v47 }
 0x2e0   :  { %v545_v52 = vsel %vm537_vm3, %v533_v44, %v541_v48  ;;  %546 = vst [vmem:[%s966_s4] sm:$0xff] %v542_v49  ;;  %547 = vst [vmem:[%s966_s4 + $0x8] sm:$0xff] %v543_v50 }
 0x2e1   :  { %548 = vst [vmem:[%s966_s4 + $0x10] sm:$0xff] %v544_v51  ;;  %549 = vst [vmem:[%s966_s4 + $0x18] sm:$0xff] %v545_v52 }

// kernel: generator_forward.27
= control target key start
LH: loop header
LB: loop body
LE: loop exit
PB: predicated region body
PF: predicated region fallthrough
CT: control target
= control target key end

     0   :  { %v1330_v3 = vmov 0   ;;  %s1775_s1 = inlined_call_operand.vmem [shape: bf16[128,2048], index: 1, kind: input, shape index: {}]   ;;  %s1776_s0 = inlined_call_operand.vmem [shape: bf16[3,128], index: 0, kind: input, shape index: {}]   ;;  %s1777_s2 = inlined_call_operand.vmem [shape: f32[3,2048], index: 2, kind: output, shape index: {}]  }
   0x1   :  { %v13_v0 = vld [vmem:[%s1775_s1] sm:$0xff]  ;;  %v14_v2 = vld [vmem:[%s1775_s1 + $0x8] sm:$0xff]  ;;  %813 = vmatprep.mubr.bf16.mxu0 %v1330_v3  ;;  %854 = vmatprep.mubr.bf16.mxu1 %v1330_v3  ;;  %v15_v63 = vld [vmem:[%s1775_s1 + $0x10] sm:$0xff] }
   0x2   :  { %v21_v1 = vld [vmem:[%s1775_s1 + $0x40] sm:$0xff]  ;;  %v22_v5 = vld [vmem:[%s1775_s1 + $0x48] sm:$0xff] }
   0x3   :  { %v1170_v4 = vcombine.high %v13_v0, %v21_v1  ;;  %v1169_v6 = vcombine.low %v13_v0, %v21_v1  ;;  %v29_v7 = vld [vmem:[%s1775_s1 + $0x80] sm:$0xff]  ;;  %v1172_v9 = vcombine.high %v14_v2, %v22_v5  ;;  %v1171_v10 = vcombine.low %v14_v2, %v22_v5  ;;  %v30_v12 = vld [vmem:[%s1775_s1 + $0x88] sm:$0xff]  ;;  %v23_v0 = vld [vmem:[%s1775_s1 + $0x50] sm:$0xff] }
   0x4   :  { %v37_v8 = vld [vmem:[%s1775_s1 + $0xc0] sm:$0xff]  ;;  %v38_v13 = vld [vmem:[%s1775_s1 + $0xc8] sm:$0xff]  ;;  %v16_v1 = vld [vmem:[%s1775_s1 + $0x18] sm:$0xff] }
   0x5   :  { %v1186_v11 = vcombine.high %v29_v7, %v37_v8  ;;  %v45_v14 = vld [vmem:[%s1775_s1 + $0x100] sm:$0xff]  ;;  %781 = vmatprep.subr.bf16.mxu0 %v1170_v4  ;;  %v1188_v15 = vcombine.high %v30_v12, %v38_v13  ;;  %v46_v17 = vld [vmem:[%s1775_s1 + $0x108] sm:$0xff]  ;;  %822 = vmatprep.subr.bf16.mxu1 %v1172_v9  ;;  %v1185_v19 = vcombine.low %v29_v7, %v37_v8  ;;  %v24_v2 = vld [vmem:[%s1775_s1 + $0x58] sm:$0xff] }
   0x6   :  { %v53_v16 = vld [vmem:[%s1775_s1 + $0x140] sm:$0xff]  ;;  %v54_v18 = vld [vmem:[%s1775_s1 + $0x148] sm:$0xff]  ;;  %782 = vmatpush1.bf16.msra.mxu0 %v1169_v6  ;;  %823 = vmatpush1.bf16.msra.mxu1 %v1171_v10  ;;  %v1187_v20 = vcombine.low %v30_v12, %v38_v13  ;;  %v1174_v6 = vcombine.high %v15_v63, %v23_v0  ;;  %v1176_v7 = vcombine.high %v16_v1, %v24_v2  ;;  %v31_v8 = vld [vmem:[%s1775_s1 + $0x90] sm:$0xff] }
   0x7   :  { %783 = vmatprep.subr.bf16.mxu0 %v1186_v11  ;;  %v1202_v21 = vcombine.high %v45_v14, %v53_v16  ;;  %824 = vmatprep.subr.bf16.mxu1 %v1188_v15  ;;  %v1204_v22 = vcombine.high %v46_v17, %v54_v18  ;;  %v61_v23 = vld [vmem:[%s1775_s1 + $0x180] sm:$0xff]  ;;  %v62_v25 = vld [vmem:[%s1775_s1 + $0x188] sm:$0xff]  ;;  %v1201_v27 = vcombine.low %v45_v14, %v53_v16  ;;  %v39_v9 = vld [vmem:[%s1775_s1 + $0xd0] sm:$0xff] }
   0x8   :  { %v69_v24 = vld [vmem:[%s1775_s1 + $0x1c0] sm:$0xff]  ;;  %v70_v26 = vld [vmem:[%s1775_s1 + $0x1c8] sm:$0xff]  ;;  %v1203_v28 = vcombine.low %v46_v17, %v54_v18  ;;  %v32_v10 = vld [vmem:[%s1775_s1 + $0x98] sm:$0xff]  ;;  %v1173_v13 = vcombine.low %v15_v63, %v23_v0  ;;  %v1175_v14 = vcombine.low %v16_v1, %v24_v2  ;;  %v1190_v15 = vcombine.high %v31_v8, %v39_v9 }
   0x9   :  { %v1218_v29 = vcombine.high %v61_v23, %v69_v24  ;;  %v1220_v30 = vcombine.high %v62_v25, %v70_v26  ;;  %v77_v31 = vld [vmem:[%s1775_s1 + $0x200] sm:$0xff]  ;;  %v78_v33 = vld [vmem:[%s1775_s1 + $0x208] sm:$0xff]  ;;  %v1217_v35 = vcombine.low %v61_v23, %v69_v24  ;;  %v1219_v36 = vcombine.low %v62_v25, %v70_v26  ;;  %v40_v11 = vld [vmem:[%s1775_s1 + $0xd8] sm:$0xff] }
   0xa   :  { %784 = vmatpush1.bf16.msra.mxu0 %v1185_v19  ;;  %825 = vmatpush1.bf16.msra.mxu1 %v1187_v20  ;;  %v85_v32 = vld [vmem:[%s1775_s1 + $0x240] sm:$0xff]  ;;  %v86_v34 = vld [vmem:[%s1775_s1 + $0x248] sm:$0xff]  ;;  %v1192_v16 = vcombine.high %v32_v10, %v40_v11  ;;  %v47_v17 = vld [vmem:[%s1775_s1 + $0x110] sm:$0xff] }
   0xb   :  { %785 = vmatprep.subr.bf16.mxu0 %v1202_v21  ;;  %826 = vmatprep.subr.bf16.mxu1 %v1204_v22  ;;  %v1234_v37 = vcombine.high %v77_v31, %v85_v32  ;;  %v1236_v38 = vcombine.high %v78_v33, %v86_v34  ;;  %v93_v39 = vld [vmem:[%s1775_s1 + $0x280] sm:$0xff]  ;;  %v94_v41 = vld [vmem:[%s1775_s1 + $0x288] sm:$0xff]  ;;  %v1233_v43 = vcombine.low %v77_v31, %v85_v32  ;;  %v55_v18 = vld [vmem:[%s1775_s1 + $0x150] sm:$0xff] }
   0xc   :  { %v101_v40 = vld [vmem:[%s1775_s1 + $0x2c0] sm:$0xff]  ;;  %v102_v42 = vld [vmem:[%s1775_s1 + $0x2c8] sm:$0xff]  ;;  %v1235_v44 = vcombine.low %v78_v33, %v86_v34  ;;  %v48_v19 = vld [vmem:[%s1775_s1 + $0x118] sm:$0xff]  ;;  %v1189_v21 = vcombine.low %v31_v8, %v39_v9  ;;  %v1191_v22 = vcombine.low %v32_v10, %v40_v11  ;;  %v1206_v23 = vcombine.high %v47_v17, %v55_v18 }
   0xd   :  { %v1250_v45 = vcombine.high %v93_v39, %v101_v40  ;;  %v1252_v46 = vcombine.high %v94_v41, %v102_v42  ;;  %v109_v47 = vld [vmem:[%s1775_s1 + $0x300] sm:$0xff]  ;;  %v110_v49 = vld [vmem:[%s1775_s1 + $0x308] sm:$0xff]  ;;  %v1249_v51 = vcombine.low %v93_v39, %v101_v40  ;;  %v1251_v52 = vcombine.low %v94_v41, %v102_v42  ;;  %v56_v20 = vld [vmem:[%s1775_s1 + $0x158] sm:$0xff] }
   0xe   :  { %786 = vmatpush1.bf16.msra.mxu0 %v1201_v27  ;;  %827 = vmatpush1.bf16.msra.mxu1 %v1203_v28  ;;  %v117_v48 = vld [vmem:[%s1775_s1 + $0x340] sm:$0xff]  ;;  %v118_v50 = vld [vmem:[%s1775_s1 + $0x348] sm:$0xff]  ;;  %v1208_v24 = vcombine.high %v48_v19, %v56_v20  ;;  %v63_v25 = vld [vmem:[%s1775_s1 + $0x190] sm:$0xff] }
   0xf   :  { %787 = vmatprep.subr.bf16.mxu0 %v1218_v29  ;;  %828 = vmatprep.subr.bf16.mxu1 %v1220_v30  ;;  %v1266_v53 = vcombine.high %v109_v47, %v117_v48  ;;  %v1268_v54 = vcombine.high %v110_v49, %v118_v50  ;;  %v125_v55 = vld [vmem:[%s1775_s1 + $0x380] sm:$0xff]  ;;  %v126_v57 = vld [vmem:[%s1775_s1 + $0x388] sm:$0xff]  ;;  %v1265_v59 = vcombine.low %v109_v47, %v117_v48  ;;  %v71_v26 = vld [vmem:[%s1775_s1 + $0x1d0] sm:$0xff] }
  0x10   :  { %v133_v56 = vld [vmem:[%s1775_s1 + $0x3c0] sm:$0xff]  ;;  %v134_v58 = vld [vmem:[%s1775_s1 + $0x3c8] sm:$0xff]  ;;  %v1267_v60 = vcombine.low %v110_v49, %v118_v50  ;;  %v64_v27 = vld [vmem:[%s1775_s1 + $0x198] sm:$0xff]  ;;  %v1205_v29 = vcombine.low %v47_v17, %v55_v18  ;;  %v1207_v30 = vcombine.low %v48_v19, %v56_v20  ;;  %v1222_v31 = vcombine.high %v63_v25, %v71_v26 }
  0x11   :  { %v1282_v61 = vcombine.high %v125_v55, %v133_v56  ;;  %v1284_v62 = vcombine.high %v126_v57, %v134_v58  ;;  %v1281_v4 = vcombine.low %v125_v55, %v133_v56  ;;  %v1283_v5 = vcombine.low %v126_v57, %v134_v58  ;;  %v1471_v12 = vld [vmem:[%s1776_s0] sm:$0x3]  ;;  %v72_v28 = vld [vmem:[%s1775_s1 + $0x1d8] sm:$0xff]  ;;  %v79_v33 = vld [vmem:[%s1775_s1 + $0x210] sm:$0xff] }
  0x12   :  { %788 = vmatpush1.bf16.msra.mxu0 %v1217_v35  ;;  %829 = vmatpush1.bf16.msra.mxu1 %v1219_v36  ;;  %v1224_v32 = vcombine.high %v64_v27, %v72_v28  ;;  %v87_v34 = vld [vmem:[%s1775_s1 + $0x250] sm:$0xff]  ;;  %v80_v35 = vld [vmem:[%s1775_s1 + $0x218] sm:$0xff]  ;;  %v17_v1 = vld [vmem:[%s1775_s1 + $0x20] sm:$0xff] }
  0x13   :  { %789 = vmatprep.subr.bf16.mxu0 %v1234_v37  ;;  %830 = vmatprep.subr.bf16.mxu1 %v1236_v38  ;;  %v88_v36 = vld [vmem:[%s1775_s1 + $0x258] sm:$0xff]  ;;  %v1221_v37 = vcombine.low %v63_v25, %v71_v26  ;;  %v1223_v38 = vcombine.low %v64_v27, %v72_v28  ;;  %v1238_v39 = vcombine.high %v79_v33, %v87_v34  ;;  %v95_v41 = vld [vmem:[%s1775_s1 + $0x290] sm:$0xff]  ;;  %v25_v2 = vld [vmem:[%s1775_s1 + $0x60] sm:$0xff] }
  0x14   :  { %v1240_v40 = vcombine.high %v80_v35, %v88_v36  ;;  %v103_v42 = vld [vmem:[%s1775_s1 + $0x2d0] sm:$0xff]  ;;  %v1178_v8 = vcombine.high %v17_v1, %v25_v2  ;;  %v33_v10 = vld [vmem:[%s1775_s1 + $0xa0] sm:$0xff] }
  0x15   :  { %v1254_v47 = vcombine.high %v95_v41, %v103_v42  ;;  %v111_v49 = vld [vmem:[%s1775_s1 + $0x310] sm:$0xff]  ;;  %v41_v11 = vld [vmem:[%s1775_s1 + $0xe0] sm:$0xff] }
  0x16   :  { %790 = vmatpush1.bf16.msra.mxu0 %v1233_v43  ;;  %831 = vmatpush1.bf16.msra.mxu1 %v1235_v44  ;;  %v96_v43 = vld [vmem:[%s1775_s1 + $0x298] sm:$0xff]  ;;  %v119_v50 = vld [vmem:[%s1775_s1 + $0x350] sm:$0xff]  ;;  %v1194_v17 = vcombine.high %v33_v10, %v41_v11  ;;  %v49_v19 = vld [vmem:[%s1775_s1 + $0x120] sm:$0xff] }
  0x17   :  { %791 = vmatprep.subr.bf16.mxu0 %v1250_v45  ;;  %832 = vmatprep.subr.bf16.mxu1 %v1252_v46  ;;  %v104_v44 = vld [vmem:[%s1775_s1 + $0x2d8] sm:$0xff]  ;;  %v1237_v45 = vcombine.low %v79_v33, %v87_v34  ;;  %v1239_v46 = vcombine.low %v80_v35, %v88_v36  ;;  %v1270_v55 = vcombine.high %v111_v49, %v119_v50  ;;  %v127_v57 = vld [vmem:[%s1775_s1 + $0x390] sm:$0xff]  ;;  %v57_v20 = vld [vmem:[%s1775_s1 + $0x160] sm:$0xff] }
  0x18   :  { %v1256_v48 = vcombine.high %v96_v43, %v104_v44  ;;  %v135_v58 = vld [vmem:[%s1775_s1 + $0x3d0] sm:$0xff]  ;;  %v1210_v25 = vcombine.high %v49_v19, %v57_v20  ;;  %v65_v27 = vld [vmem:[%s1775_s1 + $0x1a0] sm:$0xff] }
  0x19   :  { %v1286_v63 = vcombine.high %v127_v57, %v135_v58  ;;  %v73_v28 = vld [vmem:[%s1775_s1 + $0x1e0] sm:$0xff] }
  0x1a   :  { %792 = vmatpush1.bf16.msra.mxu0 %v1249_v51  ;;  %833 = vmatpush1.bf16.msra.mxu1 %v1251_v52  ;;  %v112_v51 = vld [vmem:[%s1775_s1 + $0x318] sm:$0xff]  ;;  %v1226_v33 = vcombine.high %v65_v27, %v73_v28  ;;  %v81_v35 = vld [vmem:[%s1775_s1 + $0x220] sm:$0xff] }
  0x1b   :  { %793 = vmatprep.subr.bf16.mxu0 %v1266_v53  ;;  %834 = vmatprep.subr.bf16.mxu1 %v1268_v54  ;;  %v120_v52 = vld [vmem:[%s1775_s1 + $0x358] sm:$0xff]  ;;  %v1253_v53 = vcombine.low %v95_v41, %v103_v42  ;;  %v1255_v54 = vcombine.low %v96_v43, %v104_v44  ;;  %v89_v36 = vld [vmem:[%s1775_s1 + $0x260] sm:$0xff] }
  0x1c   :  { %v1272_v56 = vcombine.high %v112_v51, %v120_v52  ;;  %v1242_v41 = vcombine.high %v81_v35, %v89_v36  ;;  %v97_v43 = vld [vmem:[%s1775_s1 + $0x2a0] sm:$0xff] }
  0x1d   :  { %v105_v44 = vld [vmem:[%s1775_s1 + $0x2e0] sm:$0xff] }
  0x1e   :  { %794 = vmatpush1.bf16.msra.mxu0 %v1265_v59  ;;  %835 = vmatpush1.bf16.msra.mxu1 %v1267_v60  ;;  %v128_v59 = vld [vmem:[%s1775_s1 + $0x398] sm:$0xff] }
  0x1f   :  { %795 = vmatprep.subr.bf16.mxu0 %v1282_v61  ;;  %836 = vmatprep.subr.bf16.mxu1 %v1284_v62  ;;  %v136_v60 = vld [vmem:[%s1775_s1 + $0x3d8] sm:$0xff]  ;;  %v1269_v61 = vcombine.low %v111_v49, %v119_v50  ;;  %v1271_v62 = vcombine.low %v112_v51, %v120_v52  ;;  %v1258_v49 = vcombine.high %v97_v43, %v105_v44  ;;  %v113_v51 = vld [vmem:[%s1775_s1 + $0x320] sm:$0xff] }
  0x20   :  { %v1288_v0 = vcombine.high %v128_v59, %v136_v60  ;;  %v121_v52 = vld [vmem:[%s1775_s1 + $0x360] sm:$0xff] }
  0x22   :  { %796 = vmatpush1.bf16.msra.mxu0 %v1281_v4  ;;  %837 = vmatpush1.bf16.msra.mxu1 %v1283_v5  ;;  %v18_v4 = vld [vmem:[%s1775_s1 + $0x28] sm:$0xff] }
  0x23   :  { %863 = vmatprep.subr.bf16.mxu0 %v1174_v6  ;;  %904 = vmatprep.subr.bf16.mxu1 %v1176_v7  ;;  %v26_v5 = vld [vmem:[%s1775_s1 + $0x68] sm:$0xff]  ;;  %v1285_v6 = vcombine.low %v127_v57, %v135_v58  ;;  %v1287_v7 = vcombine.low %v128_v59, %v136_v60  ;;  %v1274_v57 = vcombine.high %v113_v51, %v121_v52  ;;  %v129_v59 = vld [vmem:[%s1775_s1 + $0x3a0] sm:$0xff] }
  0x24   :  { %v1180_v9 = vcombine.high %v18_v4, %v26_v5  ;;  %v137_v60 = vld [vmem:[%s1775_s1 + $0x3e0] sm:$0xff] }
  0x25   :  { %814 = vmatmul.mubr.bf16.vlgmr.msra.gmra.mrb[0].mxu0 %v1471_v12  ;;  %855 = vmatmul.mubr.bf16.vlgmr.msra.gmra.mrb[0].mxu1 %v1471_v12 }
  0x26   :  { %864 = vmatpush1.bf16.msra.mxu0 %v1173_v13  ;;  %905 = vmatpush1.bf16.msra.mxu1 %v1175_v14  ;;  %v34_v13 = vld [vmem:[%s1775_s1 + $0xa8] sm:$0xff] }
  0x27   :  { %865 = vmatprep.subr.bf16.mxu0 %v1190_v15  ;;  %906 = vmatprep.subr.bf16.mxu1 %v1192_v16  ;;  %v42_v14 = vld [vmem:[%s1775_s1 + $0xe8] sm:$0xff]  ;;  %v1177_v15 = vcombine.low %v17_v1, %v25_v2  ;;  %v1179_v16 = vcombine.low %v18_v4, %v26_v5  ;;  %v1290_v1 = vcombine.high %v129_v59, %v137_v60  ;;  %v19_v4 = vld [vmem:[%s1775_s1 + $0x30] sm:$0xff] }
  0x28   :  { %895 = vmatprep.mubr.bf16.mxu0 %v1330_v3  ;;  %936 = vmatprep.mubr.bf16.mxu1 %v1330_v3  ;;  %v1196_v18 = vcombine.high %v34_v13, %v42_v14  ;;  %v27_v5 = vld [vmem:[%s1775_s1 + $0x70] sm:$0xff] }
  0x2a   :  { %866 = vmatpush1.bf16.msra.mxu0 %v1189_v21  ;;  %907 = vmatpush1.bf16.msra.mxu1 %v1191_v22  ;;  %v50_v21 = vld [vmem:[%s1775_s1 + $0x128] sm:$0xff] }
  0x2b   :  { %867 = vmatprep.subr.bf16.mxu0 %v1206_v23  ;;  %908 = vmatprep.subr.bf16.mxu1 %v1208_v24  ;;  %v58_v22 = vld [vmem:[%s1775_s1 + $0x168] sm:$0xff]  ;;  %v1193_v23 = vcombine.low %v33_v10, %v41_v11  ;;  %v1195_v24 = vcombine.low %v34_v13, %v42_v14  ;;  %v1182_v10 = vcombine.high %v19_v4, %v27_v5  ;;  %v35_v13 = vld [vmem:[%s1775_s1 + $0xb0] sm:$0xff] }
  0x2c   :  { %v1212_v26 = vcombine.high %v50_v21, %v58_v22  ;;  %v43_v14 = vld [vmem:[%s1775_s1 + $0xf0] sm:$0xff] }
  0x2e   :  { %868 = vmatpush1.bf16.msra.mxu0 %v1205_v29  ;;  %909 = vmatpush1.bf16.msra.mxu1 %v1207_v30  ;;  %v66_v29 = vld [vmem:[%s1775_s1 + $0x1a8] sm:$0xff] }
  0x2f   :  { %869 = vmatprep.subr.bf16.mxu0 %v1222_v31  ;;  %910 = vmatprep.subr.bf16.mxu1 %v1224_v32  ;;  %v74_v30 = vld [vmem:[%s1775_s1 + $0x1e8] sm:$0xff]  ;;  %v1209_v31 = vcombine.low %v49_v19, %v57_v20  ;;  %v1211_v32 = vcombine.low %v50_v21, %v58_v22  ;;  %v1198_v19 = vcombine.high %v35_v13, %v43_v14  ;;  %v51_v21 = vld [vmem:[%s1775_s1 + $0x130] sm:$0xff] }
  0x30   :  { %v1228_v34 = vcombine.high %v66_v29, %v74_v30  ;;  %v59_v22 = vld [vmem:[%s1775_s1 + $0x170] sm:$0xff] }
  0x32   :  { %870 = vmatpush1.bf16.msra.mxu0 %v1221_v37  ;;  %911 = vmatpush1.bf16.msra.mxu1 %v1223_v38  ;;  %v82_v37 = vld [vmem:[%s1775_s1 + $0x228] sm:$0xff] }
  0x33   :  { %871 = vmatprep.subr.bf16.mxu0 %v1238_v39  ;;  %912 = vmatprep.subr.bf16.mxu1 %v1240_v40  ;;  %v90_v38 = vld [vmem:[%s1775_s1 + $0x268] sm:$0xff]  ;;  %v1225_v39 = vcombine.low %v65_v27, %v73_v28  ;;  %v1227_v40 = vcombine.low %v66_v29, %v74_v30  ;;  %v1214_v27 = vcombine.high %v51_v21, %v59_v22  ;;  %v67_v29 = vld [vmem:[%s1775_s1 + $0x1b0] sm:$0xff] }
  0x34   :  { %v1244_v42 = vcombine.high %v82_v37, %v90_v38  ;;  %v75_v30 = vld [vmem:[%s1775_s1 + $0x1f0] sm:$0xff] }
  0x36   :  { %872 = vmatpush1.bf16.msra.mxu0 %v1237_v45  ;;  %913 = vmatpush1.bf16.msra.mxu1 %v1239_v46  ;;  %v98_v45 = vld [vmem:[%s1775_s1 + $0x2a8] sm:$0xff] }
  0x37   :  { %873 = vmatprep.subr.bf16.mxu0 %v1254_v47  ;;  %914 = vmatprep.subr.bf16.mxu1 %v1256_v48  ;;  %v106_v46 = vld [vmem:[%s1775_s1 + $0x2e8] sm:$0xff]  ;;  %v1241_v47 = vcombine.low %v81_v35, %v89_v36  ;;  %v1243_v48 = vcombine.low %v82_v37, %v90_v38  ;;  %v1230_v35 = vcombine.high %v67_v29, %v75_v30  ;;  %v83_v37 = vld [vmem:[%s1775_s1 + $0x230] sm:$0xff] }
  0x38   :  { %v1260_v50 = vcombine.high %v98_v45, %v106_v46  ;;  %v91_v38 = vld [vmem:[%s1775_s1 + $0x270] sm:$0xff] }
  0x3a   :  { %874 = vmatpush1.bf16.msra.mxu0 %v1253_v53  ;;  %915 = vmatpush1.bf16.msra.mxu1 %v1255_v54  ;;  %v114_v53 = vld [vmem:[%s1775_s1 + $0x328] sm:$0xff] }
  0x3b   :  { %875 = vmatprep.subr.bf16.mxu0 %v1270_v55  ;;  %916 = vmatprep.subr.bf16.mxu1 %v1272_v56  ;;  %v122_v54 = vld [vmem:[%s1775_s1 + $0x368] sm:$0xff]  ;;  %v1257_v55 = vcombine.low %v97_v43, %v105_v44  ;;  %v1259_v56 = vcombine.low %v98_v45, %v106_v46  ;;  %v99_v44 = vld [vmem:[%s1775_s1 + $0x2b0] sm:$0xff]  ;;  %v100_v46 = vld [vmem:[%s1775_s1 + $0x2b8] sm:$0xff] }
  0x3c   :  { %v1276_v58 = vcombine.high %v114_v53, %v122_v54  ;;  %v107_v45 = vld [vmem:[%s1775_s1 + $0x2f0] sm:$0xff] }
  0x3e   :  { %876 = vmatpush1.bf16.msra.mxu0 %v1269_v61  ;;  %917 = vmatpush1.bf16.msra.mxu1 %v1271_v62  ;;  %v130_v61 = vld [vmem:[%s1775_s1 + $0x3a8] sm:$0xff] }
  0x3f   :  { %877 = vmatprep.subr.bf16.mxu0 %v1286_v63  ;;  %918 = vmatprep.subr.bf16.mxu1 %v1288_v0  ;;  %v138_v62 = vld [vmem:[%s1775_s1 + $0x3e8] sm:$0xff]  ;;  %v1273_v63 = vcombine.low %v113_v51, %v121_v52  ;;  %v1275_v0 = vcombine.low %v114_v53, %v122_v54  ;;  %v115_v52 = vld [vmem:[%s1775_s1 + $0x330] sm:$0xff]  ;;  %v116_v54 = vld [vmem:[%s1775_s1 + $0x338] sm:$0xff] }
  0x40   :  { %v1292_v2 = vcombine.high %v130_v61, %v138_v62  ;;  %v123_v53 = vld [vmem:[%s1775_s1 + $0x370] sm:$0xff] }
  0x42   :  { %878 = vmatpush1.bf16.msra.mxu0 %v1285_v6  ;;  %919 = vmatpush1.bf16.msra.mxu1 %v1287_v7  ;;  %v20_v6 = vld [vmem:[%s1775_s1 + $0x38] sm:$0xff] }
  0x43   :  { %945 = vmatprep.subr.bf16.mxu0 %v1178_v8  ;;  %986 = vmatprep.subr.bf16.mxu1 %v1180_v9  ;;  %v28_v7 = vld [vmem:[%s1775_s1 + $0x78] sm:$0xff]  ;;  %v1289_v8 = vcombine.low %v129_v59, %v137_v60  ;;  %v1291_v9 = vcombine.low %v130_v61, %v138_v62  ;;  %v131_v60 = vld [vmem:[%s1775_s1 + $0x3b0] sm:$0xff] }
  0x44   :  { %v1184_v11 = vcombine.high %v20_v6, %v28_v7  ;;  %v139_v61 = vld [vmem:[%s1775_s1 + $0x3f0] sm:$0xff]  ;;  %v132_v62 = vld [vmem:[%s1775_s1 + $0x3b8] sm:$0xff] }
  0x45   :  { %896 = vmatmul.mubr.bf16.vlgmr.msra.gmra.mrb[4].mxu0 %v1471_v12  ;;  %937 = vmatmul.mubr.bf16.vlgmr.msra.gmra.mrb[4].mxu1 %v1471_v12 }
  0x46   :  { %946 = vmatpush1.bf16.msra.mxu0 %v1177_v15  ;;  %987 = vmatpush1.bf16.msra.mxu1 %v1179_v16  ;;  %v36_v15 = vld [vmem:[%s1775_s1 + $0xb8] sm:$0xff] }
  0x47   :  { %947 = vmatprep.subr.bf16.mxu0 %v1194_v17  ;;  %988 = vmatprep.subr.bf16.mxu1 %v1196_v18  ;;  %v44_v16 = vld [vmem:[%s1775_s1 + $0xf8] sm:$0xff]  ;;  %v1181_v17 = vcombine.low %v19_v4, %v27_v5  ;;  %v1183_v18 = vcombine.low %v20_v6, %v28_v7  ;;  %v1293_v5 = vcombine.low %v131_v60, %v139_v61 }
  0x48   :  { %977 = vmatprep.mubr.bf16.mxu0 %v1330_v3  ;;  %1018 = vmatprep.mubr.bf16.mxu1 %v1330_v3  ;;  %v1200_v20 = vcombine.high %v36_v15, %v44_v16 }
  0x4a   :  { %948 = vmatpush1.bf16.msra.mxu0 %v1193_v23  ;;  %989 = vmatpush1.bf16.msra.mxu1 %v1195_v24  ;;  %v52_v23 = vld [vmem:[%s1775_s1 + $0x138] sm:$0xff] }
  0x4b   :  { %949 = vmatprep.subr.bf16.mxu0 %v1210_v25  ;;  %990 = vmatprep.subr.bf16.mxu1 %v1212_v26  ;;  %v60_v24 = vld [vmem:[%s1775_s1 + $0x178] sm:$0xff]  ;;  %v1197_v25 = vcombine.low %v35_v13, %v43_v14  ;;  %v1199_v26 = vcombine.low %v36_v15, %v44_v16 }
  0x4c   :  { %v1216_v28 = vcombine.high %v52_v23, %v60_v24 }
  0x4e   :  { %950 = vmatpush1.bf16.msra.mxu0 %v1209_v31  ;;  %991 = vmatpush1.bf16.msra.mxu1 %v1211_v32  ;;  %v68_v31 = vld [vmem:[%s1775_s1 + $0x1b8] sm:$0xff] }
  0x4f   :  { %951 = vmatprep.subr.bf16.mxu0 %v1226_v33  ;;  %992 = vmatprep.subr.bf16.mxu1 %v1228_v34  ;;  %v76_v32 = vld [vmem:[%s1775_s1 + $0x1f8] sm:$0xff]  ;;  %v1213_v33 = vcombine.low %v51_v21, %v59_v22  ;;  %v1215_v34 = vcombine.low %v52_v23, %v60_v24 }
  0x50   :  { %v1232_v36 = vcombine.high %v68_v31, %v76_v32 }
  0x52   :  { %952 = vmatpush1.bf16.msra.mxu0 %v1225_v39  ;;  %993 = vmatpush1.bf16.msra.mxu1 %v1227_v40  ;;  %v92_v39 = vld [vmem:[%s1775_s1 + $0x278] sm:$0xff]  ;;  %v1229_v40 = vcombine.low %v67_v29, %v75_v30 }
  0x53   :  { %953 = vmatprep.subr.bf16.mxu0 %v1242_v41  ;;  %994 = vmatprep.subr.bf16.mxu1 %v1244_v42  ;;  %v1231_v41 = vcombine.low %v68_v31, %v76_v32  ;;  %v1246_v42 = vcombine.high %v83_v37, %v91_v38 }
  0x56   :  { %954 = vmatpush1.bf16.msra.mxu0 %v1241_v47  ;;  %995 = vmatpush1.bf16.msra.mxu1 %v1243_v48  ;;  %v108_v47 = vld [vmem:[%s1775_s1 + $0x2f8] sm:$0xff]  ;;  %v1245_v48 = vcombine.low %v83_v37, %v91_v38 }
  0x57   :  { %955 = vmatprep.subr.bf16.mxu0 %v1258_v49  ;;  %996 = vmatprep.subr.bf16.mxu1 %v1260_v50  ;;  %v1262_v50 = vcombine.high %v99_v44, %v107_v45  ;;  %v1264_v51 = vcombine.high %v100_v46, %v108_v47 }
  0x5a   :  { %956 = vmatpush1.bf16.msra.mxu0 %v1257_v55  ;;  %997 = vmatpush1.bf16.msra.mxu1 %v1259_v56  ;;  %v124_v55 = vld [vmem:[%s1775_s1 + $0x378] sm:$0xff]  ;;  %v1261_v56 = vcombine.low %v99_v44, %v107_v45 }
  0x5b   :  { %957 = vmatprep.subr.bf16.mxu0 %v1274_v57  ;;  %998 = vmatprep.subr.bf16.mxu1 %v1276_v58  ;;  %v1263_v57 = vcombine.low %v100_v46, %v108_v47  ;;  %v1278_v58 = vcombine.high %v115_v52, %v123_v53  ;;  %v1280_v59 = vcombine.high %v116_v54, %v124_v55 }
  0x5e   :  { %958 = vmatpush1.bf16.msra.mxu0 %v1273_v63  ;;  %999 = vmatpush1.bf16.msra.mxu1 %v1275_v0  ;;  %v140_v63 = vld [vmem:[%s1775_s1 + $0x3f8] sm:$0xff]  ;;  %v1277_v0 = vcombine.low %v115_v52, %v123_v53 }
  0x5f   :  { %959 = vmatprep.subr.bf16.mxu0 %v1290_v1  ;;  %1000 = vmatprep.subr.bf16.mxu1 %v1292_v2  ;;  %v1279_v1 = vcombine.low %v116_v54, %v124_v55  ;;  %v1294_v2 = vcombine.high %v131_v60, %v139_v61  ;;  %v1296_v4 = vcombine.high %v132_v62, %v140_v63 }
  0x60   :  { %v1295_v6 = vcombine.low %v132_v62, %v140_v63 }
  0x62   :  { %960 = vmatpush1.bf16.msra.mxu0 %v1289_v8  ;;  %1001 = vmatpush1.bf16.msra.mxu1 %v1291_v9 }
  0x63   :  { %1027 = vmatprep.subr.bf16.mxu0 %v1182_v10  ;;  %1068 = vmatprep.subr.bf16.mxu1 %v1184_v11 }
  0x65   :  { %978 = vmatmul.mubr.bf16.vlgmr.msra.gmra.mrb[8].mxu0 %v1471_v12  ;;  %1019 = vmatmul.mubr.bf16.vlgmr.msra.gmra.mrb[8].mxu1 %v1471_v12 }
  0x66   :  { %1028 = vmatpush1.bf16.msra.mxu0 %v1181_v17  ;;  %1069 = vmatpush1.bf16.msra.mxu1 %v1183_v18 }
  0x67   :  { %1029 = vmatprep.subr.bf16.mxu0 %v1198_v19  ;;  %1070 = vmatprep.subr.bf16.mxu1 %v1200_v20 }
  0x68   :  { %1059 = vmatprep.mubr.bf16.mxu0 %v1330_v3  ;;  %1100 = vmatprep.mubr.bf16.mxu1 %v1330_v3  ;;  %v84_v3 = vld [vmem:[%s1775_s1 + $0x238] sm:$0xff] }
  0x69   :  { %v1248_v43 = vcombine.high %v84_v3, %v92_v39  ;;  %v1247_v49 = vcombine.low %v84_v3, %v92_v39 }
  0x6a   :  { %1030 = vmatpush1.bf16.msra.mxu0 %v1197_v25  ;;  %1071 = vmatpush1.bf16.msra.mxu1 %v1199_v26 }
  0x6b   :  { %1031 = vmatprep.subr.bf16.mxu0 %v1214_v27  ;;  %1072 = vmatprep.subr.bf16.mxu1 %v1216_v28 }
  0x6e   :  { %1032 = vmatpush1.bf16.msra.mxu0 %v1213_v33  ;;  %1073 = vmatpush1.bf16.msra.mxu1 %v1215_v34 }
  0x6f   :  { %1033 = vmatprep.subr.bf16.mxu0 %v1230_v35  ;;  %1074 = vmatprep.subr.bf16.mxu1 %v1232_v36 }
  0x72   :  { %1034 = vmatpush1.bf16.msra.mxu0 %v1229_v40  ;;  %1075 = vmatpush1.bf16.msra.mxu1 %v1231_v41 }
  0x73   :  { %1035 = vmatprep.subr.bf16.mxu0 %v1246_v42  ;;  %1076 = vmatprep.subr.bf16.mxu1 %v1248_v43 }
  0x76   :  { %1036 = vmatpush1.bf16.msra.mxu0 %v1245_v48  ;;  %1077 = vmatpush1.bf16.msra.mxu1 %v1247_v49 }
  0x77   :  { %1037 = vmatprep.subr.bf16.mxu0 %v1262_v50  ;;  %1078 = vmatprep.subr.bf16.mxu1 %v1264_v51 }
  0x7a   :  { %1038 = vmatpush1.bf16.msra.mxu0 %v1261_v56  ;;  %1079 = vmatpush1.bf16.msra.mxu1 %v1263_v57 }
  0x7b   :  { %1039 = vmatprep.subr.bf16.mxu0 %v1278_v58  ;;  %1080 = vmatprep.subr.bf16.mxu1 %v1280_v59 }
  0x7e   :  { %1040 = vmatpush1.bf16.msra.mxu0 %v1277_v0  ;;  %1081 = vmatpush1.bf16.msra.mxu1 %v1279_v1 }
  0x7f   :  { %1041 = vmatprep.subr.bf16.mxu0 %v1294_v2  ;;  %1082 = vmatprep.subr.bf16.mxu1 %v1296_v4 }
  0x82   :  { %1042 = vmatpush1.bf16.msra.mxu0 %v1293_v5  ;;  %1083 = vmatpush1.bf16.msra.mxu1 %v1295_v6 }
  0x85   :  { %1060 = vmatmul.mubr.bf16.vlgmr.msra.gmra.mrb[12].mxu0 %v1471_v12  ;;  %1101 = vmatmul.mubr.bf16.vlgmr.msra.gmra.mrb[12].mxu1 %v1471_v12 }
  0xf8   :  { %v815_v7 = vpop.f32.mrb[0].mxu0  ;;  %v856_v8 = vpop.f32.mrb[0].mxu1 }
  0xf9   :  { %1298 = vtanh.f32 %v815_v7  ;;  %v817_v9 = vpop.f32.mrb[1].mxu0  ;;  %v858_v10 = vpop.f32.mrb[1].mxu1 }
  0xfa   :  { %1300 = vtanh.f32 %v856_v8  ;;  %v819_v11 = vpop.f32.mrb[2].mxu0  ;;  %v860_v13 = vpop.f32.mrb[2].mxu1 }
  0xfb   :  { %1302 = vtanh.f32 %v817_v9  ;;  %v820_v14 = vpop.f32.mrb[3].mxu0  ;;  %v861_v15 = vpop.f32.mrb[3].mxu1 }
  0xfc   :  { %1304 = vtanh.f32 %v858_v10 }
 0x103   :  { %v1299_v16 = vpop.eup %1298 }
 0x104   :  { %v1301_v17 = vpop.eup %1300 }
 0x105   :  { %v1303_v18 = vpop.eup %1302 }
 0x106   :  { %v1305_v19 = vpop.eup %1304  ;;  %v1141_v20 = vcombine.low %v1299_v16, %v1303_v18 }
 0x107   :  { %v1142_v21 = vcombine.low %v1301_v17, %v1305_v19 }
 0x108   :  { %1157 = vst [vmem:[%s1777_s2] sm:$0x77] %v1141_v20 }
 0x109   :  { %1158 = vst [vmem:[%s1777_s2 + $0x8] sm:$0x77] %v1142_v21 }
 0x118   :  { %v897_v12 = vpop.f32.mrb[4].mxu0  ;;  %v938_v22 = vpop.f32.mrb[4].mxu1 }
 0x119   :  { %1306 = vtanh.f32 %v897_v12  ;;  %v899_v23 = vpop.f32.mrb[5].mxu0  ;;  %v940_v24 = vpop.f32.mrb[5].mxu1 }
 0x11a   :  { %1308 = vtanh.f32 %v938_v22  ;;  %v901_v25 = vpop.f32.mrb[6].mxu0  ;;  %v942_v26 = vpop.f32.mrb[6].mxu1 }
 0x11b   :  { %1310 = vtanh.f32 %v899_v23  ;;  %v902_v27 = vpop.f32.mrb[7].mxu0  ;;  %v943_v28 = vpop.f32.mrb[7].mxu1 }
 0x11c   :  { %1312 = vtanh.f32 %v940_v24 }
 0x123   :  { %v1307_v29 = vpop.eup %1306 }
 0x124   :  { %v1309_v30 = vpop.eup %1308 }
 0x125   :  { %v1311_v31 = vpop.eup %1310 }
 0x126   :  { %v1313_v32 = vpop.eup %1312  ;;  %v1143_v33 = vcombine.low %v1307_v29, %v1311_v31 }
 0x127   :  { %v1144_v34 = vcombine.low %v1309_v30, %v1313_v32 }
 0x128   :  { %1159 = vst [vmem:[%s1777_s2 + $0x10] sm:$0x77] %v1143_v33 }
 0x129   :  { %1160 = vst [vmem:[%s1777_s2 + $0x18] sm:$0x77] %v1144_v34 }
 0x138   :  { %v979_v35 = vpop.f32.mrb[8].mxu0  ;;  %v1020_v36 = vpop.f32.mrb[8].mxu1 }
 0x139   :  { %1314 = vtanh.f32 %v979_v35  ;;  %v981_v37 = vpop.f32.mrb[9].mxu0  ;;  %v1022_v38 = vpop.f32.mrb[9].mxu1 }
 0x13a   :  { %1316 = vtanh.f32 %v1020_v36  ;;  %v983_v3 = vpop.f32.mrb[10].mxu0  ;;  %v1024_v39 = vpop.f32.mrb[10].mxu1 }
 0x13b   :  { %1318 = vtanh.f32 %v981_v37  ;;  %v984_v40 = vpop.f32.mrb[11].mxu0  ;;  %v1025_v41 = vpop.f32.mrb[11].mxu1 }
 0x13c   :  { %1320 = vtanh.f32 %v1022_v38 }
 0x143   :  { %v1315_v42 = vpop.eup %1314 }
 0x144   :  { %v1317_v43 = vpop.eup %1316 }
 0x145   :  { %v1319_v44 = vpop.eup %1318 }
 0x146   :  { %v1321_v45 = vpop.eup %1320  ;;  %v1145_v46 = vcombine.low %v1315_v42, %v1319_v44 }
 0x147   :  { %v1146_v47 = vcombine.low %v1317_v43, %v1321_v45 }
 0x148   :  { %1161 = vst [vmem:[%s1777_s2 + $0x20] sm:$0x77] %v1145_v46 }
 0x149   :  { %1162 = vst [vmem:[%s1777_s2 + $0x28] sm:$0x77] %v1146_v47 }
 0x158   :  { %v1061_v48 = vpop.f32.mrb[12].mxu0  ;;  %v1102_v49 = vpop.f32.mrb[12].mxu1 }
 0x159   :  { %1322 = vtanh.f32 %v1061_v48  ;;  %v1063_v50 = vpop.f32.mrb[13].mxu0  ;;  %v1104_v51 = vpop.f32.mrb[13].mxu1 }
 0x15a   :  { %1324 = vtanh.f32 %v1102_v49  ;;  %v1065_v52 = vpop.f32.mrb[14].mxu0  ;;  %v1106_v53 = vpop.f32.mrb[14].mxu1 }
 0x15b   :  { %1326 = vtanh.f32 %v1063_v50  ;;  %v1066_v54 = vpop.f32.mrb[15].mxu0  ;;  %v1107_v55 = vpop.f32.mrb[15].mxu1 }
 0x15c   :  { %1328 = vtanh.f32 %v1104_v51 }
 0x163   :  { %v1323_v56 = vpop.eup %1322 }
 0x164   :  { %v1325_v57 = vpop.eup %1324 }
 0x165   :  { %v1327_v58 = vpop.eup %1326 }
 0x166   :  { %v1329_v59 = vpop.eup %1328  ;;  %v1147_v60 = vcombine.low %v1323_v56, %v1327_v58 }
 0x167   :  { %v1148_v61 = vcombine.low %v1325_v57, %v1329_v59 }
 0x168   :  { %1163 = vst [vmem:[%s1777_s2 + $0x30] sm:$0x77] %v1147_v60 }
 0x169   :  { %1164 = vst [vmem:[%s1777_s2 + $0x38] sm:$0x77] %v1148_v61 }

</bundles_post_ra>
